<compile_context>
chip_gen: v5e
topology: v5e:2x2
jax: 0.10.0
libtpu: 0.0.40
codegen_flags: <defaults>
</compile_context>

<pallas_src>
import functools

import jax
import jax.numpy as jnp
from jax import lax
from jax.experimental import pallas as pl
from jax.experimental.pallas import tpu as pltpu


_MATMUL_DTYPE = jnp.bfloat16   # MXU operand dtype; accumulation stays float32.


def _round_up(x, m):
    return ((x + m - 1) // m) * m


def _vmem_cap_bytes():
    try:
        return int(pltpu.get_tpu_info().vmem_capacity_bytes)
    except Exception:
        return 64 << 20          # conservative fallback (v7x physical VMEM per core)


def _gaussian_rnn_kernel(x_ref, wih_ref, whh_ref, w1_ref, w2_ref, w3_ref,
                         bih_ref, bhh_ref, b1_ref, b2_ref, b3_ref,
                         out_ref, h_ref, gx_ref, hs_ref,
                         *, hdim, zdim, tc, lane_dense_out):
    """One (batch_tile, time_block) grid point: Tc GRU steps + GaussianNet head."""
    H, Z, Tc = hdim, zdim, tc
    tile_b = x_ref.shape[0]
    mm = _MATMUL_DTYPE
    ti = pl.program_id(1)

    # h_0 = 0 at the start of every sequence.  Correct because the time axis is the
    # innermost, sequential ("arbitrary") grid axis and the carry lives in VMEM scratch.
    @pl.when(ti == 0)
    def _():
        h_ref[...] = jnp.zeros_like(h_ref)

    # ---- hoisted input projection: one big matmul for the whole time block --------
    x_blk = x_ref[...]                                           # (tile_b, Tc, xdim) f32
    x_flat = x_blk.reshape(tile_b * Tc, x_blk.shape[-1])
    gx = jnp.dot(x_flat.astype(mm), wih_ref[...],
                 preferred_element_type=jnp.float32) + bih_ref[...]
    gx_ref[...] = gx.reshape(tile_b, Tc, 3 * H)                  # stage for the loop

    # ---- serial GRU recurrence (PyTorch gate order r, z, n), fully unrolled --------
    w_hh = whh_ref[...]                                          # (H, 3H) bf16, resident
    b_hh = bhh_ref[...]                                          # (1, 3H) f32
    h = h_ref[...]                                               # (tile_b, H) f32
    for t in range(Tc):                                          # static unroll
        gx_t = gx_ref[:, t, :]                                   # (tile_b, 3H) f32
        gh = jnp.dot(h.astype(mm), w_hh,
                     preferred_element_type=jnp.float32) + b_hh
        r = jax.nn.sigmoid(gx_t[:, 0:H] + gh[:, 0:H])
        z = jax.nn.sigmoid(gx_t[:, H:2 * H] + gh[:, H:2 * H])
        n = jnp.tanh(gx_t[:, 2 * H:3 * H] + r * gh[:, 2 * H:3 * H])
        h = (1.0 - z) * n + z * h
        hs_ref[:, t, :] = h                                      # stage for the head
    h_ref[...] = h                                               # carry to next block

    # ---- GaussianNet MLP head, hoisted: one pass with M = tile_b*Tc ----------------
    hs = hs_ref[...].reshape(tile_b * Tc, H)
    h1 = jnp.tanh(jnp.dot(hs.astype(mm), w1_ref[...],
                          preferred_element_type=jnp.float32) + b1_ref[...])
    h2 = h1 + jnp.tanh(jnp.dot(h1.astype(mm), w2_ref[...],
                               preferred_element_type=jnp.float32) + b2_ref[...])
    stats = jnp.dot(h2.astype(mm), w3_ref[...],
                    preferred_element_type=jnp.float32) + b3_ref[...]   # (tile_b*Tc, 2Z)

    # mean in lanes [0, Z), stdev = exp(0.5*lvar) in [Z, 2Z).  Once per block; exp on
    # all 2Z lanes rides the EUP slot.  Padded rows carry bounded tanh-head garbage so
    # exp cannot overflow; the wrapper slices them off.
    lane = lax.broadcasted_iota(jnp.int32, stats.shape, 1)
    stats = jnp.where(lane < Z, stats, jnp.exp(0.5 * stats))

    stats3 = stats.reshape(tile_b, Tc, 2 * Z)                    # free leading-dim split
    if lane_dense_out:
        # Fold the Tc timesteps into lanes -> (tile_b, Tc*2Z) unmasked dense store.
        out_ref[...] = jnp.concatenate(
            [stats3[:, t, :] for t in range(Tc)], axis=-1).astype(out_ref.dtype)
    else:
        out_ref[...] = stats3.astype(out_ref.dtype)


@functools.partial(jax.jit, static_argnames=("zdim",))
def gaussian_rnn_forward(params, x, zdim):
    """params: dict of (in, out)-layout weights / 1-D biases.  x: [B, T, xdim]."""
    B, T, xdim = x.shape
    H = params["w_hh"].shape[0]
    Z = zdim
    mm = _MATMUL_DTYPE

    # ---- static tiling decisions ---------------------------------------------------
    Tc = int(min(32, _round_up(T, 8)))            # timesteps per grid step (mult. of 8)
    T_pad = _round_up(T, Tc)
    b8 = _round_up(B, 8)
    if b8 <= 8:
        tile_b = 8
    else:                                          # >=2 batch tiles so both v7x TCs work
        tile_b = min(256, _round_up((b8 + 1) // 2, 8))
    b_pad = _round_up(b8, tile_b)
    nb, nt = b_pad // tile_b, T_pad // Tc

    if (b_pad, T_pad) != (B, T):
        # Zero padding: padded rows/timesteps yield bounded stats (tanh head), so the
        # exp in the kernel cannot overflow; padded outputs are sliced off below.
        x = jnp.pad(x, ((0, b_pad - B), (0, T_pad - T), (0, 0)))
    x = x.astype(jnp.float32)

    # ---- parameters: separate resident operands (DMA'd once), bf16 for the MXU -----
    wih = params["w_ih"].astype(mm)                # (xdim, 3H)
    whh = params["w_hh"].astype(mm)                # (H, 3H)
    w1 = params["w1"].astype(mm)                   # (H, H)
    w2 = params["w2"].astype(mm)                   # (H, H)
    w3 = params["w3"].astype(mm)                   # (H, 2Z)
    bih = params["b_ih"].astype(jnp.float32)[None, :]
    bhh = params["b_hh"].astype(jnp.float32)[None, :]
    b1 = params["b1"].astype(jnp.float32)[None, :]
    b2 = params["b2"].astype(jnp.float32)[None, :]
    b3 = params["b3"].astype(jnp.float32)[None, :]

    lane_dense_out = (Tc * 2 * Z) % 128 == 0

    # ---- VMEM budget (lane-padded footprint), capped by the chip's physical VMEM ---
    lane = lambda n: _round_up(max(n, 1), 128)
    sub = lambda n: _round_up(max(n, 1), 8)
    out_blk = (sub(tile_b) * lane(Tc * 2 * Z) if lane_dense_out
               else tile_b * sub(Tc) * lane(2 * Z))
    blk_bytes = (tile_b * sub(Tc) * lane(xdim) + out_blk) * 4
    w_bytes = (sub(xdim) * lane(3 * H) + sub(H) * lane(3 * H)
               + 2 * sub(H) * lane(H) + sub(H) * lane(2 * Z)) * 2
    b_bytes = (2 * lane(3 * H) + 2 * lane(H) + lane(2 * Z)) * 8 * 4
    scr_bytes = (sub(tile_b) * lane(H)
                 + tile_b * sub(Tc) * (lane(3 * H) + lane(H))) * 4
    est = 2 * (blk_bytes + w_bytes + b_bytes) + scr_bytes
    vmem_limit = int(min(max(2 * est, 16 << 20),
                         max(3 * _vmem_cap_bytes() // 4, 32 << 20)))

    kernel = functools.partial(_gaussian_rnn_kernel, hdim=H, zdim=Z, tc=Tc,
                               lane_dense_out=lane_dense_out)
    const2 = lambda bi, ti: (0, 0)

    if lane_dense_out:
        out_shape = jax.ShapeDtypeStruct((b_pad, T_pad * 2 * Z), jnp.float32)
        out_spec = pl.BlockSpec((tile_b, Tc * 2 * Z), lambda bi, ti: (bi, ti))
    else:
        out_shape = jax.ShapeDtypeStruct((b_pad, T_pad, 2 * Z), jnp.float32)
        out_spec = pl.BlockSpec((tile_b, Tc, 2 * Z), lambda bi, ti: (bi, ti, 0))

    out = pl.pallas_call(
        kernel,
        out_shape=out_shape,
        grid_spec=pltpu.PrefetchScalarGridSpec(
            num_scalar_prefetch=0,
            grid=(nb, nt),
            in_specs=[
                pl.BlockSpec((tile_b, Tc, xdim), lambda bi, ti: (bi, ti, 0)),
                pl.BlockSpec(wih.shape, const2),   # VMEM-resident weights / biases
                pl.BlockSpec(whh.shape, const2),
                pl.BlockSpec(w1.shape, const2),
                pl.BlockSpec(w2.shape, const2),
                pl.BlockSpec(w3.shape, const2),
                pl.BlockSpec(bih.shape, const2),
                pl.BlockSpec(bhh.shape, const2),
                pl.BlockSpec(b1.shape, const2),
                pl.BlockSpec(b2.shape, const2),
                pl.BlockSpec(b3.shape, const2),
            ],
            out_specs=out_spec,
            scratch_shapes=[
                pltpu.VMEM((tile_b, H), jnp.float32),           # GRU carry h
                pltpu.VMEM((tile_b, Tc, 3 * H), jnp.float32),   # hoisted x-projection
                pltpu.VMEM((tile_b, Tc, H), jnp.float32),       # staged hidden states
            ],
        ),
        compiler_params=pltpu.CompilerParams(
            dimension_semantics=("parallel", "arbitrary"),
            vmem_limit_bytes=vmem_limit,
        ),
    )(x, wih, whh, w1, w2, w3, bih, bhh, b1, b2, b3)

    if lane_dense_out:
        out = out.reshape(b_pad, T_pad, 2 * Z)     # same memory layout, no copy
    stats = out[:B, :T]
    mean = stats[..., :Z]
    stdev = stats[..., Z:]                         # already exp(0.5 * lvar)
    return mean, stdev


def init_params(key, xdim, hdim, zdim):
    """torch-like init: GRU params ~ U(-1/sqrt(hdim), 1/sqrt(hdim)); MLP weights
    orthogonal, MLP biases ~ U(-1/sqrt(fan_in), 1/sqrt(fan_in)).  Weights stored
    transposed (in, out) so kernels compute x @ W."""
    ortho = jax.nn.initializers.orthogonal()
    k = jax.random.split(key, 10)
    kg = 1.0 / jnp.sqrt(hdim)
    out3 = 2 * zdim

    def uni(kk, shape, bound):
        return jax.random.uniform(kk, shape, jnp.float32, -bound, bound)

    return {
        # GRU (gate order r, z, n)
        "w_ih": uni(k[0], (xdim, 3 * hdim), kg),
        "w_hh": uni(k[1], (hdim, 3 * hdim), kg),
        "b_ih": uni(k[2], (3 * hdim,), kg),
        "b_hh": uni(k[3], (3 * hdim,), kg),
        # GaussianNet MLP: hdim -> hdim -> hdim -> 2*zdim
        "w1": ortho(k[4], (hdim, hdim), jnp.float32),
        "b1": uni(k[5], (hdim,), 1.0 / jnp.sqrt(hdim)),
        "w2": ortho(k[6], (hdim, hdim), jnp.float32),
        "b2": uni(k[7], (hdim,), 1.0 / jnp.sqrt(hdim)),
        "w3": ortho(k[8], (hdim, out3), jnp.float32),
        "b3": uni(k[9], (out3,), 1.0 / jnp.sqrt(hdim)),
    }


def reference_forward(params, x, zdim):
    """Pure-JAX float32 reference (GRU scan + MLP) for correctness check."""
    B, T, _ = x.shape
    H = params["w_hh"].shape[0]

    def gru_step(h, x_t):
        gx = x_t @ params["w_ih"] + params["b_ih"]
        gh = h @ params["w_hh"] + params["b_hh"]
        r = jax.nn.sigmoid(gx[:, :H] + gh[:, :H])
        z = jax.nn.sigmoid(gx[:, H:2 * H] + gh[:, H:2 * H])
        n = jnp.tanh(gx[:, 2 * H:] + r * gh[:, 2 * H:])
        h_new = (1.0 - z) * n + z * h
        return h_new, h_new

    h0 = jnp.zeros((B, H), jnp.float32)
    _, hs = lax.scan(gru_step, h0, jnp.swapaxes(x, 0, 1))
    hs = jnp.swapaxes(hs, 0, 1)                                 # (B, T, H)

    h1 = jnp.tanh(hs @ params["w1"] + params["b1"])
    h2 = h1 + jnp.tanh(h1 @ params["w2"] + params["b2"])
    stats = h2 @ params["w3"] + params["b3"]
    mean = stats[..., :zdim]
    stdev = jnp.exp(0.5 * stats[..., zdim:])
    return mean, stdev


if __name__ == "__main__":
    key = jax.random.PRNGKey(0)
    k_params, k_x1, k_x2 = jax.random.split(key, 3)

    # Small shapes consistent with GaussianRNN: two input streams of 8 features
    # concatenated -> xdim=16, GRU hidden 32, latent zdim=8, batch 8, seq 8.
    B, T, x1dim, x2dim, hdim, zdim = 8, 8, 8, 8, 32, 8
    xdim = x1dim + x2dim

    params = init_params(k_params, xdim, hdim, zdim)

    x1 = jax.random.normal(k_x1, (B, T, x1dim), jnp.float32)
    x2 = jax.random.normal(k_x2, (B, T, x2dim), jnp.float32)

    # forward(*args): filter Nones and concat on last dim (glue, plain JAX).
    args = [x1, None, x2]
    x = jnp.concatenate([a for a in args if a is not None], axis=-1)

    mean, stdev = gaussian_rnn_forward(params, x, zdim)
    jax.block_until_ready((mean, stdev))

    mean_ref, std_ref = reference_forward(params, x, zdim)
    assert mean.shape == (B, T, zdim) and stdev.shape == (B, T, zdim)
    # bf16 MXU operands (f32 accumulation) through an 8-step recurrence + 3-layer head
    # vs. a pure-f32 reference: allow a modest tolerance (errors are ~1e-2; structural
    # bugs would be O(0.1-1)).
    assert jnp.allclose(mean, mean_ref, atol=5e-2, rtol=5e-2)
    assert jnp.allclose(stdev, std_ref, atol=5e-2, rtol=5e-2)

    print("KERNEL_OK")
</pallas_src>

<mosaic_0001>
module attributes {stable_mosaic.version = 11 : i64} {
  func.func @_gaussian_rnn_kernel(%arg0: i32, %arg1: i32, %arg2: memref<8x8x16xf32, #tpu.memory_space<vmem>>, %arg3: memref<16x96xbf16, #tpu.memory_space<vmem>>, %arg4: memref<32x96xbf16, #tpu.memory_space<vmem>>, %arg5: memref<32x32xbf16, #tpu.memory_space<vmem>>, %arg6: memref<32x32xbf16, #tpu.memory_space<vmem>>, %arg7: memref<32x16xbf16, #tpu.memory_space<vmem>>, %arg8: memref<1x96xf32, #tpu.memory_space<vmem>>, %arg9: memref<1x96xf32, #tpu.memory_space<vmem>>, %arg10: memref<1x32xf32, #tpu.memory_space<vmem>>, %arg11: memref<1x32xf32, #tpu.memory_space<vmem>>, %arg12: memref<1x16xf32, #tpu.memory_space<vmem>>, %arg13: memref<8x128xf32, #tpu.memory_space<vmem>>, %arg14: memref<8x32xf32, #tpu.memory_space<vmem>>, %arg15: memref<8x8x96xf32, #tpu.memory_space<vmem>>, %arg16: memref<8x8x32xf32, #tpu.memory_space<vmem>>) attributes {dimension_semantics = [#tpu.dimension_semantics<parallel>, #tpu.dimension_semantics<arbitrary>], iteration_bounds = array<i64: 1, 1>, scalar_prefetch = 0 : i64, scratch_operands = 3 : i64, tpu.core_type = #tpu.core_type<tc>, window_params = [{transform_indices = @transform_0, window_bounds = array<i64: 8, 8, 16>}, {pipeline_mode = #tpu.pipeline_mode<synchronous>, transform_indices = @transform_1, window_bounds = array<i64: 16, 96>}, {pipeline_mode = #tpu.pipeline_mode<synchronous>, transform_indices = @transform_2, window_bounds = array<i64: 32, 96>}, {pipeline_mode = #tpu.pipeline_mode<synchronous>, transform_indices = @transform_3, window_bounds = array<i64: 32, 32>}, {pipeline_mode = #tpu.pipeline_mode<synchronous>, transform_indices = @transform_4, window_bounds = array<i64: 32, 32>}, {pipeline_mode = #tpu.pipeline_mode<synchronous>, transform_indices = @transform_5, window_bounds = array<i64: 32, 16>}, {pipeline_mode = #tpu.pipeline_mode<synchronous>, transform_indices = @transform_6, window_bounds = array<i64: 1, 96>}, {pipeline_mode = #tpu.pipeline_mode<synchronous>, transform_indices = @transform_7, window_bounds = array<i64: 1, 96>}, {pipeline_mode = #tpu.pipeline_mode<synchronous>, transform_indices = @transform_8, window_bounds = array<i64: 1, 32>}, {pipeline_mode = #tpu.pipeline_mode<synchronous>, transform_indices = @transform_9, window_bounds = array<i64: 1, 32>}, {pipeline_mode = #tpu.pipeline_mode<synchronous>, transform_indices = @transform_10, window_bounds = array<i64: 1, 16>}, {transform_indices = @transform_11, window_bounds = array<i64: 8, 128>}]} {
    %c0_i32 = arith.constant 0 : i32
    %0 = arith.cmpi eq, %arg1, %c0_i32 : i32
    %1 = arith.extui %0 : i1 to i32
    %c0_i32_0 = arith.constant 0 : i32
    %2 = arith.cmpi ne, %1, %c0_i32_0 : i32
    scf.if %2 {
      %cst_112 = arith.constant 0.000000e+00 : f32
      %346 = vector.broadcast %cst_112 : f32 to vector<8x32xf32>
      %c0_113 = arith.constant 0 : index
      %c0_114 = arith.constant 0 : index
      %347 = vector.load %arg14[%c0_113, %c0_114] : memref<8x32xf32, #tpu.memory_space<vmem>>, vector<8x32xf32>
      tpu.vector_store %arg14[%c0_113, %c0_114], %346 {strides = array<i32>} : memref<8x32xf32, #tpu.memory_space<vmem>>, vector<8x32xf32>,
    } else {
    }
    %c0 = arith.constant 0 : index
    %c0_1 = arith.constant 0 : index
    %c0_2 = arith.constant 0 : index
    %3 = vector.load %arg2[%c0, %c0_1, %c0_2] : memref<8x8x16xf32, #tpu.memory_space<vmem>>, vector<8x8x16xf32>
    %4 = vector.shape_cast %3 : vector<8x8x16xf32> to vector<64x16xf32>
    %5 = arith.truncf %4 : vector<64x16xf32> to vector<64x16xbf16>
    %c0_3 = arith.constant 0 : index
    %c0_4 = arith.constant 0 : index
    %6 = vector.load %arg3[%c0_3, %c0_4] : memref<16x96xbf16, #tpu.memory_space<vmem>>, vector<16x96xbf16>
    %cst = arith.constant dense<0.000000e+00> : vector<64x96xf32>
    %7 = tpu.matmul %5, %6, %cst {dimension_numbers = #tpu.dot_dimension_numbers<[1], [0], [0], [1], [0, 0, 1, 1], [], []>} : vector<64x16xbf16>, vector<16x96xbf16>, vector<64x96xf32> -> vector<64x96xf32>
    %c0_5 = arith.constant 0 : index
    %c0_6 = arith.constant 0 : index
    %8 = vector.load %arg8[%c0_5, %c0_6] : memref<1x96xf32, #tpu.memory_space<vmem>>, vector<1x96xf32>
    %9 = vector.broadcast %8 : vector<1x96xf32> to vector<64x96xf32>
    %10 = arith.addf %7, %9 : vector<64x96xf32>
    %11 = vector.shape_cast %10 : vector<64x96xf32> to vector<8x8x96xf32>
    %c0_7 = arith.constant 0 : index
    %c0_8 = arith.constant 0 : index
    %c0_9 = arith.constant 0 : index
    %12 = vector.load %arg15[%c0_7, %c0_8, %c0_9] : memref<8x8x96xf32, #tpu.memory_space<vmem>>, vector<8x8x96xf32>
    tpu.vector_store %arg15[%c0_7, %c0_8, %c0_9], %11 {strides = array<i32>} : memref<8x8x96xf32, #tpu.memory_space<vmem>>, vector<8x8x96xf32>,
    %c0_10 = arith.constant 0 : index
    %c0_11 = arith.constant 0 : index
    %13 = vector.load %arg4[%c0_10, %c0_11] : memref<32x96xbf16, #tpu.memory_space<vmem>>, vector<32x96xbf16>
    %c0_12 = arith.constant 0 : index
    %c0_13 = arith.constant 0 : index
    %14 = vector.load %arg9[%c0_12, %c0_13] : memref<1x96xf32, #tpu.memory_space<vmem>>, vector<1x96xf32>
    %c0_14 = arith.constant 0 : index
    %c0_15 = arith.constant 0 : index
    %15 = vector.load %arg14[%c0_14, %c0_15] : memref<8x32xf32, #tpu.memory_space<vmem>>, vector<8x32xf32>
    %c0_16 = arith.constant 0 : index
    %c0_17 = arith.constant 0 : index
    %c0_18 = arith.constant 0 : index
    %16 = vector.load %arg15[%c0_16, %c0_17, %c0_18] : memref<8x8x96xf32, #tpu.memory_space<vmem>>, vector<8x1x96xf32>
    %17 = vector.shape_cast %16 : vector<8x1x96xf32> to vector<8x96xf32>
    %18 = arith.truncf %15 : vector<8x32xf32> to vector<8x32xbf16>
    %cst_19 = arith.constant dense<0.000000e+00> : vector<8x96xf32>
    %19 = tpu.matmul %18, %13, %cst_19 {dimension_numbers = #tpu.dot_dimension_numbers<[1], [0], [0], [1], [0, 0, 1, 1], [], []>} : vector<8x32xbf16>, vector<32x96xbf16>, vector<8x96xf32> -> vector<8x96xf32>
    %20 = vector.broadcast %14 : vector<1x96xf32> to vector<8x96xf32>
    %21 = arith.addf %19, %20 : vector<8x96xf32>
    %22 = vector.extract_strided_slice %17 {offsets = [0, 0], sizes = [8, 32], strides = [1, 1]} : vector<8x96xf32> to vector<8x32xf32>
    %23 = vector.extract_strided_slice %21 {offsets = [0, 0], sizes = [8, 32], strides = [1, 1]} : vector<8x96xf32> to vector<8x32xf32>
    %24 = arith.addf %22, %23 : vector<8x32xf32>
    %25 = arith.negf %24 : vector<8x32xf32>
    %26 = math.exp %25 : vector<8x32xf32>
    %cst_20 = arith.constant 1.000000e+00 : f32
    %27 = vector.broadcast %cst_20 : f32 to vector<8x32xf32>
    %28 = arith.addf %27, %26 : vector<8x32xf32>
    %29 = arith.divf %27, %28 : vector<8x32xf32>
    %30 = vector.extract_strided_slice %17 {offsets = [0, 32], sizes = [8, 32], strides = [1, 1]} : vector<8x96xf32> to vector<8x32xf32>
    %31 = vector.extract_strided_slice %21 {offsets = [0, 32], sizes = [8, 32], strides = [1, 1]} : vector<8x96xf32> to vector<8x32xf32>
    %32 = arith.addf %30, %31 : vector<8x32xf32>
    %33 = arith.negf %32 : vector<8x32xf32>
    %34 = math.exp %33 : vector<8x32xf32>
    %cst_21 = arith.constant 1.000000e+00 : f32
    %35 = vector.broadcast %cst_21 : f32 to vector<8x32xf32>
    %36 = arith.addf %35, %34 : vector<8x32xf32>
    %37 = arith.divf %35, %36 : vector<8x32xf32>
    %38 = vector.extract_strided_slice %17 {offsets = [0, 64], sizes = [8, 32], strides = [1, 1]} : vector<8x96xf32> to vector<8x32xf32>
    %39 = vector.extract_strided_slice %21 {offsets = [0, 64], sizes = [8, 32], strides = [1, 1]} : vector<8x96xf32> to vector<8x32xf32>
    %40 = arith.mulf %29, %39 : vector<8x32xf32>
    %41 = arith.addf %38, %40 : vector<8x32xf32>
    %42 = math.tanh %41 : vector<8x32xf32>
    %cst_22 = arith.constant 1.000000e+00 : f32
    %43 = vector.broadcast %cst_22 : f32 to vector<8x32xf32>
    %44 = arith.subf %43, %37 : vector<8x32xf32>
    %45 = arith.mulf %44, %42 : vector<8x32xf32>
    %46 = arith.mulf %37, %15 : vector<8x32xf32>
    %47 = arith.addf %45, %46 : vector<8x32xf32>
    %c0_23 = arith.constant 0 : index
    %c0_24 = arith.constant 0 : index
    %c0_25 = arith.constant 0 : index
    %48 = vector.load %arg16[%c0_23, %c0_24, %c0_25] : memref<8x8x32xf32, #tpu.memory_space<vmem>>, vector<8x1x32xf32>
    %49 = vector.shape_cast %48 : vector<8x1x32xf32> to vector<8x32xf32>
    %50 = vector.shape_cast %47 : vector<8x32xf32> to vector<8x1x32xf32>
    tpu.vector_store %arg16[%c0_23, %c0_24, %c0_25], %50 {strides = array<i32>} : memref<8x8x32xf32, #tpu.memory_space<vmem>>, vector<8x1x32xf32>,
    %c0_26 = arith.constant 0 : index
    %c1 = arith.constant 1 : index
    %c0_27 = arith.constant 0 : index
    %51 = vector.load %arg15[%c0_26, %c1, %c0_27] : memref<8x8x96xf32, #tpu.memory_space<vmem>>, vector<8x1x96xf32>
    %52 = vector.shape_cast %51 : vector<8x1x96xf32> to vector<8x96xf32>
    %53 = arith.truncf %47 : vector<8x32xf32> to vector<8x32xbf16>
    %cst_28 = arith.constant dense<0.000000e+00> : vector<8x96xf32>
    %54 = tpu.matmul %53, %13, %cst_28 {dimension_numbers = #tpu.dot_dimension_numbers<[1], [0], [0], [1], [0, 0, 1, 1], [], []>} : vector<8x32xbf16>, vector<32x96xbf16>, vector<8x96xf32> -> vector<8x96xf32>
    %55 = vector.broadcast %14 : vector<1x96xf32> to vector<8x96xf32>
    %56 = arith.addf %54, %55 : vector<8x96xf32>
    %57 = vector.extract_strided_slice %52 {offsets = [0, 0], sizes = [8, 32], strides = [1, 1]} : vector<8x96xf32> to vector<8x32xf32>
    %58 = vector.extract_strided_slice %56 {offsets = [0, 0], sizes = [8, 32], strides = [1, 1]} : vector<8x96xf32> to vector<8x32xf32>
    %59 = arith.addf %57, %58 : vector<8x32xf32>
    %60 = arith.negf %59 : vector<8x32xf32>
    %61 = math.exp %60 : vector<8x32xf32>
    %cst_29 = arith.constant 1.000000e+00 : f32
    %62 = vector.broadcast %cst_29 : f32 to vector<8x32xf32>
    %63 = arith.addf %62, %61 : vector<8x32xf32>
    %64 = arith.divf %62, %63 : vector<8x32xf32>
    %65 = vector.extract_strided_slice %52 {offsets = [0, 32], sizes = [8, 32], strides = [1, 1]} : vector<8x96xf32> to vector<8x32xf32>
    %66 = vector.extract_strided_slice %56 {offsets = [0, 32], sizes = [8, 32], strides = [1, 1]} : vector<8x96xf32> to vector<8x32xf32>
    %67 = arith.addf %65, %66 : vector<8x32xf32>
    %68 = arith.negf %67 : vector<8x32xf32>
    %69 = math.exp %68 : vector<8x32xf32>
    %cst_30 = arith.constant 1.000000e+00 : f32
    %70 = vector.broadcast %cst_30 : f32 to vector<8x32xf32>
    %71 = arith.addf %70, %69 : vector<8x32xf32>
    %72 = arith.divf %70, %71 : vector<8x32xf32>
    %73 = vector.extract_strided_slice %52 {offsets = [0, 64], sizes = [8, 32], strides = [1, 1]} : vector<8x96xf32> to vector<8x32xf32>
    %74 = vector.extract_strided_slice %56 {offsets = [0, 64], sizes = [8, 32], strides = [1, 1]} : vector<8x96xf32> to vector<8x32xf32>
    %75 = arith.mulf %64, %74 : vector<8x32xf32>
    %76 = arith.addf %73, %75 : vector<8x32xf32>
    %77 = math.tanh %76 : vector<8x32xf32>
    %cst_31 = arith.constant 1.000000e+00 : f32
    %78 = vector.broadcast %cst_31 : f32 to vector<8x32xf32>
    %79 = arith.subf %78, %72 : vector<8x32xf32>
    %80 = arith.mulf %79, %77 : vector<8x32xf32>
    %81 = arith.mulf %72, %47 : vector<8x32xf32>
    %82 = arith.addf %80, %81 : vector<8x32xf32>
    %c0_32 = arith.constant 0 : index
    %c1_33 = arith.constant 1 : index
    %c0_34 = arith.constant 0 : index
    %83 = vector.load %arg16[%c0_32, %c1_33, %c0_34] : memref<8x8x32xf32, #tpu.memory_space<vmem>>, vector<8x1x32xf32>
    %84 = vector.shape_cast %83 : vector<8x1x32xf32> to vector<8x32xf32>
    %85 = vector.shape_cast %82 : vector<8x32xf32> to vector<8x1x32xf32>
    tpu.vector_store %arg16[%c0_32, %c1_33, %c0_34], %85 {strides = array<i32>} : memref<8x8x32xf32, #tpu.memory_space<vmem>>, vector<8x1x32xf32>,
    %c0_35 = arith.constant 0 : index
    %c2 = arith.constant 2 : index
    %c0_36 = arith.constant 0 : index
    %86 = vector.load %arg15[%c0_35, %c2, %c0_36] : memref<8x8x96xf32, #tpu.memory_space<vmem>>, vector<8x1x96xf32>
    %87 = vector.shape_cast %86 : vector<8x1x96xf32> to vector<8x96xf32>
    %88 = arith.truncf %82 : vector<8x32xf32> to vector<8x32xbf16>
    %cst_37 = arith.constant dense<0.000000e+00> : vector<8x96xf32>
    %89 = tpu.matmul %88, %13, %cst_37 {dimension_numbers = #tpu.dot_dimension_numbers<[1], [0], [0], [1], [0, 0, 1, 1], [], []>} : vector<8x32xbf16>, vector<32x96xbf16>, vector<8x96xf32> -> vector<8x96xf32>
    %90 = vector.broadcast %14 : vector<1x96xf32> to vector<8x96xf32>
    %91 = arith.addf %89, %90 : vector<8x96xf32>
    %92 = vector.extract_strided_slice %87 {offsets = [0, 0], sizes = [8, 32], strides = [1, 1]} : vector<8x96xf32> to vector<8x32xf32>
    %93 = vector.extract_strided_slice %91 {offsets = [0, 0], sizes = [8, 32], strides = [1, 1]} : vector<8x96xf32> to vector<8x32xf32>
    %94 = arith.addf %92, %93 : vector<8x32xf32>
    %95 = arith.negf %94 : vector<8x32xf32>
    %96 = math.exp %95 : vector<8x32xf32>
    %cst_38 = arith.constant 1.000000e+00 : f32
    %97 = vector.broadcast %cst_38 : f32 to vector<8x32xf32>
    %98 = arith.addf %97, %96 : vector<8x32xf32>
    %99 = arith.divf %97, %98 : vector<8x32xf32>
    %100 = vector.extract_strided_slice %87 {offsets = [0, 32], sizes = [8, 32], strides = [1, 1]} : vector<8x96xf32> to vector<8x32xf32>
    %101 = vector.extract_strided_slice %91 {offsets = [0, 32], sizes = [8, 32], strides = [1, 1]} : vector<8x96xf32> to vector<8x32xf32>
    %102 = arith.addf %100, %101 : vector<8x32xf32>
    %103 = arith.negf %102 : vector<8x32xf32>
    %104 = math.exp %103 : vector<8x32xf32>
    %cst_39 = arith.constant 1.000000e+00 : f32
    %105 = vector.broadcast %cst_39 : f32 to vector<8x32xf32>
    %106 = arith.addf %105, %104 : vector<8x32xf32>
    %107 = arith.divf %105, %106 : vector<8x32xf32>
    %108 = vector.extract_strided_slice %87 {offsets = [0, 64], sizes = [8, 32], strides = [1, 1]} : vector<8x96xf32> to vector<8x32xf32>
    %109 = vector.extract_strided_slice %91 {offsets = [0, 64], sizes = [8, 32], strides = [1, 1]} : vector<8x96xf32> to vector<8x32xf32>
    %110 = arith.mulf %99, %109 : vector<8x32xf32>
    %111 = arith.addf %108, %110 : vector<8x32xf32>
    %112 = math.tanh %111 : vector<8x32xf32>
    %cst_40 = arith.constant 1.000000e+00 : f32
    %113 = vector.broadcast %cst_40 : f32 to vector<8x32xf32>
    %114 = arith.subf %113, %107 : vector<8x32xf32>
    %115 = arith.mulf %114, %112 : vector<8x32xf32>
    %116 = arith.mulf %107, %82 : vector<8x32xf32>
    %117 = arith.addf %115, %116 : vector<8x32xf32>
    %c0_41 = arith.constant 0 : index
    %c2_42 = arith.constant 2 : index
    %c0_43 = arith.constant 0 : index
    %118 = vector.load %arg16[%c0_41, %c2_42, %c0_43] : memref<8x8x32xf32, #tpu.memory_space<vmem>>, vector<8x1x32xf32>
    %119 = vector.shape_cast %118 : vector<8x1x32xf32> to vector<8x32xf32>
    %120 = vector.shape_cast %117 : vector<8x32xf32> to vector<8x1x32xf32>
    tpu.vector_store %arg16[%c0_41, %c2_42, %c0_43], %120 {strides = array<i32>} : memref<8x8x32xf32, #tpu.memory_space<vmem>>, vector<8x1x32xf32>,
    %c0_44 = arith.constant 0 : index
    %c3 = arith.constant 3 : index
    %c0_45 = arith.constant 0 : index
    %121 = vector.load %arg15[%c0_44, %c3, %c0_45] : memref<8x8x96xf32, #tpu.memory_space<vmem>>, vector<8x1x96xf32>
    %122 = vector.shape_cast %121 : vector<8x1x96xf32> to vector<8x96xf32>
    %123 = arith.truncf %117 : vector<8x32xf32> to vector<8x32xbf16>
    %cst_46 = arith.constant dense<0.000000e+00> : vector<8x96xf32>
    %124 = tpu.matmul %123, %13, %cst_46 {dimension_numbers = #tpu.dot_dimension_numbers<[1], [0], [0], [1], [0, 0, 1, 1], [], []>} : vector<8x32xbf16>, vector<32x96xbf16>, vector<8x96xf32> -> vector<8x96xf32>
    %125 = vector.broadcast %14 : vector<1x96xf32> to vector<8x96xf32>
    %126 = arith.addf %124, %125 : vector<8x96xf32>
    %127 = vector.extract_strided_slice %122 {offsets = [0, 0], sizes = [8, 32], strides = [1, 1]} : vector<8x96xf32> to vector<8x32xf32>
    %128 = vector.extract_strided_slice %126 {offsets = [0, 0], sizes = [8, 32], strides = [1, 1]} : vector<8x96xf32> to vector<8x32xf32>
    %129 = arith.addf %127, %128 : vector<8x32xf32>
    %130 = arith.negf %129 : vector<8x32xf32>
    %131 = math.exp %130 : vector<8x32xf32>
    %cst_47 = arith.constant 1.000000e+00 : f32
    %132 = vector.broadcast %cst_47 : f32 to vector<8x32xf32>
    %133 = arith.addf %132, %131 : vector<8x32xf32>
    %134 = arith.divf %132, %133 : vector<8x32xf32>
    %135 = vector.extract_strided_slice %122 {offsets = [0, 32], sizes = [8, 32], strides = [1, 1]} : vector<8x96xf32> to vector<8x32xf32>
    %136 = vector.extract_strided_slice %126 {offsets = [0, 32], sizes = [8, 32], strides = [1, 1]} : vector<8x96xf32> to vector<8x32xf32>
    %137 = arith.addf %135, %136 : vector<8x32xf32>
    %138 = arith.negf %137 : vector<8x32xf32>
    %139 = math.exp %138 : vector<8x32xf32>
    %cst_48 = arith.constant 1.000000e+00 : f32
    %140 = vector.broadcast %cst_48 : f32 to vector<8x32xf32>
    %141 = arith.addf %140, %139 : vector<8x32xf32>
    %142 = arith.divf %140, %141 : vector<8x32xf32>
    %143 = vector.extract_strided_slice %122 {offsets = [0, 64], sizes = [8, 32], strides = [1, 1]} : vector<8x96xf32> to vector<8x32xf32>
    %144 = vector.extract_strided_slice %126 {offsets = [0, 64], sizes = [8, 32], strides = [1, 1]} : vector<8x96xf32> to vector<8x32xf32>
    %145 = arith.mulf %134, %144 : vector<8x32xf32>
    %146 = arith.addf %143, %145 : vector<8x32xf32>
    %147 = math.tanh %146 : vector<8x32xf32>
    %cst_49 = arith.constant 1.000000e+00 : f32
    %148 = vector.broadcast %cst_49 : f32 to vector<8x32xf32>
    %149 = arith.subf %148, %142 : vector<8x32xf32>
    %150 = arith.mulf %149, %147 : vector<8x32xf32>
    %151 = arith.mulf %142, %117 : vector<8x32xf32>
    %152 = arith.addf %150, %151 : vector<8x32xf32>
    %c0_50 = arith.constant 0 : index
    %c3_51 = arith.constant 3 : index
    %c0_52 = arith.constant 0 : index
    %153 = vector.load %arg16[%c0_50, %c3_51, %c0_52] : memref<8x8x32xf32, #tpu.memory_space<vmem>>, vector<8x1x32xf32>
    %154 = vector.shape_cast %153 : vector<8x1x32xf32> to vector<8x32xf32>
    %155 = vector.shape_cast %152 : vector<8x32xf32> to vector<8x1x32xf32>
    tpu.vector_store %arg16[%c0_50, %c3_51, %c0_52], %155 {strides = array<i32>} : memref<8x8x32xf32, #tpu.memory_space<vmem>>, vector<8x1x32xf32>,
    %c0_53 = arith.constant 0 : index
    %c4 = arith.constant 4 : index
    %c0_54 = arith.constant 0 : index
    %156 = vector.load %arg15[%c0_53, %c4, %c0_54] : memref<8x8x96xf32, #tpu.memory_space<vmem>>, vector<8x1x96xf32>
    %157 = vector.shape_cast %156 : vector<8x1x96xf32> to vector<8x96xf32>
    %158 = arith.truncf %152 : vector<8x32xf32> to vector<8x32xbf16>
    %cst_55 = arith.constant dense<0.000000e+00> : vector<8x96xf32>
    %159 = tpu.matmul %158, %13, %cst_55 {dimension_numbers = #tpu.dot_dimension_numbers<[1], [0], [0], [1], [0, 0, 1, 1], [], []>} : vector<8x32xbf16>, vector<32x96xbf16>, vector<8x96xf32> -> vector<8x96xf32>
    %160 = vector.broadcast %14 : vector<1x96xf32> to vector<8x96xf32>
    %161 = arith.addf %159, %160 : vector<8x96xf32>
    %162 = vector.extract_strided_slice %157 {offsets = [0, 0], sizes = [8, 32], strides = [1, 1]} : vector<8x96xf32> to vector<8x32xf32>
    %163 = vector.extract_strided_slice %161 {offsets = [0, 0], sizes = [8, 32], strides = [1, 1]} : vector<8x96xf32> to vector<8x32xf32>
    %164 = arith.addf %162, %163 : vector<8x32xf32>
    %165 = arith.negf %164 : vector<8x32xf32>
    %166 = math.exp %165 : vector<8x32xf32>
    %cst_56 = arith.constant 1.000000e+00 : f32
    %167 = vector.broadcast %cst_56 : f32 to vector<8x32xf32>
    %168 = arith.addf %167, %166 : vector<8x32xf32>
    %169 = arith.divf %167, %168 : vector<8x32xf32>
    %170 = vector.extract_strided_slice %157 {offsets = [0, 32], sizes = [8, 32], strides = [1, 1]} : vector<8x96xf32> to vector<8x32xf32>
    %171 = vector.extract_strided_slice %161 {offsets = [0, 32], sizes = [8, 32], strides = [1, 1]} : vector<8x96xf32> to vector<8x32xf32>
    %172 = arith.addf %170, %171 : vector<8x32xf32>
    %173 = arith.negf %172 : vector<8x32xf32>
    %174 = math.exp %173 : vector<8x32xf32>
    %cst_57 = arith.constant 1.000000e+00 : f32
    %175 = vector.broadcast %cst_57 : f32 to vector<8x32xf32>
    %176 = arith.addf %175, %174 : vector<8x32xf32>
    %177 = arith.divf %175, %176 : vector<8x32xf32>
    %178 = vector.extract_strided_slice %157 {offsets = [0, 64], sizes = [8, 32], strides = [1, 1]} : vector<8x96xf32> to vector<8x32xf32>
    %179 = vector.extract_strided_slice %161 {offsets = [0, 64], sizes = [8, 32], strides = [1, 1]} : vector<8x96xf32> to vector<8x32xf32>
    %180 = arith.mulf %169, %179 : vector<8x32xf32>
    %181 = arith.addf %178, %180 : vector<8x32xf32>
    %182 = math.tanh %181 : vector<8x32xf32>
    %cst_58 = arith.constant 1.000000e+00 : f32
    %183 = vector.broadcast %cst_58 : f32 to vector<8x32xf32>
    %184 = arith.subf %183, %177 : vector<8x32xf32>
    %185 = arith.mulf %184, %182 : vector<8x32xf32>
    %186 = arith.mulf %177, %152 : vector<8x32xf32>
    %187 = arith.addf %185, %186 : vector<8x32xf32>
    %c0_59 = arith.constant 0 : index
    %c4_60 = arith.constant 4 : index
    %c0_61 = arith.constant 0 : index
    %188 = vector.load %arg16[%c0_59, %c4_60, %c0_61] : memref<8x8x32xf32, #tpu.memory_space<vmem>>, vector<8x1x32xf32>
    %189 = vector.shape_cast %188 : vector<8x1x32xf32> to vector<8x32xf32>
    %190 = vector.shape_cast %187 : vector<8x32xf32> to vector<8x1x32xf32>
    tpu.vector_store %arg16[%c0_59, %c4_60, %c0_61], %190 {strides = array<i32>} : memref<8x8x32xf32, #tpu.memory_space<vmem>>, vector<8x1x32xf32>,
    %c0_62 = arith.constant 0 : index
    %c5 = arith.constant 5 : index
    %c0_63 = arith.constant 0 : index
    %191 = vector.load %arg15[%c0_62, %c5, %c0_63] : memref<8x8x96xf32, #tpu.memory_space<vmem>>, vector<8x1x96xf32>
    %192 = vector.shape_cast %191 : vector<8x1x96xf32> to vector<8x96xf32>
    %193 = arith.truncf %187 : vector<8x32xf32> to vector<8x32xbf16>
    %cst_64 = arith.constant dense<0.000000e+00> : vector<8x96xf32>
    %194 = tpu.matmul %193, %13, %cst_64 {dimension_numbers = #tpu.dot_dimension_numbers<[1], [0], [0], [1], [0, 0, 1, 1], [], []>} : vector<8x32xbf16>, vector<32x96xbf16>, vector<8x96xf32> -> vector<8x96xf32>
    %195 = vector.broadcast %14 : vector<1x96xf32> to vector<8x96xf32>
    %196 = arith.addf %194, %195 : vector<8x96xf32>
    %197 = vector.extract_strided_slice %192 {offsets = [0, 0], sizes = [8, 32], strides = [1, 1]} : vector<8x96xf32> to vector<8x32xf32>
    %198 = vector.extract_strided_slice %196 {offsets = [0, 0], sizes = [8, 32], strides = [1, 1]} : vector<8x96xf32> to vector<8x32xf32>
    %199 = arith.addf %197, %198 : vector<8x32xf32>
    %200 = arith.negf %199 : vector<8x32xf32>
    %201 = math.exp %200 : vector<8x32xf32>
    %cst_65 = arith.constant 1.000000e+00 : f32
    %202 = vector.broadcast %cst_65 : f32 to vector<8x32xf32>
    %203 = arith.addf %202, %201 : vector<8x32xf32>
    %204 = arith.divf %202, %203 : vector<8x32xf32>
    %205 = vector.extract_strided_slice %192 {offsets = [0, 32], sizes = [8, 32], strides = [1, 1]} : vector<8x96xf32> to vector<8x32xf32>
    %206 = vector.extract_strided_slice %196 {offsets = [0, 32], sizes = [8, 32], strides = [1, 1]} : vector<8x96xf32> to vector<8x32xf32>
    %207 = arith.addf %205, %206 : vector<8x32xf32>
    %208 = arith.negf %207 : vector<8x32xf32>
    %209 = math.exp %208 : vector<8x32xf32>
    %cst_66 = arith.constant 1.000000e+00 : f32
    %210 = vector.broadcast %cst_66 : f32 to vector<8x32xf32>
    %211 = arith.addf %210, %209 : vector<8x32xf32>
    %212 = arith.divf %210, %211 : vector<8x32xf32>
    %213 = vector.extract_strided_slice %192 {offsets = [0, 64], sizes = [8, 32], strides = [1, 1]} : vector<8x96xf32> to vector<8x32xf32>
    %214 = vector.extract_strided_slice %196 {offsets = [0, 64], sizes = [8, 32], strides = [1, 1]} : vector<8x96xf32> to vector<8x32xf32>
    %215 = arith.mulf %204, %214 : vector<8x32xf32>
    %216 = arith.addf %213, %215 : vector<8x32xf32>
    %217 = math.tanh %216 : vector<8x32xf32>
    %cst_67 = arith.constant 1.000000e+00 : f32
    %218 = vector.broadcast %cst_67 : f32 to vector<8x32xf32>
    %219 = arith.subf %218, %212 : vector<8x32xf32>
    %220 = arith.mulf %219, %217 : vector<8x32xf32>
    %221 = arith.mulf %212, %187 : vector<8x32xf32>
    %222 = arith.addf %220, %221 : vector<8x32xf32>
    %c0_68 = arith.constant 0 : index
    %c5_69 = arith.constant 5 : index
    %c0_70 = arith.constant 0 : index
    %223 = vector.load %arg16[%c0_68, %c5_69, %c0_70] : memref<8x8x32xf32, #tpu.memory_space<vmem>>, vector<8x1x32xf32>
    %224 = vector.shape_cast %223 : vector<8x1x32xf32> to vector<8x32xf32>
    %225 = vector.shape_cast %222 : vector<8x32xf32> to vector<8x1x32xf32>
    tpu.vector_store %arg16[%c0_68, %c5_69, %c0_70], %225 {strides = array<i32>} : memref<8x8x32xf32, #tpu.memory_space<vmem>>, vector<8x1x32xf32>,
    %c0_71 = arith.constant 0 : index
    %c6 = arith.constant 6 : index
    %c0_72 = arith.constant 0 : index
    %226 = vector.load %arg15[%c0_71, %c6, %c0_72] : memref<8x8x96xf32, #tpu.memory_space<vmem>>, vector<8x1x96xf32>
    %227 = vector.shape_cast %226 : vector<8x1x96xf32> to vector<8x96xf32>
    %228 = arith.truncf %222 : vector<8x32xf32> to vector<8x32xbf16>
    %cst_73 = arith.constant dense<0.000000e+00> : vector<8x96xf32>
    %229 = tpu.matmul %228, %13, %cst_73 {dimension_numbers = #tpu.dot_dimension_numbers<[1], [0], [0], [1], [0, 0, 1, 1], [], []>} : vector<8x32xbf16>, vector<32x96xbf16>, vector<8x96xf32> -> vector<8x96xf32>
    %230 = vector.broadcast %14 : vector<1x96xf32> to vector<8x96xf32>
    %231 = arith.addf %229, %230 : vector<8x96xf32>
    %232 = vector.extract_strided_slice %227 {offsets = [0, 0], sizes = [8, 32], strides = [1, 1]} : vector<8x96xf32> to vector<8x32xf32>
    %233 = vector.extract_strided_slice %231 {offsets = [0, 0], sizes = [8, 32], strides = [1, 1]} : vector<8x96xf32> to vector<8x32xf32>
    %234 = arith.addf %232, %233 : vector<8x32xf32>
    %235 = arith.negf %234 : vector<8x32xf32>
    %236 = math.exp %235 : vector<8x32xf32>
    %cst_74 = arith.constant 1.000000e+00 : f32
    %237 = vector.broadcast %cst_74 : f32 to vector<8x32xf32>
    %238 = arith.addf %237, %236 : vector<8x32xf32>
    %239 = arith.divf %237, %238 : vector<8x32xf32>
    %240 = vector.extract_strided_slice %227 {offsets = [0, 32], sizes = [8, 32], strides = [1, 1]} : vector<8x96xf32> to vector<8x32xf32>
    %241 = vector.extract_strided_slice %231 {offsets = [0, 32], sizes = [8, 32], strides = [1, 1]} : vector<8x96xf32> to vector<8x32xf32>
    %242 = arith.addf %240, %241 : vector<8x32xf32>
    %243 = arith.negf %242 : vector<8x32xf32>
    %244 = math.exp %243 : vector<8x32xf32>
    %cst_75 = arith.constant 1.000000e+00 : f32
    %245 = vector.broadcast %cst_75 : f32 to vector<8x32xf32>
    %246 = arith.addf %245, %244 : vector<8x32xf32>
    %247 = arith.divf %245, %246 : vector<8x32xf32>
    %248 = vector.extract_strided_slice %227 {offsets = [0, 64], sizes = [8, 32], strides = [1, 1]} : vector<8x96xf32> to vector<8x32xf32>
    %249 = vector.extract_strided_slice %231 {offsets = [0, 64], sizes = [8, 32], strides = [1, 1]} : vector<8x96xf32> to vector<8x32xf32>
    %250 = arith.mulf %239, %249 : vector<8x32xf32>
    %251 = arith.addf %248, %250 : vector<8x32xf32>
    %252 = math.tanh %251 : vector<8x32xf32>
    %cst_76 = arith.constant 1.000000e+00 : f32
    %253 = vector.broadcast %cst_76 : f32 to vector<8x32xf32>
    %254 = arith.subf %253, %247 : vector<8x32xf32>
    %255 = arith.mulf %254, %252 : vector<8x32xf32>
    %256 = arith.mulf %247, %222 : vector<8x32xf32>
    %257 = arith.addf %255, %256 : vector<8x32xf32>
    %c0_77 = arith.constant 0 : index
    %c6_78 = arith.constant 6 : index
    %c0_79 = arith.constant 0 : index
    %258 = vector.load %arg16[%c0_77, %c6_78, %c0_79] : memref<8x8x32xf32, #tpu.memory_space<vmem>>, vector<8x1x32xf32>
    %259 = vector.shape_cast %258 : vector<8x1x32xf32> to vector<8x32xf32>
    %260 = vector.shape_cast %257 : vector<8x32xf32> to vector<8x1x32xf32>
    tpu.vector_store %arg16[%c0_77, %c6_78, %c0_79], %260 {strides = array<i32>} : memref<8x8x32xf32, #tpu.memory_space<vmem>>, vector<8x1x32xf32>,
    %c0_80 = arith.constant 0 : index
    %c7 = arith.constant 7 : index
    %c0_81 = arith.constant 0 : index
    %261 = vector.load %arg15[%c0_80, %c7, %c0_81] : memref<8x8x96xf32, #tpu.memory_space<vmem>>, vector<8x1x96xf32>
    %262 = vector.shape_cast %261 : vector<8x1x96xf32> to vector<8x96xf32>
    %263 = arith.truncf %257 : vector<8x32xf32> to vector<8x32xbf16>
    %cst_82 = arith.constant dense<0.000000e+00> : vector<8x96xf32>
    %264 = tpu.matmul %263, %13, %cst_82 {dimension_numbers = #tpu.dot_dimension_numbers<[1], [0], [0], [1], [0, 0, 1, 1], [], []>} : vector<8x32xbf16>, vector<32x96xbf16>, vector<8x96xf32> -> vector<8x96xf32>
    %265 = vector.broadcast %14 : vector<1x96xf32> to vector<8x96xf32>
    %266 = arith.addf %264, %265 : vector<8x96xf32>
    %267 = vector.extract_strided_slice %262 {offsets = [0, 0], sizes = [8, 32], strides = [1, 1]} : vector<8x96xf32> to vector<8x32xf32>
    %268 = vector.extract_strided_slice %266 {offsets = [0, 0], sizes = [8, 32], strides = [1, 1]} : vector<8x96xf32> to vector<8x32xf32>
    %269 = arith.addf %267, %268 : vector<8x32xf32>
    %270 = arith.negf %269 : vector<8x32xf32>
    %271 = math.exp %270 : vector<8x32xf32>
    %cst_83 = arith.constant 1.000000e+00 : f32
    %272 = vector.broadcast %cst_83 : f32 to vector<8x32xf32>
    %273 = arith.addf %272, %271 : vector<8x32xf32>
    %274 = arith.divf %272, %273 : vector<8x32xf32>
    %275 = vector.extract_strided_slice %262 {offsets = [0, 32], sizes = [8, 32], strides = [1, 1]} : vector<8x96xf32> to vector<8x32xf32>
    %276 = vector.extract_strided_slice %266 {offsets = [0, 32], sizes = [8, 32], strides = [1, 1]} : vector<8x96xf32> to vector<8x32xf32>
    %277 = arith.addf %275, %276 : vector<8x32xf32>
    %278 = arith.negf %277 : vector<8x32xf32>
    %279 = math.exp %278 : vector<8x32xf32>
    %cst_84 = arith.constant 1.000000e+00 : f32
    %280 = vector.broadcast %cst_84 : f32 to vector<8x32xf32>
    %281 = arith.addf %280, %279 : vector<8x32xf32>
    %282 = arith.divf %280, %281 : vector<8x32xf32>
    %283 = vector.extract_strided_slice %262 {offsets = [0, 64], sizes = [8, 32], strides = [1, 1]} : vector<8x96xf32> to vector<8x32xf32>
    %284 = vector.extract_strided_slice %266 {offsets = [0, 64], sizes = [8, 32], strides = [1, 1]} : vector<8x96xf32> to vector<8x32xf32>
    %285 = arith.mulf %274, %284 : vector<8x32xf32>
    %286 = arith.addf %283, %285 : vector<8x32xf32>
    %287 = math.tanh %286 : vector<8x32xf32>
    %cst_85 = arith.constant 1.000000e+00 : f32
    %288 = vector.broadcast %cst_85 : f32 to vector<8x32xf32>
    %289 = arith.subf %288, %282 : vector<8x32xf32>
    %290 = arith.mulf %289, %287 : vector<8x32xf32>
    %291 = arith.mulf %282, %257 : vector<8x32xf32>
    %292 = arith.addf %290, %291 : vector<8x32xf32>
    %c0_86 = arith.constant 0 : index
    %c7_87 = arith.constant 7 : index
    %c0_88 = arith.constant 0 : index
    %293 = vector.load %arg16[%c0_86, %c7_87, %c0_88] : memref<8x8x32xf32, #tpu.memory_space<vmem>>, vector<8x1x32xf32>
    %294 = vector.shape_cast %293 : vector<8x1x32xf32> to vector<8x32xf32>
    %295 = vector.shape_cast %292 : vector<8x32xf32> to vector<8x1x32xf32>
    tpu.vector_store %arg16[%c0_86, %c7_87, %c0_88], %295 {strides = array<i32>} : memref<8x8x32xf32, #tpu.memory_space<vmem>>, vector<8x1x32xf32>,
    %c0_89 = arith.constant 0 : index
    %c0_90 = arith.constant 0 : index
    %296 = vector.load %arg14[%c0_89, %c0_90] : memref<8x32xf32, #tpu.memory_space<vmem>>, vector<8x32xf32>
    tpu.vector_store %arg14[%c0_89, %c0_90], %292 {strides = array<i32>} : memref<8x32xf32, #tpu.memory_space<vmem>>, vector<8x32xf32>,
    %c0_91 = arith.constant 0 : index
    %c0_92 = arith.constant 0 : index
    %c0_93 = arith.constant 0 : index
    %297 = vector.load %arg16[%c0_91, %c0_92, %c0_93] : memref<8x8x32xf32, #tpu.memory_space<vmem>>, vector<8x8x32xf32>
    %298 = vector.shape_cast %297 : vector<8x8x32xf32> to vector<64x32xf32>
    %299 = arith.truncf %298 : vector<64x32xf32> to vector<64x32xbf16>
    %c0_94 = arith.constant 0 : index
    %c0_95 = arith.constant 0 : index
    %300 = vector.load %arg5[%c0_94, %c0_95] : memref<32x32xbf16, #tpu.memory_space<vmem>>, vector<32x32xbf16>
    %cst_96 = arith.constant dense<0.000000e+00> : vector<64x32xf32>
    %301 = tpu.matmul %299, %300, %cst_96 {dimension_numbers = #tpu.dot_dimension_numbers<[1], [0], [0], [1], [0, 0, 1, 1], [], []>} : vector<64x32xbf16>, vector<32x32xbf16>, vector<64x32xf32> -> vector<64x32xf32>
    %c0_97 = arith.constant 0 : index
    %c0_98 = arith.constant 0 : index
    %302 = vector.load %arg10[%c0_97, %c0_98] : memref<1x32xf32, #tpu.memory_space<vmem>>, vector<1x32xf32>
    %303 = vector.broadcast %302 : vector<1x32xf32> to vector<64x32xf32>
    %304 = arith.addf %301, %303 : vector<64x32xf32>
    %305 = math.tanh %304 : vector<64x32xf32>
    %306 = arith.truncf %305 : vector<64x32xf32> to vector<64x32xbf16>
    %c0_99 = arith.constant 0 : index
    %c0_100 = arith.constant 0 : index
    %307 = vector.load %arg6[%c0_99, %c0_100] : memref<32x32xbf16, #tpu.memory_space<vmem>>, vector<32x32xbf16>
    %cst_101 = arith.constant dense<0.000000e+00> : vector<64x32xf32>
    %308 = tpu.matmul %306, %307, %cst_101 {dimension_numbers = #tpu.dot_dimension_numbers<[1], [0], [0], [1], [0, 0, 1, 1], [], []>} : vector<64x32xbf16>, vector<32x32xbf16>, vector<64x32xf32> -> vector<64x32xf32>
    %c0_102 = arith.constant 0 : index
    %c0_103 = arith.constant 0 : index
    %309 = vector.load %arg11[%c0_102, %c0_103] : memref<1x32xf32, #tpu.memory_space<vmem>>, vector<1x32xf32>
    %310 = vector.broadcast %309 : vector<1x32xf32> to vector<64x32xf32>
    %311 = arith.addf %308, %310 : vector<64x32xf32>
    %312 = math.tanh %311 : vector<64x32xf32>
    %313 = arith.addf %305, %312 : vector<64x32xf32>
    %314 = arith.truncf %313 : vector<64x32xf32> to vector<64x32xbf16>
    %c0_104 = arith.constant 0 : index
    %c0_105 = arith.constant 0 : index
    %315 = vector.load %arg7[%c0_104, %c0_105] : memref<32x16xbf16, #tpu.memory_space<vmem>>, vector<32x16xbf16>
    %cst_106 = arith.constant dense<0.000000e+00> : vector<64x16xf32>
    %316 = tpu.matmul %314, %315, %cst_106 {dimension_numbers = #tpu.dot_dimension_numbers<[1], [0], [0], [1], [0, 0, 1, 1], [], []>} : vector<64x32xbf16>, vector<32x16xbf16>, vector<64x16xf32> -> vector<64x16xf32>
    %c0_107 = arith.constant 0 : index
    %c0_108 = arith.constant 0 : index
    %317 = vector.load %arg12[%c0_107, %c0_108] : memref<1x16xf32, #tpu.memory_space<vmem>>, vector<1x16xf32>
    %318 = vector.broadcast %317 : vector<1x16xf32> to vector<64x16xf32>
    %319 = arith.addf %316, %318 : vector<64x16xf32>
    %320 = tpu.iota {dimensions = array<i32: 1>} : vector<64x16xi32>
    %c8_i32 = arith.constant 8 : i32
    %321 = vector.broadcast %c8_i32 : i32 to vector<64x16xi32>
    %322 = arith.cmpi slt, %320, %321 : vector<64x16xi32>
    %cst_109 = arith.constant 5.000000e-01 : f32
    %323 = vector.broadcast %cst_109 : f32 to vector<64x16xf32>
    %324 = arith.mulf %323, %319 : vector<64x16xf32>
    %325 = math.exp %324 : vector<64x16xf32>
    %326 = arith.select %322, %319, %325 : vector<64x16xi1>, vector<64x16xf32>
    %327 = vector.shape_cast %326 : vector<64x16xf32> to vector<8x8x16xf32>
    %328 = vector.extract_strided_slice %327 {offsets = [0, 0, 0], sizes = [8, 1, 16], strides = [1, 1, 1]} : vector<8x8x16xf32> to vector<8x1x16xf32>
    %329 = vector.shape_cast %328 : vector<8x1x16xf32> to vector<8x16xf32>
    %330 = vector.extract_strided_slice %327 {offsets = [0, 1, 0], sizes = [8, 1, 16], strides = [1, 1, 1]} : vector<8x8x16xf32> to vector<8x1x16xf32>
    %331 = vector.shape_cast %330 : vector<8x1x16xf32> to vector<8x16xf32>
    %332 = vector.extract_strided_slice %327 {offsets = [0, 2, 0], sizes = [8, 1, 16], strides = [1, 1, 1]} : vector<8x8x16xf32> to vector<8x1x16xf32>
    %333 = vector.shape_cast %332 : vector<8x1x16xf32> to vector<8x16xf32>
    %334 = vector.extract_strided_slice %327 {offsets = [0, 3, 0], sizes = [8, 1, 16], strides = [1, 1, 1]} : vector<8x8x16xf32> to vector<8x1x16xf32>
    %335 = vector.shape_cast %334 : vector<8x1x16xf32> to vector<8x16xf32>
    %336 = vector.extract_strided_slice %327 {offsets = [0, 4, 0], sizes = [8, 1, 16], strides = [1, 1, 1]} : vector<8x8x16xf32> to vector<8x1x16xf32>
    %337 = vector.shape_cast %336 : vector<8x1x16xf32> to vector<8x16xf32>
    %338 = vector.extract_strided_slice %327 {offsets = [0, 5, 0], sizes = [8, 1, 16], strides = [1, 1, 1]} : vector<8x8x16xf32> to vector<8x1x16xf32>
    %339 = vector.shape_cast %338 : vector<8x1x16xf32> to vector<8x16xf32>
    %340 = vector.extract_strided_slice %327 {offsets = [0, 6, 0], sizes = [8, 1, 16], strides = [1, 1, 1]} : vector<8x8x16xf32> to vector<8x1x16xf32>
    %341 = vector.shape_cast %340 : vector<8x1x16xf32> to vector<8x16xf32>
    %342 = vector.extract_strided_slice %327 {offsets = [0, 7, 0], sizes = [8, 1, 16], strides = [1, 1, 1]} : vector<8x8x16xf32> to vector<8x1x16xf32>
    %343 = vector.shape_cast %342 : vector<8x1x16xf32> to vector<8x16xf32>
    %344 = tpu.concatenate %329, %331, %333, %335, %337, %339, %341, %343 in 1 : vector<8x16xf32>, vector<8x16xf32>, vector<8x16xf32>, vector<8x16xf32>, vector<8x16xf32>, vector<8x16xf32>, vector<8x16xf32>, vector<8x16xf32> -> vector<8x128xf32>
    %c0_110 = arith.constant 0 : index
    %c0_111 = arith.constant 0 : index
    %345 = vector.load %arg13[%c0_110, %c0_111] : memref<8x128xf32, #tpu.memory_space<vmem>>, vector<8x128xf32>
    tpu.vector_store %arg13[%c0_110, %c0_111], %344 {strides = array<i32>} : memref<8x128xf32, #tpu.memory_space<vmem>>, vector<8x128xf32>,
    return
  }
  func.func @transform_0(%arg0: i32, %arg1: i32) -> (i32, i32, i32) {
    %c0_i32 = arith.constant 0 : i32
    %c0_i32_0 = arith.constant 0 : i32
    return %arg0, %arg1, %c0_i32 : i32, i32, i32
  }
  func.func @transform_1(%arg0: i32, %arg1: i32) -> (i32, i32) {
    %c0_i32 = arith.constant 0 : i32
    %c0_i32_0 = arith.constant 0 : i32
    %c0_i32_1 = arith.constant 0 : i32
    return %c0_i32, %c0_i32_0 : i32, i32
  }
  func.func @transform_2(%arg0: i32, %arg1: i32) -> (i32, i32) {
    %c0_i32 = arith.constant 0 : i32
    %c0_i32_0 = arith.constant 0 : i32
    %c0_i32_1 = arith.constant 0 : i32
    return %c0_i32, %c0_i32_0 : i32, i32
  }
  func.func @transform_3(%arg0: i32, %arg1: i32) -> (i32, i32) {
    %c0_i32 = arith.constant 0 : i32
    %c0_i32_0 = arith.constant 0 : i32
    %c0_i32_1 = arith.constant 0 : i32
    return %c0_i32, %c0_i32_0 : i32, i32
  }
  func.func @transform_4(%arg0: i32, %arg1: i32) -> (i32, i32) {
    %c0_i32 = arith.constant 0 : i32
    %c0_i32_0 = arith.constant 0 : i32
    %c0_i32_1 = arith.constant 0 : i32
    return %c0_i32, %c0_i32_0 : i32, i32
  }
  func.func @transform_5(%arg0: i32, %arg1: i32) -> (i32, i32) {
    %c0_i32 = arith.constant 0 : i32
    %c0_i32_0 = arith.constant 0 : i32
    %c0_i32_1 = arith.constant 0 : i32
    return %c0_i32, %c0_i32_0 : i32, i32
  }
  func.func @transform_6(%arg0: i32, %arg1: i32) -> (i32, i32) {
    %c0_i32 = arith.constant 0 : i32
    %c0_i32_0 = arith.constant 0 : i32
    %c0_i32_1 = arith.constant 0 : i32
    return %c0_i32, %c0_i32_0 : i32, i32
  }
  func.func @transform_7(%arg0: i32, %arg1: i32) -> (i32, i32) {
    %c0_i32 = arith.constant 0 : i32
    %c0_i32_0 = arith.constant 0 : i32
    %c0_i32_1 = arith.constant 0 : i32
    return %c0_i32, %c0_i32_0 : i32, i32
  }
  func.func @transform_8(%arg0: i32, %arg1: i32) -> (i32, i32) {
    %c0_i32 = arith.constant 0 : i32
    %c0_i32_0 = arith.constant 0 : i32
    %c0_i32_1 = arith.constant 0 : i32
    return %c0_i32, %c0_i32_0 : i32, i32
  }
  func.func @transform_9(%arg0: i32, %arg1: i32) -> (i32, i32) {
    %c0_i32 = arith.constant 0 : i32
    %c0_i32_0 = arith.constant 0 : i32
    %c0_i32_1 = arith.constant 0 : i32
    return %c0_i32, %c0_i32_0 : i32, i32
  }
  func.func @transform_10(%arg0: i32, %arg1: i32) -> (i32, i32) {
    %c0_i32 = arith.constant 0 : i32
    %c0_i32_0 = arith.constant 0 : i32
    %c0_i32_1 = arith.constant 0 : i32
    return %c0_i32, %c0_i32_0 : i32, i32
  }
  func.func @transform_11(%arg0: i32, %arg1: i32) -> (i32, i32) {
    %c0_i32 = arith.constant 0 : i32
    return %arg0, %arg1 : i32, i32
  }
}

</mosaic_0001>

<bundles_post_ra>
// kernel: gaussian_rnn_forward.1
= control target key start
LH: loop header
LB: loop body
LE: loop exit
PB: predicated region body
PF: predicated region fallthrough
CT: control target
= control target key end

     0   :  { %vm7140_vm0 = vcmask 130048   ;;  %vm43_vm1 = vcmask 261120   ;;  %v4561_v9 = vmov 0.0   ;;  %vm7139_vm2 = vcmask 785408   ;;  %s4562_s20 = smov 64   ;;  %s4563_s21 = smov 32   ;;  %s7127_s1 = inlined_call_operand.vmem [shape: bf16[16,96], index: 1, kind: input, shape index: {}]   ;;  %s7128_s0 = inlined_call_operand.vmem [shape: f32[8,8,16], index: 0, kind: input, shape index: {}]   ;;  %s7129_s2 = inlined_call_operand.vmem [shape: bf16[32,96], index: 2, kind: input, shape index: {}]   ;;  %s7130_s6 = inlined_call_operand.vmem [shape: f32[1,96], index: 6, kind: input, shape index: {}]   ;;  %s7131_s7 = inlined_call_operand.vmem [shape: f32[1,96], index: 7, kind: input, shape index: {}]   ;;  %s7132_s8 = inlined_call_operand.vmem [shape: f32[1,32], index: 8, kind: input, shape index: {}]   ;;  %s7133_s3 = inlined_call_operand.vmem [shape: bf16[32,32], index: 3, kind: input, shape index: {}]   ;;  %s7134_s9 = inlined_call_operand.vmem [shape: f32[1,32], index: 9, kind: input, shape index: {}]   ;;  %s7135_s4 = inlined_call_operand.vmem [shape: bf16[32,32], index: 4, kind: input, shape index: {}]   ;;  %s7136_s10 = inlined_call_operand.vmem [shape: f32[1,16], index: 10, kind: input, shape index: {}]   ;;  %s7137_s5 = inlined_call_operand.vmem [shape: bf16[32,16], index: 5, kind: input, shape index: {}]   ;;  %s7138_s11 = inlined_call_operand.vmem [shape: f32[8,128], index: 11, kind: output, shape index: {}]  }
   0x1   :  { %v4104_v0 = vld [vmem:[%s7127_s1] sm:$0xff]  ;;  %v46_v2 = vld [vmem:[%s7128_s0 + $0x8] sm:$0xff]  ;;  %v47_v6 = vld [vmem:[%s7128_s0 + $0x10] sm:$0xff]  ;;  %44 = vst.msk [vmem:[#allocation2] sm:$0xff] %vm43_vm1, %v4561_v9  ;;  %s4564_s22 = smov 96  }
   0x2   :  { %v45_v1 = vld [vmem:[%s7128_s0] sm:$0xff]  ;;  %v4106_v4 = vld [vmem:[%s7129_s2 + $0x8] sm:$0xff]  ;;  %89 = vmatpush.bf16.msra.mxu0 %v4104_v0  ;;  %v48_v7 = vld [vmem:[%s7128_s0 + $0x18] sm:$0xff] }
   0x3   :  { %v53_v3 = vpack.c.bf16 %v46_v2, %v45_v1  ;;  %1050 = vmatpush.bf16.msra.mxu3 %v4106_v4  ;;  %1475 = vmatpush.bf16.msra.mxu1 %v4106_v4  ;;  %v4105_v5 = vld [vmem:[%s7129_s2] sm:$0xff]  ;;  %v54_v8 = vpack.c.bf16 %v48_v7, %v47_v6  ;;  %v50_v11 = vld [vmem:[%s7128_s0 + $0x28] sm:$0xff]  ;;  %v51_v13 = vld [vmem:[%s7128_s0 + $0x30] sm:$0xff] }
   0x4   :  { %1900 = vmatpush.bf16.msra.mxu2 %v4106_v4  ;;  %v49_v10 = vld [vmem:[%s7128_s0 + $0x20] sm:$0xff]  ;;  %v52_v14 = vld [vmem:[%s7128_s0 + $0x38] sm:$0xff]  ;;  %s4566_s0 = smov 16  }
   0x5   :  { %3984 = vmatmul.msk.bf16.vlgmr.msra.gmra.mxu0 %vm7140_vm0, %v53_v3  ;;  %v55_v12 = vpack.c.bf16 %v50_v11, %v49_v10  ;;  %v56_v15 = vpack.c.bf16 %v52_v14, %v51_v13  ;;  %v4121_v18 = vld [vmem:[%s7130_s6] ss:$0 sm:$0xff]  ;;  %s4567_s6 = smov 80  }
   0x6   :  { %160 = vmatpush.bf16.msrb.mxu0 %v4106_v4  ;;  %v4686_v35 = vld [vmem:[%s7131_s7] ss:$0 sm:$0xff] }
   0x7   :  { %1051 = vmatpush.bf16.msra.mxu3 %v4105_v5  ;;  %1476 = vmatpush.bf16.msra.mxu1 %v4105_v5 }
   0x8   :  { %1901 = vmatpush.bf16.msra.mxu2 %v4105_v5  ;;  %v4667_v16 = vld [vmem:[#allocation2] sm:$0xff] }
   0x9   :  { %v134_v17 = vpack.c.bf16 %v4667_v16, %v4667_v16 }
   0xa   :  { %161 = vmatpush.bf16.msrb.mxu0 %v4105_v5 }
   0xb   :  { %2325 = vmatpush.bf16.msrb.mxu3 %v4106_v4  ;;  %2750 = vmatpush.bf16.msrb.mxu1 %v4106_v4 }
   0xc   :  { %3175 = vmatpush.bf16.msrb.mxu2 %v4106_v4 }
   0xe   :  { %625 = vmatpush.bf16.msra.mxu0 %v4106_v4 }
   0xf   :  { %2326 = vmatpush.bf16.msrb.mxu3 %v4105_v5  ;;  %2751 = vmatpush.bf16.msrb.mxu1 %v4105_v5 }
  0x10   :  { %3176 = vmatpush.bf16.msrb.mxu2 %v4105_v5 }
  0x12   :  { %626 = vmatpush.bf16.msra.mxu0 %v4105_v5 }
  0x15   :  { %3985 = vmatmul.msk.bf16.gmra.mxu0 %vm7140_vm0, %v54_v8 }
  0x25   :  { %3986 = vmatmul.msk.bf16.gmra.mxu0 %vm7140_vm0, %v55_v12 }
  0x35   :  { %3987 = vmatmul.msk.bf16.gmra.mxu0 %vm7140_vm0, %v56_v15 }
  0x45   :  { %3996 = vmatmul.msk.bf16.vlgmr.msrb.gmra.mxu0 %vm43_vm1, %v134_v17 }
  0x82   :  { %v91_v19 = vpop.f32.mrf.mxu0 }
  0x83   :  { %v92_v20 = vadd.f32 %v4121_v18, %v91_v19 }
  0x85   :  { %112 = vst.msk [vmem:[#allocation3] sm:$0xff] %vm7139_vm2, %v92_v20 }
  0x8a   :  { %v93_v21 = vpop.f32.mrf.mxu0 }
  0x8b   :  { %v94_v22 = vadd.f32 %v4121_v18, %v93_v21 }
  0x8c   :  { %v4697_v46 = vld [vmem:[#allocation3] sm:$0x1] }
  0x8d   :  { %113 = vst.msk [vmem:[#allocation3 + $0x8] sm:$0xff] %vm7139_vm2, %v94_v22 }
  0x92   :  { %v96_v23 = vpop.f32.mrf.mxu0 }
  0x93   :  { %v97_v24 = vadd.f32 %v4121_v18, %v96_v23 }
  0x94   :  { %v4700_v48 = vld [vmem:[#allocation3 + $0x8] sm:$0x1] }
  0x95   :  { %114 = vst.msk [vmem:[#allocation3 + $0x10] sm:$0xff] %vm7139_vm2, %v97_v24 }
  0x9a   :  { %v98_v25 = vpop.f32.mrf.mxu0 }
  0x9b   :  { %v99_v26 = vadd.f32 %v4121_v18, %v98_v25 }
  0x9c   :  { %v4709_v56 = vld [vmem:[#allocation3 + $0x10] sm:$0x1] }
  0x9d   :  { %115 = vst.msk [vmem:[#allocation3 + $0x18] sm:$0xff] %vm7139_vm2, %v99_v26 }
  0xa2   :  { %v101_v27 = vpop.f32.mrf.mxu0 }
  0xa3   :  { %v102_v28 = vadd.f32 %v4121_v18, %v101_v27 }
  0xa4   :  { %v4705_v53 = vld [vmem:[#allocation3 + $0x18] sm:$0x1] }
  0xa5   :  { %116 = vst.msk [vmem:[#allocation3 + $0x20] sm:$0xff] %vm7139_vm2, %v102_v28 }
  0xaa   :  { %v103_v29 = vpop.f32.mrf.mxu0 }
  0xab   :  { %v104_v30 = vadd.f32 %v4121_v18, %v103_v29 }
  0xac   :  { %v4712_v63 = vld [vmem:[#allocation3 + $0x20] sm:$0x1] }
  0xad   :  { %117 = vst.msk [vmem:[#allocation3 + $0x28] sm:$0xff] %vm7139_vm2, %v104_v30 }
  0xb2   :  { %v106_v31 = vpop.f32.mrf.mxu0 }
  0xb3   :  { %v107_v32 = vadd.f32 %v4121_v18, %v106_v31 }
  0xb4   :  { %v4703_v52 = vld [vmem:[#allocation3 + $0x28] sm:$0x1] }
  0xb5   :  { %118 = vst.msk [vmem:[#allocation3 + $0x30] sm:$0xff] %vm7139_vm2, %v107_v32 }
  0xba   :  { %v108_v33 = vpop.f32.mrf.mxu0 }
  0xbb   :  { %v109_v34 = vadd.f32 %v4121_v18, %v108_v33 }
  0xbc   :  { %v4715_v1 = vld [vmem:[#allocation3 + $0x30] sm:$0x1] }
  0xbd   :  { %119 = vst.msk [vmem:[#allocation3 + $0x38] sm:$0xff] %vm7139_vm2, %v109_v34 }
  0xc2   :  { %v163_v36 = vpop.f32.mrf.mxu0 }
  0xc3   :  { %v164_v37 = vadd.f32 %v4686_v35, %v163_v36 }
  0xc4   :  { %v4724_v10 = vld [vmem:[#allocation3 + $0x38] sm:$0x1] }
  0xc5   :  { %343 = vrot.lane.b32.xlu1 %v164_v37, %s4562_s20  ;;  %v171_v38 = vrot.slane %v164_v37, 4  ;;  %v168_v39 = vrot.slane %v164_v37, 1  ;;  %v170_v41 = vrot.slane %v164_v37, 3  ;;  %v172_v42 = vrot.slane %v164_v37, 5 }
  0xc6   :  { %v169_v43 = vrot.slane %v164_v37, 2  ;;  %v174_v44 = vrot.slane %v164_v37, 7  ;;  %v173_v45 = vrot.slane %v164_v37, 6  ;;  %v183_v47 = vadd.f32 %v164_v37, %v4697_v46 }
  0xc7   :  { %351 = vrot.lane.b32.xlu2 %v171_v38, %s4562_s20  ;;  %345 = vrot.lane.b32.xlu0 %v168_v39, %s4562_s20  ;;  %v184_v49 = vadd.f32 %v168_v39, %v4700_v48  ;;  %v188_v54 = vadd.f32 %v172_v42, %v4703_v52  ;;  %v186_v55 = vadd.f32 %v170_v41, %v4705_v53 }
  0xc8   :  { %v3997_v50 = vmul.f32 -1.442695, %v183_v47  ;;  %v185_v57 = vadd.f32 %v169_v43, %v4709_v56  ;;  %v187_v0 = vadd.f32 %v171_v38, %v4712_v63  ;;  %v189_v3 = vadd.f32 %v173_v45, %v4715_v1 }
  0xc9   :  { %v3998_v51 = vmul.f32 -1.442695, %v184_v49  ;;  %v4002_v58 = vmul.f32 -1.442695, %v188_v54  ;;  %v4000_v59 = vmul.f32 -1.442695, %v186_v55  ;;  %v190_v12 = vadd.f32 %v174_v44, %v4724_v10 }
  0xca   :  { %v165_v40 = vpop.f32.mrf.mxu0  ;;  %4126 = vpow2.f32 %v3997_v50  ;;  %v3999_v61 = vmul.f32 -1.442695, %v185_v57  ;;  %v4001_v5 = vmul.f32 -1.442695, %v187_v0  ;;  %v4003_v7 = vmul.f32 -1.442695, %v189_v3 }
  0xcb   :  { %4128 = vpow2.f32 %v3998_v51  ;;  %v4004_v18 = vmul.f32 -1.442695, %v190_v12 }
  0xcc   :  { %4130 = vpow2.f32 %v4002_v58 }
  0xcd   :  { %349 = vrot.lane.b32.xlu1 %v170_v41, %s4562_s20  ;;  %4132 = vpow2.f32 %v4000_v59 }
  0xce   :  { %4134 = vpow2.f32 %v3999_v61 }
  0xcf   :  { %353 = vrot.lane.b32.xlu2 %v172_v42, %s4562_s20  ;;  %347 = vrot.lane.b32.xlu0 %v169_v43, %s4562_s20 }
  0xd0   :  { %v4127_v60 = vpop.eup %4126 }
  0xd1   :  { %v4129_v62 = vpop.eup %4128  ;;  %v4717_v2 = vadd.f32 1.0, %v4127_v60 }
  0xd2   :  { %v4720_v4 = vadd.f32 1.0, %v4129_v62  ;;  %v4131_v6 = vpop.eup %4130 }
  0xd3   :  { %4136 = vrcp.f32 %v4717_v2  ;;  %v4133_v8 = vpop.eup %4132  ;;  %v4726_v11 = vadd.f32 1.0, %v4131_v6  ;;  %vm228_vm4 = vweird.f32 %v4717_v2  ;;  %v234_v40 = vand.u32 2147483648, %v4717_v2 }
  0xd4   :  { %4138 = vrcp.f32 %v4720_v4  ;;  %v4135_v9 = vpop.eup %4134  ;;  %v4729_v13 = vadd.f32 1.0, %v4133_v8  ;;  %v232_v43 = vand.u32 2147483647, %v4717_v2  ;;  %vm243_vm7 = vweird.f32 %v4720_v4 }
  0xd5   :  { %357 = vrot.lane.b32.xlu1 %v174_v44, %s4562_s20  ;;  %4140 = vpow2.f32 %v4001_v5  ;;  %v4731_v15 = vadd.f32 1.0, %v4135_v9  ;;  %v249_v51 = vand.u32 2147483648, %v4720_v4  ;;  %v247_v57 = vand.u32 2147483647, %v4720_v4 }
  0xd6   :  { %4142 = vpow2.f32 %v4003_v7  ;;  %vm303_vm8 = vweird.f32 %v4726_v11  ;;  %v235_v59 = vor.u32 1.1754944e-38, %v234_v40  ;;  %vm233_vm10 = vcmp.eq.f32.partialorder %v232_v43, 8.507059e+37 }
  0xd7   :  { %355 = vrot.lane.b32.xlu0 %v173_v45, %s4562_s20  ;;  %4144 = vrcp.f32 %v4726_v11  ;;  %v307_v3 = vand.u32 2147483647, %v4726_v11  ;;  %v250_v7 = vor.u32 1.1754944e-38, %v249_v51  ;;  %vm248_vm12 = vcmp.eq.f32.partialorder %v247_v57, 8.507059e+37 }
  0xd8   :  { %4146 = vrcp.f32 %v4729_v13 }
  0xd9   :  { %v4137_v14 = vpop.eup %4136  ;;  %4148 = vrcp.f32 %v4731_v15 }
  0xda   :  { %v4733_v17 = vpop.eup %4138  ;;  %v224_v19 = vmul.f32 %v4137_v14, %v4717_v2  ;;  %4150 = vpow2.f32 %v4004_v18  ;;  %vm229_vm3 = vweird.f32 %v4137_v14 }
  0xdb   :  { %v4141_v20 = vpop.eup %4140  ;;  %v239_v22 = vmul.f32 %v4733_v17, %v4720_v4  ;;  %vm244_vm5 = vweird.f32 %v4733_v17  ;;  %vm4773_vm6 = vmor %vm228_vm4, %vm229_vm3  ;;  %v309_v4 = vand.u32 2147483648, %v4726_v11  ;;  %vm273_vm3 = vweird.f32 %v4729_v13 }
  0xdc   :  { %v4143_v21 = vpop.eup %4142  ;;  %v4741_v23 = vadd.f32 1.0, %v4141_v20  ;;  %v225_v24 = vsub.f32 1.0, %v224_v19  ;;  %vm4787_vm9 = vmor %vm243_vm7, %vm244_vm5  ;;  %vm258_vm5 = vweird.f32 %v4731_v15  ;;  %vm308_vm7 = vcmp.eq.f32.partialorder %v307_v3, 8.507059e+37 }
  0xdd   :  { %v4743_v25 = vpop.eup %4144  ;;  %v4745_v26 = vadd.f32 1.0, %v4143_v21  ;;  %v240_v28 = vsub.f32 1.0, %v239_v22 }
  0xde   :  { %v4747_v27 = vpop.eup %4146  ;;  %4152 = vrcp.f32 %v4741_v23  ;;  %v299_v30 = vmul.f32 %v4743_v25, %v4726_v11  ;;  %v226_v31 = vmul.f32 %v4137_v14, %v225_v24  ;;  %vm304_vm11 = vweird.f32 %v4743_v25 }
  0xdf   :  { %v4749_v29 = vpop.eup %4148  ;;  %4154 = vrcp.f32 %v4745_v26  ;;  %v269_v33 = vmul.f32 %v4747_v27, %v4729_v13  ;;  %v241_v34 = vmul.f32 %v4733_v17, %v240_v28  ;;  %vm274_vm13 = vweird.f32 %v4747_v27  ;;  %vm4817_vm15 = vmor %vm303_vm8, %vm304_vm11 }
  0xe0   :  { %v4151_v32 = vpop.eup %4150  ;;  %v254_v36 = vmul.f32 %v4749_v29, %v4731_v15  ;;  %v300_v38 = vsub.f32 1.0, %v299_v30  ;;  %v227_v39 = vadd.f32 %v4137_v14, %v226_v31  ;;  %vm259_vm14 = vweird.f32 %v4749_v29  ;;  %vm4828_vm4 = vmor %vm273_vm3, %vm274_vm13 }
  0xe1   :  { %v4760_v37 = vadd.f32 1.0, %v4151_v32  ;;  %v270_v41 = vsub.f32 1.0, %v269_v33  ;;  %v242_v44 = vadd.f32 %v4733_v17, %v241_v34  ;;  %v279_v28 = vand.u32 2147483648, %v4729_v13 }
  0xe2   :  { %v255_v45 = vsub.f32 1.0, %v254_v36  ;;  %v301_v54 = vmul.f32 %v4743_v25, %v300_v38  ;;  %v231_v55 = vsel %vm4773_vm6, %v4137_v14, %v227_v39  ;;  %v264_v30 = vand.u32 2147483648, %v4731_v15  ;;  %vm4838_vm6 = vmor %vm258_vm5, %vm259_vm14 }
  0xe3   :  { %4156 = vrcp.f32 %v4760_v37  ;;  %v271_v61 = vmul.f32 %v4747_v27, %v270_v41  ;;  %v246_v62 = vsel %vm4787_vm9, %v4733_v17, %v242_v44  ;;  %v4800_v6 = vsel %vm233_vm10, %v235_v59, %v231_v55 }
  0xe4   :  { %v4764_v42 = vpop.eup %4152  ;;  %v256_v0 = vmul.f32 %v4749_v29, %v255_v45  ;;  %v302_v8 = vadd.f32 %v4743_v25, %v301_v54  ;;  %v4805_v17 = vsel %vm248_vm12, %v250_v7, %v246_v62  ;;  %v277_v11 = vand.u32 2147483647, %v4729_v13 }
  0xe5   :  { %v4769_v47 = vpop.eup %4154  ;;  %v284_v58 = vmul.f32 %v4764_v42, %v4741_v23  ;;  %v272_v18 = vadd.f32 %v4747_v27, %v271_v61  ;;  %v262_v33 = vand.u32 2147483647, %v4731_v15  ;;  %v310_v38 = vor.u32 1.1754944e-38, %v309_v4 }
  0xe6   :  { %v314_v2 = vmul.f32 %v4769_v47, %v4745_v26  ;;  %v257_v21 = vadd.f32 %v4749_v29, %v256_v0  ;;  %v306_v31 = vsel %vm4817_vm15, %v4743_v25, %v302_v8  ;;  %v280_v44 = vor.u32 1.1754944e-38, %v279_v28 }
  0xe7   :  { %v285_v12 = vsub.f32 1.0, %v284_v58  ;;  %v276_v13 = vsel %vm4828_vm4, %v4747_v27, %v272_v18  ;;  %v4851_v41 = vsel %vm308_vm7, %v310_v38, %v306_v31  ;;  %v265_v45 = vor.u32 1.1754944e-38, %v264_v30 }
  0xe8   :  { %v315_v22 = vsub.f32 1.0, %v314_v2  ;;  %v261_v15 = vsel %vm4838_vm6, %v4749_v29, %v257_v21  ;;  %vm289_vm8 = vweird.f32 %v4764_v42  ;;  %vm278_vm9 = vcmp.eq.f32.partialorder %v277_v11, 8.507059e+37 }
  0xe9   :  { %v4809_v19 = vpop.eup %4156  ;;  %v286_v34 = vmul.f32 %v4764_v42, %v285_v12  ;;  %vm263_vm10 = vcmp.eq.f32.partialorder %v262_v33, 8.507059e+37  ;;  %v4856_v27 = vsel %vm278_vm9, %v280_v44, %v276_v13  ;;  %vm319_vm11 = vweird.f32 %v4769_v47 }
  0xea   :  { %v329_v39 = vmul.f32 %v4809_v19, %v4760_v37  ;;  %v316_v40 = vmul.f32 %v4769_v47, %v315_v22  ;;  %v4858_v55 = vsel %vm263_vm10, %v265_v45, %v261_v15  ;;  %vm288_vm12 = vweird.f32 %v4741_v23 }
  0xeb   :  { %v287_v51 = vadd.f32 %v4764_v42, %v286_v34  ;;  %v294_v60 = vand.u32 2147483648, %v4741_v23  ;;  %v324_v61 = vand.u32 2147483648, %v4745_v26  ;;  %vm4870_vm13 = vmor %vm288_vm12, %vm289_vm8  ;;  %v292_v0 = vand.u32 2147483647, %v4741_v23 }
  0xec   :  { %v330_v29 = vsub.f32 1.0, %v329_v39  ;;  %v317_v59 = vadd.f32 %v4769_v47, %v316_v40  ;;  %vm318_vm14 = vweird.f32 %v4745_v26  ;;  %v322_v2 = vand.u32 2147483647, %v4745_v26 }
  0xed   :  { %vm320_vm15 = vmor %vm318_vm14, %vm319_vm11  ;;  %v291_v3 = vsel %vm4870_vm13, %v4764_v42, %v287_v51  ;;  %v473_v7 = vrot.slane %v4667_v16, 2  ;;  %v295_v23 = vor.u32 1.1754944e-38, %v294_v60  ;;  %v325_v8 = vor.u32 1.1754944e-38, %v324_v61 }
  0xee   :  { %v331_v4 = vmul.f32 %v4809_v19, %v330_v29  ;;  %vm293_vm3 = vcmp.eq.f32.partialorder %v292_v0, 8.507059e+37  ;;  %vm323_vm4 = vcmp.eq.f32.partialorder %v322_v2, 8.507059e+37  ;;  %vm334_vm5 = vweird.f32 %v4809_v19 }
  0xef   :  { %v339_v18 = vand.u32 2147483648, %v4760_v37  ;;  %vm333_vm6 = vweird.f32 %v4760_v37  ;;  %v472_v24 = vrot.slane %v4667_v16, 1  ;;  %v474_v31 = vrot.slane %v4667_v16, 3 }
  0xf0   :  { %v332_v42 = vadd.f32 %v4809_v19, %v331_v4  ;;  %vm335_vm7 = vmor %vm333_vm6, %vm334_vm5  ;;  %v424_v4 = vsub.f32 1.0, %v4805_v17  ;;  %vm593_vm9 = vcmask 1041409   ;;  %vm596_vm10 = vcmask 1042434  }
  0xf1   :  { %v340_v22 = vor.u32 1.1754944e-38, %v339_v18  ;;  %vm599_vm11 = vcmask 1043459   ;;  %vm602_vm12 = vcmask 1044484   ;;  %vm605_vm13 = vcmask 1045509  }
  0xf2   :  { %vm608_vm14 = vcmask 1046534  }
 0x121   :  { %v4771_v49 = vpop.permute.xlu2 %351 }
 0x129   :  { %v354_v36 = vpop.permute.xlu2 %353 }
 0x12a   :  { %v372_v50 = vmul.f32 %v354_v36, %v4851_v41 }
 0x137   :  { %v344_v5 = vpop.permute.xlu1 %343 }
 0x138   :  { %v367_v9 = vmul.f32 %v344_v5, %v4800_v6  ;;  %v321_v5 = vsel %vm320_vm15, %v4769_v47, %v317_v59  ;;  %vm611_vm15 = vcmask 1047559  }
 0x139   :  { %v346_v14 = vpop.permute.xlu0 %345 }
 0x13a   :  { %v368_v20 = vmul.f32 %v346_v14, %v4805_v17  ;;  %383 = vrot.lane.b32.xlu1 %v367_v9, %s4562_s20  ;;  %v4885_v9 = vsel %vm293_vm3, %v295_v23, %v291_v3  ;;  %v4887_v14 = vsel %vm323_vm4, %v325_v8, %v321_v5 }
 0x13b   :  { %v371_v26 = vmul.f32 %v4771_v49, %v4885_v9  ;;  %v336_v49 = vsel %vm335_vm7, %v4809_v19, %v332_v42  ;;  %v476_v19 = vrot.slane %v4667_v16, 5  ;;  %v423_v42 = vsub.f32 1.0, %v4800_v6 }
 0x13c   :  { %385 = vrot.lane.b32.xlu2 %v368_v20, %s4562_s20  ;;  %v337_v20 = vand.u32 2147483647, %v4760_v37  ;;  %v475_v37 = vrot.slane %v4667_v16, 4 }
 0x13e   :  { %vm338_vm8 = vcmp.eq.f32.partialorder %v337_v20, 8.507059e+37 }
 0x13f   :  { %v350_v43 = vpop.permute.xlu1 %349  ;;  %v4902_v28 = vsel %vm338_vm8, %v340_v22, %v336_v49  ;;  %v428_v22 = vsub.f32 1.0, %v4851_v41 }
 0x140   :  { %v370_v57 = vmul.f32 %v350_v43, %v4856_v27 }
 0x141   :  { %v348_v54 = vpop.permute.xlu0 %347 }
 0x142   :  { %v369_v58 = vmul.f32 %v348_v54, %v4858_v55  ;;  %393 = vrot.lane.b32.xlu1 %v372_v50, %s4562_s20 }
 0x144   :  { %387 = vrot.lane.b32.xlu0 %v369_v58, %s4562_s20  ;;  %389 = vrot.lane.b32.xlu2 %v370_v57, %s4562_s20 }
 0x147   :  { %v358_v21 = vpop.permute.xlu1 %357 }
 0x148   :  { %v374_v30 = vmul.f32 %v358_v21, %v4902_v28 }
 0x149   :  { %v356_v12 = vpop.permute.xlu0 %355 }
 0x14a   :  { %v373_v47 = vmul.f32 %v356_v12, %v4887_v14  ;;  %483 = vrot.lane.b32.xlu1 %v473_v7, %s4563_s21  ;;  %v426_v12 = vsub.f32 1.0, %v4856_v27 }
 0x14c   :  { %391 = vrot.lane.b32.xlu0 %v371_v26, %s4562_s20  ;;  %395 = vrot.lane.b32.xlu2 %v373_v47, %s4562_s20 }
 0x152   :  { %479 = vrot.lane.b32.xlu1 %v4667_v16, %s4563_s21 }
 0x154   :  { %397 = vrot.lane.b32.xlu0 %v374_v30, %s4562_s20  ;;  %481 = vrot.lane.b32.xlu2 %v472_v24, %s4563_s21 }
 0x15a   :  { %487 = vrot.lane.b32.xlu1 %v475_v37, %s4563_s21 }
 0x15c   :  { %489 = vrot.lane.b32.xlu0 %v476_v19, %s4563_s21  ;;  %485 = vrot.lane.b32.xlu2 %v474_v31, %s4563_s21 }
 0x196   :  { %v386_v32 = vpop.permute.xlu2 %385 }
 0x197   :  { %v408_v11 = vadd.f32 %v386_v32, %v4700_v48  ;;  %v478_v48 = vrot.slane %v4667_v16, 7 }
 0x199   :  { %4158 = vtanh.f32 %v408_v11 }
 0x19e   :  { %v390_v33 = vpop.permute.xlu2 %389 }
 0x19f   :  { %v4159_v34 = vpop.eup %4158  ;;  %v410_v45 = vadd.f32 %v390_v33, %v4705_v53 }
 0x1a0   :  { %441 = vrot.lane.b32.xlu1 %v4159_v34, %s4564_s22 }
 0x1a6   :  { %v396_v36 = vpop.permute.xlu2 %395 }
 0x1a7   :  { %v413_v38 = vadd.f32 %v396_v36, %v4715_v1 }
 0x1a9   :  { %4160 = vtanh.f32 %v413_v38 }
 0x1ac   :  { %v384_v25 = vpop.permute.xlu1 %383 }
 0x1ad   :  { %v407_v39 = vadd.f32 %v384_v25, %v4697_v46 }
 0x1af   :  { %v4161_v13 = vpop.eup %4160  ;;  %4162 = vtanh.f32 %v407_v39 }
 0x1b0   :  { %451 = vrot.lane.b32.xlu1 %v4161_v13, %s4564_s22 }
 0x1b4   :  { %v394_v15 = vpop.permute.xlu1 %393 }
 0x1b5   :  { %v4163_v40 = vpop.eup %4162  ;;  %v412_v43 = vadd.f32 %v394_v15, %v4703_v52  ;;  %v477_v52 = vrot.slane %v4667_v16, 6  ;;  %v482_v16 = vpop.permute.xlu2 %481 }
 0x1b6   :  { %v388_v44 = vpop.permute.xlu0 %387  ;;  %439 = vrot.lane.b32.xlu2 %v4163_v40, %s4564_s22  ;;  %v504_v23 = vmul.f32 %v482_v16, %v4805_v17 }
 0x1b7   :  { %4164 = vtanh.f32 %v412_v43  ;;  %v409_v1 = vadd.f32 %v388_v44, %v4709_v56 }
 0x1b8   :  { %493 = vrot.lane.b32.xlu1 %v478_v48, %s4563_s21 }
 0x1b9   :  { %4166 = vtanh.f32 %v409_v1 }
 0x1ba   :  { %4168 = vtanh.f32 %v410_v45 }
 0x1bc   :  { %v484_v59 = vpop.permute.xlu1 %483 }
 0x1bd   :  { %v4165_v46 = vpop.eup %4164  ;;  %v505_v26 = vmul.f32 %v484_v59, %v4858_v55 }
 0x1be   :  { %449 = vrot.lane.b32.xlu2 %v4165_v46, %s4564_s22  ;;  %v392_v51 = vpop.permute.xlu0 %391 }
 0x1bf   :  { %v4167_v50 = vpop.eup %4166  ;;  %v411_v54 = vadd.f32 %v392_v51, %v4712_v63  ;;  %v486_v63 = vpop.permute.xlu2 %485 }
 0x1c0   :  { %443 = vrot.lane.b32.xlu0 %v4167_v50, %s4564_s22  ;;  %v4169_v56 = vpop.eup %4168  ;;  %v506_v20 = vmul.f32 %v486_v63, %v4856_v27  ;;  %v429_v27 = vsub.f32 1.0, %v4887_v14 }
 0x1c1   :  { %4170 = vtanh.f32 %v411_v54 }
 0x1c4   :  { %v480_v60 = vpop.permute.xlu1 %479 }
 0x1c5   :  { %v503_v17 = vmul.f32 %v480_v60, %v4800_v6  ;;  %v427_v6 = vsub.f32 1.0, %v4885_v9 }
 0x1c6   :  { %491 = vrot.lane.b32.xlu2 %v477_v52, %s4563_s21  ;;  %v398_v29 = vpop.permute.xlu0 %397 }
 0x1c7   :  { %v414_v53 = vadd.f32 %v398_v29, %v4724_v10  ;;  %v4171_v57 = vpop.eup %4170  ;;  %v425_v10 = vsub.f32 1.0, %v4858_v55 }
 0x1c8   :  { %445 = vrot.lane.b32.xlu0 %v4169_v56, %s4564_s22  ;;  %v430_v56 = vsub.f32 1.0, %v4902_v28 }
 0x1c9   :  { %4172 = vtanh.f32 %v414_v53 }
 0x1cc   :  { %v488_v62 = vpop.permute.xlu1 %487 }
 0x1ce   :  { %v490_v61 = vpop.permute.xlu0 %489 }
 0x1cf   :  { %v4173_v58 = vpop.eup %4172  ;;  %v508_v31 = vmul.f32 %v490_v61, %v4851_v41  ;;  %v507_v41 = vmul.f32 %v488_v62, %v4885_v9 }
 0x1d0   :  { %447 = vrot.lane.b32.xlu0 %v4171_v57, %s4564_s22 }
 0x1d8   :  { %453 = vrot.lane.b32.xlu0 %v4173_v58, %s4564_s22 }
 0x210   :  { %v440_v0 = vpop.permute.xlu2 %439 }
 0x211   :  { %v463_v21 = vmul.f32 %v440_v0, %v423_v42 }
 0x212   :  { %v442_v3 = vpop.permute.xlu1 %441 }
 0x213   :  { %v464_v5 = vmul.f32 %v442_v3, %v424_v4  ;;  %v4953_v32 = vadd.f32 %v503_v17, %v463_v21 }
 0x215   :  { %v4941_v47 = vadd.f32 %v504_v23, %v464_v5  ;;  %v568_v15 = vpack.c.bf16 %v4953_v32, %v4953_v32 }
 0x217   :  { %v569_v55 = vpack.c.bf16 %v4941_v47, %v4941_v47  ;;  %v584_v50 = vunpack.c.l.b16 %v568_v15 }
 0x218   :  { %v450_v7 = vpop.permute.xlu2 %449 }
 0x219   :  { %v468_v37 = vmul.f32 %v450_v7, %v428_v22  ;;  %v585_v36 = vunpack.c.l.b16 %v569_v55 }
 0x21b   :  { %v4961_v38 = vadd.f32 %v508_v31, %v468_v37  ;;  %v592_v1 = vrot.slane %v585_v36, 7 }
 0x21d   :  { %7174 = vst [vmem:[#allocation5_spill] sm:$0xff] %v4961_v38  ;;  %v573_v46 = vpack.c.bf16 %v4961_v38, %v4961_v38  ;;  %v594_v29 = vsel %vm593_vm9, %v592_v1, %v584_v50 }
 0x21f   :  { %v589_v53 = vunpack.c.l.b16 %v573_v46 }
 0x220   :  { %v492_v33 = vpop.permute.xlu2 %491 }
 0x221   :  { %v509_v48 = vmul.f32 %v492_v33, %v4887_v14  ;;  %v604_v3 = vrot.slane %v589_v53, 3 }
 0x222   :  { %v452_v19 = vpop.permute.xlu1 %451 }
 0x223   :  { %v469_v25 = vmul.f32 %v452_v19, %v429_v27  ;;  %v5001_v19 = vld [vmem:[#allocation3 + $0x1] sm:$0x1] }
 0x225   :  { %v4971_v45 = vadd.f32 %v509_v48, %v469_v25 }
 0x227   :  { %7176 = vst [vmem:[#allocation7_spill] sm:$0xff] %v4971_v45  ;;  %v574_v57 = vpack.c.bf16 %v4971_v45, %v4971_v45 }
 0x229   :  { %v590_v0 = vunpack.c.l.b16 %v574_v57 }
 0x22a   :  { %v494_v51 = vpop.permute.xlu1 %493 }
 0x22b   :  { %v510_v59 = vmul.f32 %v494_v51, %v4902_v28  ;;  %v5019_v51 = vld [vmem:[#allocation3 + $0x19] sm:$0x1] }
 0x232   :  { %v444_v2 = vpop.permute.xlu0 %443 }
 0x233   :  { %v465_v8 = vmul.f32 %v444_v2, %v425_v10  ;;  %v607_v10 = vrot.slane %v590_v0, 2 }
 0x235   :  { %v4945_v24 = vadd.f32 %v505_v26, %v465_v8 }
 0x237   :  { %v570_v11 = vpack.c.bf16 %v4945_v24, %v4945_v24 }
 0x239   :  { %v586_v40 = vunpack.c.l.b16 %v570_v11  ;;  %v5004_v11 = vld [vmem:[#allocation3 + $0x29] sm:$0x1] }
 0x23a   :  { %v446_v18 = vpop.permute.xlu0 %445 }
 0x23b   :  { %v466_v49 = vmul.f32 %v446_v18, %v426_v12  ;;  %v595_v52 = vrot.slane %v586_v40, 6 }
 0x23d   :  { %v4947_v30 = vadd.f32 %v506_v20, %v466_v49  ;;  %v597_v63 = vsel %vm596_vm10, %v595_v52, %v594_v29 }
 0x23f   :  { %v571_v34 = vpack.c.bf16 %v4947_v30, %v4947_v30 }
 0x241   :  { %v587_v43 = vunpack.c.l.b16 %v571_v34 }
 0x242   :  { %v448_v39 = vpop.permute.xlu0 %447 }
 0x243   :  { %v467_v13 = vmul.f32 %v448_v39, %v427_v6  ;;  %v598_v54 = vrot.slane %v587_v43, 5  ;;  %v5007_v39 = vld [vmem:[#allocation3 + $0x11] sm:$0x1] }
 0x245   :  { %v4967_v44 = vadd.f32 %v507_v41, %v467_v13  ;;  %v600_v62 = vsel %vm599_vm11, %v598_v54, %v597_v63  ;;  %v5010_v13 = vld [vmem:[#allocation3 + $0x9] sm:$0x1]  ;;  %v5026_v63 = vld [vmem:[#allocation3 + $0x31] sm:$0x1] }
 0x247   :  { %7175 = vst [vmem:[#allocation6_spill] sm:$0xff] %v4967_v44  ;;  %v572_v9 = vpack.c.bf16 %v4967_v44, %v4967_v44 }
 0x249   :  { %v588_v14 = vunpack.c.l.b16 %v572_v9  ;;  %v5016_v9 = vld [vmem:[#allocation3 + $0x21] sm:$0x1] }
 0x24a   :  { %v454_v58 = vpop.permute.xlu0 %453 }
 0x24b   :  { %v601_v16 = vrot.slane %v588_v14, 4  ;;  %v470_v60 = vmul.f32 %v454_v58, %v430_v56 }
 0x24d   :  { %v4981_v61 = vadd.f32 %v510_v59, %v470_v60  ;;  %v603_v2 = vsel %vm602_vm12, %v601_v16, %v600_v62  ;;  %v5023_v59 = vld [vmem:[#allocation3 + $0x39] sm:$0x1] }
 0x24e   :  { %v606_v28 = vsel %vm605_vm13, %v604_v3, %v603_v2 }
 0x24f   :  { %7177 = vst [vmem:[#allocation8_spill] sm:$0xff] %v4981_v61  ;;  %v575_v4 = vpack.c.bf16 %v4981_v61, %v4981_v61  ;;  %v609_v23 = vsel %vm608_vm14, %v607_v10, %v606_v28 }
 0x251   :  { %v591_v5 = vunpack.c.l.b16 %v575_v4 }
 0x253   :  { %v610_v7 = vrot.slane %v591_v5, 1 }
 0x255   :  { %v612_v8 = vsel %vm611_vm15, %v610_v7, %v609_v23 }
 0x256   :  { %v613_v12 = vpack.c.b16 %v612_v8, %v612_v8 }
 0x258   :  { %614 = vrot.lane.b32.xlu2 %v613_v12, %s4564_s22 }
 0x2b2   :  { %v615_v26 = vpop.permute.xlu2 %614 }
 0x2b3   :  { %4005 = vmatmul.msk.bf16.vlgmr.msra.gmra.mxu0 %vm43_vm1, %v615_v26 }
 0x330   :  { %v628_v42 = vpop.f32.mrf.mxu0 }
 0x331   :  { %v629_v18 = vadd.f32 %v4686_v35, %v628_v42 }
 0x333   :  { %808 = vrot.lane.b32.xlu2 %v629_v18, %s4562_s20  ;;  %v634_v20 = vrot.slane %v629_v18, 2  ;;  %v633_v49 = vrot.slane %v629_v18, 1  ;;  %v637_v22 = vrot.slane %v629_v18, 5  ;;  %v636_v17 = vrot.slane %v629_v18, 4 }
 0x334   :  { %v635_v55 = vrot.slane %v629_v18, 3  ;;  %v639_v37 = vrot.slane %v629_v18, 7  ;;  %v638_v35 = vrot.slane %v629_v18, 6  ;;  %v648_v31 = vadd.f32 %v629_v18, %v5001_v19 }
 0x335   :  { %812 = vrot.lane.b32.xlu1 %v634_v20, %s4562_s20  ;;  %810 = vrot.lane.b32.xlu0 %v633_v49, %s4562_s20  ;;  %v653_v33 = vadd.f32 %v637_v22, %v5004_v11  ;;  %v650_v41 = vadd.f32 %v634_v20, %v5007_v39  ;;  %v649_v48 = vadd.f32 %v633_v49, %v5010_v13 }
 0x336   :  { %v4006_v27 = vmul.f32 -1.442695, %v648_v31  ;;  %v652_v50 = vadd.f32 %v636_v17, %v5016_v9  ;;  %v651_v52 = vadd.f32 %v635_v55, %v5019_v51  ;;  %v655_v60 = vadd.f32 %v639_v37, %v5023_v59 }
 0x337   :  { %v4011_v34 = vmul.f32 -1.442695, %v653_v33  ;;  %v4008_v43 = vmul.f32 -1.442695, %v650_v41  ;;  %v4007_v1 = vmul.f32 -1.442695, %v649_v48  ;;  %v654_v62 = vadd.f32 %v638_v35, %v5026_v63 }
 0x338   :  { %v630_v21 = vpop.f32.mrf.mxu0  ;;  %4174 = vpow2.f32 %v4006_v27  ;;  %v4010_v56 = vmul.f32 -1.442695, %v652_v50  ;;  %v4009_v29 = vmul.f32 -1.442695, %v651_v52  ;;  %v4013_v28 = vmul.f32 -1.442695, %v655_v60 }
 0x339   :  { %4176 = vpow2.f32 %v4011_v34  ;;  %v4012_v7 = vmul.f32 -1.442695, %v654_v62 }
 0x33b   :  { %818 = vrot.lane.b32.xlu2 %v637_v22, %s4562_s20 }
 0x33d   :  { %816 = vrot.lane.b32.xlu1 %v636_v17, %s4562_s20  ;;  %814 = vrot.lane.b32.xlu0 %v635_v55, %s4562_s20 }
 0x33e   :  { %v4175_v6 = vpop.eup %4174 }
 0x33f   :  { %v680_v36 = vadd.f32 1.0, %v4175_v6  ;;  %v4177_v25 = vpop.eup %4176 }
 0x340   :  { %v5012_v15 = vadd.f32 1.0, %v4177_v25 }
 0x341   :  { %4178 = vrcp.f32 %v680_v36  ;;  %v699_v5 = vand.u32 2147483648, %v680_v36  ;;  %vm693_vm4 = vweird.f32 %v680_v36  ;;  %v697_v10 = vand.u32 2147483647, %v680_v36 }
 0x342   :  { %4180 = vrcp.f32 %v5012_v15  ;;  %v774_v55 = vand.u32 2147483648, %v5012_v15  ;;  %vm768_vm8 = vweird.f32 %v5012_v15 }
 0x343   :  { %4182 = vpow2.f32 %v4008_v43  ;;  %v700_v42 = vor.u32 1.1754944e-38, %v699_v5  ;;  %vm698_vm6 = vcmp.eq.f32.partialorder %v697_v10, 8.507059e+37 }
 0x344   :  { %4184 = vpow2.f32 %v4007_v1  ;;  %v775_v6 = vor.u32 1.1754944e-38, %v774_v55 }
 0x345   :  { %822 = vrot.lane.b32.xlu1 %v639_v37, %s4562_s20  ;;  %820 = vrot.lane.b32.xlu0 %v638_v35, %s4562_s20  ;;  %4186 = vpow2.f32 %v4010_v56  ;;  %v772_v35 = vand.u32 2147483647, %v5012_v15 }
 0x346   :  { %4188 = vpow2.f32 %v4009_v29 }
 0x347   :  { %v4179_v40 = vpop.eup %4178 }
 0x348   :  { %v689_v46 = vmul.f32 %v4179_v40, %v680_v36  ;;  %v4181_v14 = vpop.eup %4180  ;;  %vm694_vm3 = vweird.f32 %v4179_v40 }
 0x349   :  { %v764_v57 = vmul.f32 %v4181_v14, %v5012_v15  ;;  %v4183_v58 = vpop.eup %4182  ;;  %vm695_vm5 = vmor %vm693_vm4, %vm694_vm3  ;;  %vm769_vm7 = vweird.f32 %v4181_v14  ;;  %vm773_vm4 = vcmp.eq.f32.partialorder %v772_v35, 8.507059e+37 }
 0x34a   :  { %v690_v54 = vsub.f32 1.0, %v689_v46  ;;  %v4185_v16 = vpop.eup %4184  ;;  %v5029_v0 = vadd.f32 1.0, %v4183_v58  ;;  %vm770_vm3 = vmor %vm768_vm8, %vm769_vm7 }
 0x34b   :  { %v765_v3 = vsub.f32 1.0, %v764_v57  ;;  %v5031_v4 = vadd.f32 1.0, %v4185_v16  ;;  %v4187_v23 = vpop.eup %4186 }
 0x34c   :  { %v691_v53 = vmul.f32 %v4179_v40, %v690_v54  ;;  %4190 = vrcp.f32 %v5029_v0  ;;  %v4189_v26 = vpop.eup %4188  ;;  %v5035_v18 = vadd.f32 1.0, %v4187_v23  ;;  %vm723_vm7 = vweird.f32 %v5029_v0 }
 0x34d   :  { %v766_v12 = vmul.f32 %v4181_v14, %v765_v3  ;;  %4192 = vrcp.f32 %v5031_v4  ;;  %v5039_v21 = vadd.f32 1.0, %v4189_v26  ;;  %v714_v3 = vand.u32 2147483648, %v5031_v4 }
 0x34e   :  { %v692_v2 = vadd.f32 %v4179_v40, %v691_v53  ;;  %4194 = vpow2.f32 %v4013_v28  ;;  %v727_v28 = vand.u32 2147483647, %v5029_v0  ;;  %v712_v10 = vand.u32 2147483647, %v5031_v4 }
 0x34f   :  { %4196 = vpow2.f32 %v4012_v7  ;;  %v767_v17 = vadd.f32 %v4181_v14, %v766_v12 }
 0x350   :  { %v696_v8 = vsel %vm695_vm5, %v4179_v40, %v692_v2  ;;  %4198 = vrcp.f32 %v5035_v18  ;;  %v729_v2 = vand.u32 2147483648, %v5029_v0 }
 0x351   :  { %v5037_v49 = vsel %vm698_vm6, %v700_v42, %v696_v8  ;;  %4200 = vrcp.f32 %v5039_v21  ;;  %v771_v33 = vsel %vm770_vm3, %v4181_v14, %v767_v17  ;;  %vm708_vm3 = vweird.f32 %v5031_v4 }
 0x352   :  { %v4191_v37 = vpop.eup %4190  ;;  %v5050_v48 = vsel %vm773_vm4, %v775_v6, %v771_v33  ;;  %v730_v42 = vor.u32 1.1754944e-38, %v729_v2 }
 0x353   :  { %v4193_v31 = vpop.eup %4192  ;;  %v719_v36 = vmul.f32 %v4191_v37, %v5029_v0  ;;  %vm724_vm5 = vweird.f32 %v4191_v37 }
 0x354   :  { %v4195_v27 = vpop.eup %4194  ;;  %v704_v25 = vmul.f32 %v4193_v31, %v5031_v4  ;;  %vm709_vm6 = vweird.f32 %v4193_v31  ;;  %vm5075_vm8 = vmor %vm723_vm7, %vm724_vm5  ;;  %vm728_vm5 = vcmp.eq.f32.partialorder %v727_v28, 8.507059e+37 }
 0x355   :  { %v4197_v34 = vpop.eup %4196  ;;  %v5052_v40 = vadd.f32 1.0, %v4195_v27  ;;  %v720_v50 = vsub.f32 1.0, %v719_v36  ;;  %vm5082_vm4 = vmor %vm708_vm3, %vm709_vm6  ;;  %vm713_vm6 = vcmp.eq.f32.partialorder %v712_v10, 8.507059e+37  ;;  %v759_v36 = vand.u32 2147483648, %v5035_v18 }
 0x356   :  { %v5055_v43 = vpop.eup %4198  ;;  %v5057_v1 = vadd.f32 1.0, %v4197_v34  ;;  %v705_v52 = vsub.f32 1.0, %v704_v25  ;;  %v744_v25 = vand.u32 2147483648, %v5039_v21 }
 0x357   :  { %v5059_v46 = vpop.eup %4200  ;;  %4202 = vrcp.f32 %v5052_v40  ;;  %v749_v54 = vmul.f32 %v5055_v43, %v5035_v18  ;;  %v721_v56 = vmul.f32 %v4191_v37, %v720_v50  ;;  %vm754_vm7 = vweird.f32 %v5055_v43 }
 0x358   :  { %4204 = vrcp.f32 %v5057_v1  ;;  %v734_v14 = vmul.f32 %v5059_v46, %v5039_v21  ;;  %v706_v29 = vmul.f32 %v4193_v31, %v705_v52  ;;  %vm739_vm3 = vweird.f32 %v5059_v46 }
 0x359   :  { %v750_v53 = vsub.f32 1.0, %v749_v54  ;;  %v722_v16 = vadd.f32 %v4191_v37, %v721_v56  ;;  %v760_v56 = vor.u32 1.1754944e-38, %v759_v36  ;;  %v804_v2 = vand.u32 2147483648, %v5052_v40 }
 0x35a   :  { %v735_v57 = vsub.f32 1.0, %v734_v14  ;;  %v707_v60 = vadd.f32 %v4193_v31, %v706_v29  ;;  %v745_v29 = vor.u32 1.1754944e-38, %v744_v25  ;;  %v802_v5 = vand.u32 2147483647, %v5052_v40 }
 0x35b   :  { %v751_v23 = vmul.f32 %v5055_v43, %v750_v53  ;;  %v726_v12 = vsel %vm5075_vm8, %v4191_v37, %v722_v16  ;;  %vm753_vm8 = vweird.f32 %v5035_v18  ;;  %v787_v28 = vand.u32 2147483647, %v5057_v1 }
 0x35c   :  { %v736_v8 = vmul.f32 %v5059_v46, %v735_v57  ;;  %v711_v26 = vsel %vm5082_vm4, %v4193_v31, %v707_v60  ;;  %v5098_v17 = vsel %vm728_vm5, %v730_v42, %v726_v12  ;;  %vm755_vm4 = vmor %vm753_vm8, %vm754_vm7  ;;  %vm738_vm5 = vweird.f32 %v5039_v21 }
 0x35d   :  { %v5068_v58 = vpop.eup %4202  ;;  %v752_v35 = vadd.f32 %v5055_v43, %v751_v23  ;;  %v805_v23 = vor.u32 1.1754944e-38, %v804_v2  ;;  %vm803_vm2 = vcmp.eq.f32.partialorder %v802_v5, 8.507059e+37  ;;  %vm788_vm0 = vcmp.eq.f32.partialorder %v787_v28, 8.507059e+37 }
 0x35e   :  { %v5070_v62 = vpop.eup %4204  ;;  %v794_v0 = vmul.f32 %v5068_v58, %v5052_v40  ;;  %v737_v31 = vadd.f32 %v5059_v46, %v736_v8 }
 0x35f   :  { %v779_v4 = vmul.f32 %v5070_v62, %v5057_v1  ;;  %v756_v50 = vsel %vm755_vm4, %v5055_v43, %v752_v35  ;;  %vm784_vm4 = vweird.f32 %v5070_v62 }
 0x360   :  { %v795_v34 = vsub.f32 1.0, %v794_v0 }
 0x361   :  { %v780_v6 = vsub.f32 1.0, %v779_v4 }
 0x362   :  { %v796_v54 = vmul.f32 %v5068_v58, %v795_v34 }
 0x363   :  { %v781_v14 = vmul.f32 %v5070_v62, %v780_v6 }
 0x364   :  { %v797_v16 = vadd.f32 %v5068_v58, %v796_v54 }
 0x365   :  { %v782_v60 = vadd.f32 %v5070_v62, %v781_v14 }
 0x38d   :  { %v809_v20 = vpop.permute.xlu2 %808 }
 0x38e   :  { %v832_v22 = vmul.f32 %v809_v20, %v5037_v49  ;;  %v715_v20 = vor.u32 1.1754944e-38, %v714_v3  ;;  %v789_v3 = vand.u32 2147483648, %v5057_v1 }
 0x390   :  { %848 = vrot.lane.b32.xlu1 %v832_v22, %s4562_s20  ;;  %v5100_v37 = vsel %vm713_vm6, %v715_v20, %v711_v26  ;;  %vm740_vm6 = vmor %vm738_vm5, %vm739_vm3  ;;  %vm799_vm3 = vweird.f32 %v5068_v58  ;;  %vm798_vm5 = vweird.f32 %v5052_v40  ;;  %v790_v8 = vor.u32 1.1754944e-38, %v789_v3 }
 0x391   :  { %v741_v52 = vsel %vm740_vm6, %v5059_v46, %v737_v31  ;;  %vm800_vm6 = vmor %vm798_vm5, %vm799_vm3  ;;  %v889_v14 = vsub.f32 1.0, %v5100_v37  ;;  %v936_v3 = vmul.f32 %v5037_v49, %v4953_v32 }
 0x392   :  { %v801_v10 = vsel %vm800_vm6, %v5068_v58, %v797_v16 }
 0x393   :  { %v5142_v12 = vsel %vm803_vm2, %v805_v23, %v801_v10 }
 0x395   :  { %v819_v41 = vpop.permute.xlu2 %818 }
 0x396   :  { %v837_v15 = vmul.f32 %v819_v41, %v5050_v48  ;;  %v757_v41 = vand.u32 2147483647, %v5035_v18 }
 0x398   :  { %858 = vrot.lane.b32.xlu1 %v837_v15, %s4562_s20  ;;  %v742_v15 = vand.u32 2147483647, %v5039_v21  ;;  %vm758_vm7 = vcmp.eq.f32.partialorder %v757_v41, 8.507059e+37 }
 0x399   :  { %v5122_v18 = vsel %vm758_vm7, %v760_v56, %v756_v50  ;;  %vm783_vm7 = vweird.f32 %v5057_v1  ;;  %v890_v56 = vsub.f32 1.0, %v5098_v17 }
 0x39a   :  { %vm743_vm8 = vcmp.eq.f32.partialorder %v742_v15, 8.507059e+37 }
 0x39b   :  { %v5124_v57 = vsel %vm743_vm8, %v745_v29, %v741_v52  ;;  %vm785_vm8 = vmor %vm783_vm7, %vm784_vm4 }
 0x39c   :  { %v786_v7 = vsel %vm785_vm8, %v5070_v62, %v782_v60 }
 0x39d   :  { %v5144_v0 = vsel %vm788_vm0, %v790_v8, %v786_v7  ;;  %v891_v7 = vsub.f32 1.0, %v5124_v57 }
 0x3a7   :  { %v813_v22 = vpop.permute.xlu1 %812  ;;  %v811_v55 = vpop.permute.xlu0 %810 }
 0x3a8   :  { %v834_v27 = vmul.f32 %v813_v22, %v5098_v17  ;;  %v833_v33 = vmul.f32 %v811_v55, %v5100_v37 }
 0x3aa   :  { %852 = vrot.lane.b32.xlu0 %v834_v27, %s4562_s20  ;;  %850 = vrot.lane.b32.xlu2 %v833_v33, %s4562_s20 }
 0x3af   :  { %v817_v53 = vpop.permute.xlu1 %816  ;;  %v815_v21 = vpop.permute.xlu0 %814 }
 0x3b0   :  { %v836_v43 = vmul.f32 %v817_v53, %v5122_v18  ;;  %v835_v46 = vmul.f32 %v815_v21, %v5124_v57  ;;  %v937_v21 = vmul.f32 %v5100_v37, %v4941_v47  ;;  %v893_v37 = vsub.f32 1.0, %v5050_v48 }
 0x3b2   :  { %856 = vrot.lane.b32.xlu0 %v836_v43, %s4562_s20  ;;  %854 = vrot.lane.b32.xlu2 %v835_v46, %s4562_s20 }
 0x3b7   :  { %v823_v26 = vpop.permute.xlu1 %822  ;;  %v821_v4 = vpop.permute.xlu0 %820 }
 0x3b8   :  { %v839_v40 = vmul.f32 %v823_v26, %v5142_v12  ;;  %v838_v42 = vmul.f32 %v821_v4, %v5144_v0  ;;  %v892_v4 = vsub.f32 1.0, %v5122_v18 }
 0x3ba   :  { %862 = vrot.lane.b32.xlu0 %v839_v40, %s4562_s20  ;;  %860 = vrot.lane.b32.xlu2 %v838_v42, %s4562_s20 }
 0x402   :  { %v849_v1 = vpop.permute.xlu1 %848 }
 0x403   :  { %v872_v58 = vadd.f32 %v849_v1, %v5001_v19 }
 0x404   :  { %v851_v62 = vpop.permute.xlu2 %850 }
 0x405   :  { %4206 = vtanh.f32 %v872_v58  ;;  %v873_v20 = vadd.f32 %v851_v62, %v5010_v13  ;;  %v941_v58 = vmul.f32 %v5050_v48, %v4961_v38  ;;  %v940_v62 = vmul.f32 %v5122_v18, %v4967_v44 }
 0x406   :  { %v894_v18 = vsub.f32 1.0, %v5144_v0 }
 0x407   :  { %4208 = vtanh.f32 %v873_v20 }
 0x40a   :  { %v859_v22 = vpop.permute.xlu1 %858 }
 0x40b   :  { %v4207_v55 = vpop.eup %4206  ;;  %v877_v35 = vadd.f32 %v859_v22, %v5004_v11 }
 0x40c   :  { %904 = vrot.lane.b32.xlu0 %v4207_v55, %s4564_s22  ;;  %v855_v31 = vpop.permute.xlu2 %854 }
 0x40d   :  { %v4209_v27 = vpop.eup %4208  ;;  %4210 = vtanh.f32 %v877_v35  ;;  %v875_v33 = vadd.f32 %v855_v31, %v5019_v51 }
 0x40e   :  { %906 = vrot.lane.b32.xlu1 %v4209_v27, %s4564_s22 }
 0x40f   :  { %4212 = vtanh.f32 %v875_v33 }
 0x413   :  { %v4211_v19 = vpop.eup %4210 }
 0x414   :  { %914 = vrot.lane.b32.xlu0 %v4211_v19, %s4564_s22  ;;  %v861_v34 = vpop.permute.xlu2 %860 }
 0x415   :  { %v4213_v13 = vpop.eup %4212  ;;  %v878_v6 = vadd.f32 %v861_v34, %v5026_v63 }
 0x416   :  { %910 = vrot.lane.b32.xlu1 %v4213_v13, %s4564_s22  ;;  %v895_v13 = vsub.f32 1.0, %v5142_v12 }
 0x417   :  { %4214 = vtanh.f32 %v878_v6 }
 0x41c   :  { %v853_v11 = vpop.permute.xlu0 %852 }
 0x41d   :  { %v4215_v36 = vpop.eup %4214  ;;  %v874_v25 = vadd.f32 %v853_v11, %v5007_v39 }
 0x41e   :  { %916 = vrot.lane.b32.xlu1 %v4215_v36, %s4564_s22 }
 0x41f   :  { %4216 = vtanh.f32 %v874_v25 }
 0x424   :  { %v857_v51 = vpop.permute.xlu0 %856 }
 0x425   :  { %v4217_v41 = vpop.eup %4216  ;;  %v876_v15 = vadd.f32 %v857_v51, %v5016_v9  ;;  %v888_v9 = vsub.f32 1.0, %v5037_v49  ;;  %v939_v49 = vmul.f32 %v5124_v57, %v4947_v30  ;;  %v943_v51 = vmul.f32 %v5142_v12, %v4981_v61 }
 0x426   :  { %908 = vrot.lane.b32.xlu2 %v4217_v41, %s4564_s22 }
 0x427   :  { %4218 = vtanh.f32 %v876_v15 }
 0x42c   :  { %v863_v50 = vpop.permute.xlu0 %862 }
 0x42d   :  { %v4219_v52 = vpop.eup %4218  ;;  %v879_v63 = vadd.f32 %v863_v50, %v5023_v59  ;;  %v938_v59 = vmul.f32 %v5098_v17, %v4945_v24  ;;  %v942_v50 = vmul.f32 %v5144_v0, %v4971_v45 }
 0x42e   :  { %912 = vrot.lane.b32.xlu2 %v4219_v52, %s4564_s22 }
 0x42f   :  { %4220 = vtanh.f32 %v879_v63 }
 0x435   :  { %v4221_v54 = vpop.eup %4220 }
 0x436   :  { %918 = vrot.lane.b32.xlu2 %v4221_v54, %s4564_s22 }
 0x47e   :  { %v905_v39 = vpop.permute.xlu0 %904 }
 0x47f   :  { %v928_v16 = vmul.f32 %v905_v39, %v888_v9 }
 0x480   :  { %v907_v29 = vpop.permute.xlu1 %906  ;;  %v909_v53 = vpop.permute.xlu2 %908 }
 0x481   :  { %v929_v43 = vmul.f32 %v907_v29, %v889_v14  ;;  %v930_v46 = vmul.f32 %v909_v53, %v890_v56  ;;  %v5181_v28 = vadd.f32 %v936_v3, %v928_v16 }
 0x483   :  { %v5173_v60 = vadd.f32 %v937_v21, %v929_v43  ;;  %v5175_v2 = vadd.f32 %v938_v59, %v930_v46  ;;  %v1000_v1 = vpack.c.bf16 %v5181_v28, %v5181_v28 }
 0x485   :  { %v1001_v5 = vpack.c.bf16 %v5173_v60, %v5173_v60  ;;  %v1002_v17 = vpack.c.bf16 %v5175_v2, %v5175_v2  ;;  %v1016_v33 = vunpack.c.l.b16 %v1000_v1 }
 0x486   :  { %v915_v10 = vpop.permute.xlu0 %914 }
 0x487   :  { %v1017_v23 = vunpack.c.l.b16 %v1001_v5  ;;  %v933_v8 = vmul.f32 %v915_v10, %v893_v37  ;;  %v1018_v22 = vunpack.c.l.b16 %v1002_v17 }
 0x488   :  { %v911_v26 = vpop.permute.xlu1 %910  ;;  %v913_v40 = vpop.permute.xlu2 %912 }
 0x489   :  { %v931_v42 = vmul.f32 %v911_v26, %v891_v7  ;;  %v932_v20 = vmul.f32 %v913_v40, %v892_v4  ;;  %v1024_v35 = vrot.slane %v1017_v23, 7  ;;  %v5198_v31 = vadd.f32 %v941_v58, %v933_v8  ;;  %v5234_v23 = vld [vmem:[%s7131_s7] ss:$0 sm:$0xff] }
 0x48a   :  { %v1026_v48 = vrot.slane %v1018_v22, 6 }
 0x48b   :  { %v5196_v55 = vadd.f32 %v939_v49, %v931_v42  ;;  %7182 = vst [vmem:[#allocation9_spill] sm:$0xff] %v5198_v31  ;;  %v5200_v27 = vadd.f32 %v940_v62, %v932_v20  ;;  %v1025_v6 = vsel %vm593_vm9, %v1024_v35, %v1016_v33  ;;  %v1005_v11 = vpack.c.bf16 %v5198_v31, %v5198_v31  ;;  %v5255_v20 = vld [vmem:[#allocation3 + $0x12] sm:$0x1] }
 0x48c   :  { %v1027_v54 = vsel %vm596_vm10, %v1026_v48, %v1025_v6 }
 0x48d   :  { %7183 = vst [vmem:[#allocation10_spill] sm:$0xff] %v5200_v27  ;;  %v1003_v57 = vpack.c.bf16 %v5196_v55, %v5196_v55  ;;  %v1004_v19 = vpack.c.bf16 %v5200_v27, %v5200_v27  ;;  %v1021_v9 = vunpack.c.l.b16 %v1005_v11  ;;  %v5264_v11 = vld [vmem:[#allocation3 + $0x2] sm:$0x1] }
 0x48f   :  { %v1019_v34 = vunpack.c.l.b16 %v1003_v57  ;;  %v1020_v36 = vunpack.c.l.b16 %v1004_v19  ;;  %v1032_v59 = vrot.slane %v1021_v9, 3  ;;  %v5258_v57 = vld [vmem:[#allocation3 + $0x22] sm:$0x1] }
 0x490   :  { %v917_v25 = vpop.permute.xlu1 %916  ;;  %v919_v41 = vpop.permute.xlu2 %918 }
 0x491   :  { %v1028_v15 = vrot.slane %v1019_v34, 5  ;;  %v934_v52 = vmul.f32 %v917_v25, %v894_v18  ;;  %v935_v63 = vmul.f32 %v919_v41, %v895_v13  ;;  %v1030_v39 = vrot.slane %v1020_v36, 4  ;;  %v5261_v34 = vld [vmem:[#allocation3 + $0x3a] sm:$0x1] }
 0x493   :  { %v5216_v14 = vadd.f32 %v942_v50, %v934_v52  ;;  %v5218_v56 = vadd.f32 %v943_v51, %v935_v63  ;;  %v1029_v29 = vsel %vm599_vm11, %v1028_v15, %v1027_v54  ;;  %v5268_v51 = vld [vmem:[#allocation3 + $0xa] sm:$0x1] }
 0x494   :  { %v1031_v43 = vsel %vm602_vm12, %v1030_v39, %v1029_v29  ;;  %v5273_v54 = vld [vmem:[#allocation3 + $0x2a] sm:$0x1] }
 0x495   :  { %7184 = vst [vmem:[#allocation11_spill] sm:$0xff] %v5216_v14  ;;  %v1006_v12 = vpack.c.bf16 %v5216_v14, %v5216_v14  ;;  %v1007_v53 = vpack.c.bf16 %v5218_v56, %v5218_v56  ;;  %v1033_v3 = vsel %vm605_vm13, %v1032_v59, %v1031_v43 }
 0x496   :  { %7185 = vst [vmem:[#allocation12_spill] sm:$0xff] %v5218_v56 }
 0x497   :  { %v1022_v21 = vunpack.c.l.b16 %v1006_v12  ;;  %v1023_v0 = vunpack.c.l.b16 %v1007_v53  ;;  %v5277_v12 = vld [vmem:[#allocation3 + $0x1a] sm:$0x1] }
 0x499   :  { %v1034_v46 = vrot.slane %v1022_v21, 2  ;;  %v1036_v16 = vrot.slane %v1023_v0, 1 }
 0x49b   :  { %v1035_v5 = vsel %vm608_vm14, %v1034_v46, %v1033_v3 }
 0x49c   :  { %v1037_v37 = vsel %vm611_vm15, %v1036_v16, %v1035_v5 }
 0x49d   :  { %v1038_v10 = vpack.c.b16 %v1037_v37, %v1037_v37 }
 0x49f   :  { %1039 = vrot.lane.b32.xlu0 %v1038_v10, %s4564_s22  ;;  %v5284_v10 = vld [vmem:[#allocation3 + $0x32] sm:$0x1] }
 0x511   :  { %v1040_v17 = vpop.permute.xlu0 %1039 }
 0x512   :  { %4014 = vmatmul.msk.bf16.vlgmr.msra.gmra.mxu3 %vm43_vm1, %v1040_v17 }
 0x595   :  { %v1053_v7 = vpop.f32.mrf.mxu3 }
 0x596   :  { %v5237_v8 = vadd.f32 %v5234_v23, %v1053_v7 }
 0x598   :  { %1233 = vrot.lane.b32.xlu0 %v5237_v8, %s4562_s20  ;;  %v1059_v26 = vrot.slane %v5237_v8, 2  ;;  %v1058_v4 = vrot.slane %v5237_v8, 1  ;;  %v1062_v49 = vrot.slane %v5237_v8, 5  ;;  %v1061_v42 = vrot.slane %v5237_v8, 4 }
 0x599   :  { %v1060_v1 = vrot.slane %v5237_v8, 3  ;;  %v1064_v58 = vrot.slane %v5237_v8, 7  ;;  %v1063_v62 = vrot.slane %v5237_v8, 6  ;;  %v1073_v25 = vadd.f32 %v5237_v8, %v5264_v11 }
 0x59a   :  { %1237 = vrot.lane.b32.xlu2 %v1059_v26, %s4562_s20  ;;  %1235 = vrot.lane.b32.xlu1 %v1058_v4, %s4562_s20  ;;  %v1075_v22 = vadd.f32 %v1059_v26, %v5255_v20  ;;  %v1077_v33 = vadd.f32 %v1061_v42, %v5258_v57  ;;  %v1074_v41 = vadd.f32 %v1058_v4, %v5268_v51 }
 0x59b   :  { %v1080_v18 = vadd.f32 %v1064_v58, %v5261_v34  ;;  %v4015_v50 = vmul.f32 -1.442695, %v1073_v25  ;;  %v1078_v9 = vadd.f32 %v1062_v49, %v5273_v54  ;;  %v1076_v53 = vadd.f32 %v1060_v1, %v5277_v12 }
 0x59c   :  { %v4017_v35 = vmul.f32 -1.442695, %v1075_v22  ;;  %v4019_v19 = vmul.f32 -1.442695, %v1077_v33  ;;  %v4016_v63 = vmul.f32 -1.442695, %v1074_v41  ;;  %v1079_v7 = vadd.f32 %v1063_v62, %v5284_v10 }
 0x59d   :  { %v1055_v40 = vpop.f32.mrf.mxu3  ;;  %v4022_v6 = vmul.f32 -1.442695, %v1080_v18  ;;  %v4020_v0 = vmul.f32 -1.442695, %v1078_v9  ;;  %v4018_v16 = vmul.f32 -1.442695, %v1076_v53 }
 0x59e   :  { %4222 = vpow2.f32 %v4017_v35 }
 0x59f   :  { %4224 = vpow2.f32 %v4019_v19 }
 0x5a0   :  { %1243 = vrot.lane.b32.xlu0 %v1062_v49, %s4562_s20 }
 0x5a2   :  { %1241 = vrot.lane.b32.xlu2 %v1061_v42, %s4562_s20  ;;  %1239 = vrot.lane.b32.xlu1 %v1060_v1, %s4562_s20  ;;  %v4021_v1 = vmul.f32 -1.442695, %v1079_v7 }
 0x5a4   :  { %v4223_v48 = vpop.eup %4222 }
 0x5a5   :  { %v1107_v13 = vadd.f32 1.0, %v4223_v48  ;;  %v4225_v36 = vpop.eup %4224 }
 0x5a6   :  { %v5271_v15 = vadd.f32 1.0, %v4225_v36 }
 0x5a7   :  { %4226 = vrcp.f32 %v1107_v13  ;;  %v1154_v49 = vand.u32 2147483648, %v1107_v13  ;;  %vm1148_vm2 = vweird.f32 %v1107_v13 }
 0x5a8   :  { %4228 = vpow2.f32 %v4022_v6  ;;  %vm1178_vm6 = vweird.f32 %v5271_v15 }
 0x5a9   :  { %4230 = vrcp.f32 %v5271_v15  ;;  %v1155_v48 = vor.u32 1.1754944e-38, %v1154_v49 }
 0x5aa   :  { %1247 = vrot.lane.b32.xlu2 %v1064_v58, %s4562_s20  ;;  %1245 = vrot.lane.b32.xlu1 %v1063_v62, %s4562_s20  ;;  %4232 = vpow2.f32 %v4015_v50  ;;  %v1152_v58 = vand.u32 2147483647, %v1107_v13 }
 0x5ab   :  { %4234 = vpow2.f32 %v4016_v63  ;;  %v1184_v63 = vand.u32 2147483648, %v5271_v15 }
 0x5ac   :  { %vm1153_vm4 = vcmp.eq.f32.partialorder %v1152_v58, 8.507059e+37 }
 0x5ad   :  { %v4227_v52 = vpop.eup %4226 }
 0x5ae   :  { %v4229_v39 = vpop.eup %4228  ;;  %v1144_v29 = vmul.f32 %v4227_v52, %v1107_v13  ;;  %vm1149_vm0 = vweird.f32 %v4227_v52 }
 0x5af   :  { %v5280_v21 = vadd.f32 1.0, %v4229_v39  ;;  %v4231_v59 = vpop.eup %4230  ;;  %vm1150_vm3 = vmor %vm1148_vm2, %vm1149_vm0  ;;  %v1182_v39 = vand.u32 2147483647, %v5271_v15 }
 0x5b0   :  { %v1145_v43 = vsub.f32 1.0, %v1144_v29  ;;  %v4233_v46 = vpop.eup %4232  ;;  %v1174_v37 = vmul.f32 %v4231_v59, %v5271_v15  ;;  %vm1179_vm5 = vweird.f32 %v4231_v59 }
 0x5b1   :  { %4236 = vrcp.f32 %v5280_v21  ;;  %v4235_v3 = vpop.eup %4234  ;;  %v5286_v17 = vadd.f32 1.0, %v4233_v46  ;;  %vm1180_vm7 = vmor %vm1178_vm6, %vm1179_vm5  ;;  %v1185_v46 = vor.u32 1.1754944e-38, %v1184_v63  ;;  %vm1183_vm8 = vcmp.eq.f32.partialorder %v1182_v39, 8.507059e+37 }
 0x5b2   :  { %4238 = vpow2.f32 %v4020_v0  ;;  %v1146_v5 = vmul.f32 %v4227_v52, %v1145_v43  ;;  %v5289_v8 = vadd.f32 1.0, %v4235_v3  ;;  %v1175_v4 = vsub.f32 1.0, %v1174_v37 }
 0x5b3   :  { %4240 = vpow2.f32 %v4018_v16  ;;  %v1229_v49 = vand.u32 2147483648, %v5280_v21  ;;  %vm1223_vm2 = vweird.f32 %v5280_v21  ;;  %vm1118_vm6 = vweird.f32 %v5286_v17 }
 0x5b4   :  { %v1147_v26 = vadd.f32 %v4227_v52, %v1146_v5  ;;  %4242 = vrcp.f32 %v5286_v17  ;;  %v1176_v62 = vmul.f32 %v4231_v59, %v1175_v4 }
 0x5b5   :  { %4244 = vrcp.f32 %v5289_v8 }
 0x5b6   :  { %v1151_v35 = vsel %vm1150_vm3, %v4227_v52, %v1147_v26  ;;  %4246 = vpow2.f32 %v4021_v1  ;;  %v1177_v41 = vadd.f32 %v4231_v59, %v1176_v62 }
 0x5b7   :  { %v5291_v40 = vpop.eup %4236  ;;  %v5303_v13 = vsel %vm1153_vm4, %v1155_v48, %v1151_v35 }
 0x5b8   :  { %v4239_v42 = vpop.eup %4238  ;;  %v1219_v33 = vmul.f32 %v5291_v40, %v5280_v21  ;;  %v1181_v53 = vsel %vm1180_vm7, %v4231_v59, %v1177_v41  ;;  %vm1224_vm0 = vweird.f32 %v5291_v40  ;;  %v1122_v41 = vand.u32 2147483647, %v5286_v17 }
 0x5b9   :  { %v4241_v22 = vpop.eup %4240  ;;  %v5297_v19 = vadd.f32 1.0, %v4239_v42  ;;  %v5323_v15 = vsel %vm1183_vm8, %v1185_v46, %v1181_v53  ;;  %v1227_v42 = vand.u32 2147483647, %v5280_v21  ;;  %vm1225_vm3 = vmor %vm1223_vm2, %vm1224_vm0  ;;  %vm1133_vm0 = vweird.f32 %v5289_v8 }
 0x5ba   :  { %v5299_v18 = vpop.eup %4242  ;;  %v5301_v6 = vadd.f32 1.0, %v4241_v22  ;;  %v1220_v50 = vsub.f32 1.0, %v1219_v33  ;;  %v1230_v33 = vor.u32 1.1754944e-38, %v1229_v49 }
 0x5bb   :  { %v5306_v52 = vpop.eup %4244  ;;  %4248 = vrcp.f32 %v5297_v19  ;;  %v1114_v9 = vmul.f32 %v5299_v18, %v5286_v17  ;;  %vm1228_vm4 = vcmp.eq.f32.partialorder %v1227_v42, 8.507059e+37  ;;  %vm1119_vm5 = vweird.f32 %v5299_v18 }
 0x5bc   :  { %4250 = vrcp.f32 %v5301_v6  ;;  %v4247_v29 = vpop.eup %4246  ;;  %v1221_v0 = vmul.f32 %v5291_v40, %v1220_v50  ;;  %v1129_v43 = vmul.f32 %v5306_v52, %v5289_v8  ;;  %vm1134_vm7 = vweird.f32 %v5306_v52  ;;  %vm1120_vm8 = vmor %vm1118_vm6, %vm1119_vm5 }
 0x5bd   :  { %v1115_v16 = vsub.f32 1.0, %v1114_v9  ;;  %v5321_v5 = vadd.f32 1.0, %v4247_v29  ;;  %v1139_v29 = vand.u32 2147483648, %v5289_v8  ;;  %vm1135_vm2 = vmor %vm1133_vm0, %vm1134_vm7  ;;  %vm1193_vm6 = vweird.f32 %v5297_v19 }
 0x5be   :  { %v1222_v26 = vadd.f32 %v5291_v40, %v1221_v0  ;;  %v1130_v59 = vsub.f32 1.0, %v1129_v43  ;;  %vm1163_vm0 = vweird.f32 %v5301_v6 }
 0x5bf   :  { %v1116_v1 = vmul.f32 %v5299_v18, %v1115_v16  ;;  %4252 = vrcp.f32 %v5321_v5 }
 0x5c0   :  { %v1226_v22 = vsel %vm1225_vm3, %v5291_v40, %v1222_v26  ;;  %v1131_v35 = vmul.f32 %v5306_v52, %v1130_v59  ;;  %v1124_v40 = vand.u32 2147483648, %v5286_v17  ;;  %v1137_v17 = vand.u32 2147483647, %v5289_v8 }
 0x5c1   :  { %v5319_v3 = vpop.eup %4248  ;;  %v1117_v48 = vadd.f32 %v5299_v18, %v1116_v1  ;;  %vm1123_vm3 = vcmp.eq.f32.partialorder %v1122_v41, 8.507059e+37  ;;  %v1199_v1 = vand.u32 2147483648, %v5297_v19 }
 0x5c2   :  { %v5328_v4 = vpop.eup %4250  ;;  %v1189_v58 = vmul.f32 %v5319_v3, %v5297_v19  ;;  %v1132_v63 = vadd.f32 %v5306_v52, %v1131_v35  ;;  %v1125_v43 = vor.u32 1.1754944e-38, %v1124_v40  ;;  %vm1194_vm5 = vweird.f32 %v5319_v3 }
 0x5c3   :  { %v1159_v62 = vmul.f32 %v5328_v4, %v5301_v6  ;;  %v1121_v53 = vsel %vm1120_vm8, %v5299_v18, %v1117_v48  ;;  %v1140_v18 = vor.u32 1.1754944e-38, %v1139_v29  ;;  %vm1164_vm7 = vweird.f32 %v5328_v4  ;;  %vm1195_vm8 = vmor %vm1193_vm6, %vm1194_vm5 }
 0x5c4   :  { %v1190_v21 = vsub.f32 1.0, %v1189_v58  ;;  %v1136_v46 = vsel %vm1135_vm2, %v5306_v52, %v1132_v63  ;;  %v5364_v26 = vsel %vm1123_vm3, %v1125_v43, %v1121_v53  ;;  %v1197_v52 = vand.u32 2147483647, %v5297_v19  ;;  %vm1165_vm2 = vmor %vm1163_vm0, %vm1164_vm7 }
 0x5c5   :  { %v1160_v39 = vsub.f32 1.0, %v1159_v62  ;;  %v5352_v9 = vpop.eup %4252  ;;  %v1169_v62 = vand.u32 2147483648, %v5301_v6  ;;  %v1167_v19 = vand.u32 2147483647, %v5301_v6  ;;  %v1200_v48 = vor.u32 1.1754944e-38, %v1199_v1 }
 0x5c6   :  { %v1191_v0 = vmul.f32 %v5319_v3, %v1190_v21  ;;  %vm1198_vm3 = vcmp.eq.f32.partialorder %v1197_v52, 8.507059e+37  ;;  %vm1209_vm5 = vweird.f32 %v5352_v9  ;;  %vm1208_vm6 = vweird.f32 %v5321_v5 }
 0x5c7   :  { %v1161_v16 = vmul.f32 %v5328_v4, %v1160_v39  ;;  %v1212_v53 = vand.u32 2147483647, %v5321_v5  ;;  %vm1210_vm7 = vmor %vm1208_vm6, %vm1209_vm5 }
 0x5c8   :  { %v1192_v8 = vadd.f32 %v5319_v3, %v1191_v0 }
 0x5f4   :  { %v1238_v36 = vpop.permute.xlu2 %1237 }
 0x5f5   :  { %v1259_v25 = vmul.f32 %v1238_v36, %v5303_v13  ;;  %v5344_v36 = vsel %vm1228_vm4, %v1230_v33, %v1226_v22  ;;  %vm1138_vm4 = vcmp.eq.f32.partialorder %v1137_v17, 8.507059e+37  ;;  %v1162_v22 = vadd.f32 %v5328_v4, %v1161_v16 }
 0x5f6   :  { %v5369_v42 = vsel %vm1138_vm4, %v1140_v18, %v1136_v46  ;;  %v1196_v33 = vsel %vm1195_vm8, %v5319_v3, %v1192_v8  ;;  %vm1168_vm4 = vcmp.eq.f32.partialorder %v1167_v19, 8.507059e+37  ;;  %vm1213_vm8 = vcmp.eq.f32.partialorder %v1212_v53, 8.507059e+37 }
 0x5f7   :  { %1277 = vrot.lane.b32.xlu1 %v1259_v25, %s4562_s20  ;;  %v1166_v21 = vsel %vm1165_vm2, %v5328_v4, %v1162_v22  ;;  %v5385_v40 = vsel %vm1198_vm3, %v1200_v48, %v1196_v33  ;;  %v1214_v4 = vand.u32 2147483648, %v5321_v5 }
 0x5f9   :  { %v1215_v0 = vor.u32 1.1754944e-38, %v1214_v4 }
 0x5fc   :  { %v1242_v37 = vpop.permute.xlu2 %1241 }
 0x5fd   :  { %v1261_v7 = vmul.f32 %v1242_v37, %v5323_v15  ;;  %v1204_v37 = vmul.f32 %v5352_v9, %v5321_v5 }
 0x5ff   :  { %1281 = vrot.lane.b32.xlu1 %v1261_v7, %s4562_s20  ;;  %v1205_v35 = vsub.f32 1.0, %v1204_v37 }
 0x604   :  { %v1248_v25 = vpop.permute.xlu2 %1247 }
 0x605   :  { %v1264_v50 = vmul.f32 %v1248_v25, %v5344_v36  ;;  %v1206_v25 = vmul.f32 %v5352_v9, %v1205_v35 }
 0x607   :  { %1287 = vrot.lane.b32.xlu1 %v1264_v50, %s4562_s20  ;;  %v1170_v50 = vor.u32 1.1754944e-38, %v1169_v62  ;;  %v1207_v6 = vadd.f32 %v5352_v9, %v1206_v25 }
 0x609   :  { %v5388_v39 = vsel %vm1168_vm4, %v1170_v50, %v1166_v21  ;;  %v1211_v17 = vsel %vm1210_vm7, %v5352_v9, %v1207_v6  ;;  %v1315_v50 = vsub.f32 1.0, %v5303_v13 }
 0x60a   :  { %v1234_v7 = vpop.permute.xlu0 %1233  ;;  %v5399_v43 = vsel %vm1213_vm8, %v1215_v0, %v1211_v17 }
 0x60b   :  { %v1257_v59 = vmul.f32 %v1234_v7, %v5364_v26 }
 0x60c   :  { %v1236_v49 = vpop.permute.xlu1 %1235 }
 0x60d   :  { %v1258_v58 = vmul.f32 %v1236_v49, %v5369_v42  ;;  %1273 = vrot.lane.b32.xlu2 %v1257_v59, %s4562_s20 }
 0x60f   :  { %1275 = vrot.lane.b32.xlu0 %v1258_v58, %s4562_s20 }
 0x612   :  { %v1244_v41 = vpop.permute.xlu0 %1243 }
 0x613   :  { %v1262_v63 = vmul.f32 %v1244_v41, %v5385_v40  ;;  %v1314_v41 = vsub.f32 1.0, %v5369_v42 }
 0x614   :  { %v1240_v3 = vpop.permute.xlu1 %1239 }
 0x615   :  { %v1260_v29 = vmul.f32 %v1240_v3, %v5388_v39  ;;  %1283 = vrot.lane.b32.xlu2 %v1262_v63, %s4562_s20 }
 0x617   :  { %1279 = vrot.lane.b32.xlu0 %v1260_v29, %s4562_s20  ;;  %v1362_v29 = vmul.f32 %v5369_v42, %v5173_v60  ;;  %v1318_v42 = vsub.f32 1.0, %v5385_v40 }
 0x61c   :  { %v1246_v46 = vpop.permute.xlu1 %1245 }
 0x61d   :  { %v1263_v16 = vmul.f32 %v1246_v46, %v5399_v43  ;;  %v1361_v46 = vmul.f32 %v5364_v26, %v5181_v28 }
 0x61f   :  { %1285 = vrot.lane.b32.xlu0 %v1263_v16, %s4562_s20 }
 0x667   :  { %v1274_v37 = vpop.permute.xlu2 %1273 }
 0x668   :  { %v1297_v7 = vadd.f32 %v1274_v37, %v5264_v11 }
 0x669   :  { %v1278_v18 = vpop.permute.xlu1 %1277 }
 0x66a   :  { %4254 = vtanh.f32 %v1297_v7  ;;  %v1299_v59 = vadd.f32 %v1278_v18, %v5255_v20  ;;  %v1316_v18 = vsub.f32 1.0, %v5388_v39 }
 0x66c   :  { %4256 = vtanh.f32 %v1299_v59 }
 0x66f   :  { %v1284_v5 = vpop.permute.xlu2 %1283 }
 0x670   :  { %v4255_v8 = vpop.eup %4254  ;;  %v1302_v9 = vadd.f32 %v1284_v5, %v5273_v54 }
 0x671   :  { %1329 = vrot.lane.b32.xlu1 %v4255_v8, %s4564_s22  ;;  %v1282_v49 = vpop.permute.xlu1 %1281 }
 0x672   :  { %v4257_v52 = vpop.eup %4256  ;;  %4258 = vtanh.f32 %v1302_v9  ;;  %v1301_v1 = vadd.f32 %v1282_v49, %v5258_v57  ;;  %v1317_v9 = vsub.f32 1.0, %v5323_v15 }
 0x673   :  { %1333 = vrot.lane.b32.xlu0 %v4257_v52, %s4564_s22 }
 0x674   :  { %4260 = vtanh.f32 %v1301_v1 }
 0x678   :  { %v4259_v11 = vpop.eup %4258 }
 0x679   :  { %1339 = vrot.lane.b32.xlu1 %v4259_v11, %s4564_s22  ;;  %v1288_v58 = vpop.permute.xlu1 %1287  ;;  %v1366_v11 = vmul.f32 %v5385_v40, %v5198_v31 }
 0x67a   :  { %v4261_v20 = vpop.eup %4260  ;;  %v1304_v22 = vadd.f32 %v1288_v58, %v5261_v34  ;;  %v1365_v58 = vmul.f32 %v5323_v15, %v5200_v27  ;;  %v1319_v15 = vsub.f32 1.0, %v5399_v43 }
 0x67b   :  { %1337 = vrot.lane.b32.xlu0 %v4261_v20, %s4564_s22 }
 0x67c   :  { %4262 = vtanh.f32 %v1304_v22 }
 0x681   :  { %v1276_v54 = vpop.permute.xlu0 %1275 }
 0x682   :  { %v4263_v35 = vpop.eup %4262  ;;  %v1298_v62 = vadd.f32 %v1276_v54, %v5268_v51 }
 0x683   :  { %1343 = vrot.lane.b32.xlu0 %v4263_v35, %s4564_s22 }
 0x684   :  { %4264 = vtanh.f32 %v1298_v62 }
 0x689   :  { %v1280_v57 = vpop.permute.xlu0 %1279 }
 0x68a   :  { %v4265_v33 = vpop.eup %4264  ;;  %v1300_v19 = vadd.f32 %v1280_v57, %v5277_v12  ;;  %v1313_v12 = vsub.f32 1.0, %v5364_v26  ;;  %v1364_v26 = vmul.f32 %v5388_v39, %v5196_v55 }
 0x68b   :  { %1331 = vrot.lane.b32.xlu2 %v4265_v33, %s4564_s22 }
 0x68c   :  { %4266 = vtanh.f32 %v1300_v19 }
 0x691   :  { %v1286_v48 = vpop.permute.xlu0 %1285 }
 0x692   :  { %v4267_v21 = vpop.eup %4266  ;;  %v1303_v34 = vadd.f32 %v1286_v48, %v5284_v10  ;;  %v1363_v10 = vmul.f32 %v5303_v13, %v5175_v2 }
 0x693   :  { %1335 = vrot.lane.b32.xlu2 %v4267_v21, %s4564_s22  ;;  %v1320_v21 = vsub.f32 1.0, %v5344_v36 }
 0x694   :  { %4268 = vtanh.f32 %v1303_v34 }
 0x69a   :  { %v4269_v25 = vpop.eup %4268 }
 0x69b   :  { %1341 = vrot.lane.b32.xlu2 %v4269_v25, %s4564_s22 }
 0x6e3   :  { %v1330_v51 = vpop.permute.xlu1 %1329 }
 0x6e4   :  { %v1353_v53 = vmul.f32 %v1330_v51, %v1313_v12 }
 0x6e5   :  { %v1332_v63 = vpop.permute.xlu2 %1331  ;;  %v1334_v3 = vpop.permute.xlu0 %1333 }
 0x6e6   :  { %v1354_v6 = vmul.f32 %v1332_v63, %v1314_v41  ;;  %v1355_v4 = vmul.f32 %v1334_v3, %v1315_v50  ;;  %v5434_v37 = vadd.f32 %v1361_v46, %v1353_v53  ;;  %v1368_v50 = vmul.f32 %v5344_v36, %v5218_v56 }
 0x6e7   :  { %v1367_v3 = vmul.f32 %v5399_v43, %v5216_v14 }
 0x6e8   :  { %v5426_v17 = vadd.f32 %v1362_v29, %v1354_v6  ;;  %v5428_v0 = vadd.f32 %v1363_v10, %v1355_v4  ;;  %v1425_v1 = vpack.c.bf16 %v5434_v37, %v5434_v37 }
 0x6ea   :  { %v1426_v16 = vpack.c.bf16 %v5426_v17, %v5426_v17  ;;  %v1427_v13 = vpack.c.bf16 %v5428_v0, %v5428_v0  ;;  %v1441_v33 = vunpack.c.l.b16 %v1425_v1 }
 0x6eb   :  { %v1340_v7 = vpop.permute.xlu1 %1339 }
 0x6ec   :  { %v1442_v59 = vunpack.c.l.b16 %v1426_v16  ;;  %v1358_v5 = vmul.f32 %v1340_v7, %v1318_v42  ;;  %v1443_v22 = vunpack.c.l.b16 %v1427_v13 }
 0x6ed   :  { %v1336_v8 = vpop.permute.xlu2 %1335  ;;  %v1338_v49 = vpop.permute.xlu0 %1337 }
 0x6ee   :  { %v1356_v52 = vmul.f32 %v1336_v8, %v1316_v18  ;;  %v1357_v20 = vmul.f32 %v1338_v49, %v1317_v9  ;;  %v1449_v35 = vrot.slane %v1442_v59, 7  ;;  %v5451_v62 = vadd.f32 %v1366_v11, %v1358_v5 }
 0x6ef   :  { %v1451_v40 = vrot.slane %v1443_v22, 6 }
 0x6f0   :  { %v5449_v54 = vadd.f32 %v1364_v26, %v1356_v52  ;;  %7186 = vst [vmem:[#allocation13_spill] sm:$0xff] %v5451_v62  ;;  %v5453_v57 = vadd.f32 %v1365_v58, %v1357_v20  ;;  %v1450_v34 = vsel %vm593_vm9, %v1449_v35, %v1441_v33  ;;  %v1430_v25 = vpack.c.bf16 %v5451_v62, %v5451_v62 }
 0x6f1   :  { %v1452_v10 = vsel %vm596_vm10, %v1451_v40, %v1450_v34  ;;  %v5506_v34 = vld [vmem:[#allocation3 + $0x1b] sm:$0x1] }
 0x6f2   :  { %7187 = vst [vmem:[#allocation14_spill] sm:$0xff] %v5453_v57  ;;  %v1428_v39 = vpack.c.bf16 %v5449_v54, %v5449_v54  ;;  %v1429_v19 = vpack.c.bf16 %v5453_v57, %v5453_v57  ;;  %v1446_v16 = vunpack.c.l.b16 %v1430_v25 }
 0x6f4   :  { %v1444_v48 = vunpack.c.l.b16 %v1428_v39  ;;  %v1445_v51 = vunpack.c.l.b16 %v1429_v19  ;;  %v1457_v59 = vrot.slane %v1446_v16, 3 }
 0x6f5   :  { %v1342_v41 = vpop.permute.xlu2 %1341  ;;  %v1344_v12 = vpop.permute.xlu0 %1343 }
 0x6f6   :  { %v1453_v63 = vrot.slane %v1444_v48, 5  ;;  %v1359_v29 = vmul.f32 %v1342_v41, %v1319_v15  ;;  %v1360_v6 = vmul.f32 %v1344_v12, %v1320_v21  ;;  %v1455_v4 = vrot.slane %v1445_v51, 4  ;;  %v5503_v48 = vld [vmem:[#allocation3 + $0xb] sm:$0x1] }
 0x6f8   :  { %v5469_v53 = vadd.f32 %v1367_v3, %v1359_v29  ;;  %v5471_v46 = vadd.f32 %v1368_v50, %v1360_v6  ;;  %v1454_v42 = vsel %vm599_vm11, %v1453_v63, %v1452_v10  ;;  %v5509_v50 = vld [vmem:[#allocation3 + $0x33] sm:$0x1]  ;;  %v5512_v29 = vld [vmem:[#allocation3 + $0x3] sm:$0x1] }
 0x6f9   :  { %v1456_v18 = vsel %vm602_vm12, %v1455_v4, %v1454_v42  ;;  %v5516_v4 = vld [vmem:[#allocation3 + $0x13] sm:$0x1] }
 0x6fa   :  { %7188 = vst [vmem:[#allocation15_spill] sm:$0xff] %v5469_v53  ;;  %v1431_v36 = vpack.c.bf16 %v5469_v53, %v5469_v53  ;;  %v1432_v7 = vpack.c.bf16 %v5471_v46, %v5471_v46  ;;  %v1458_v9 = vsel %vm605_vm13, %v1457_v59, %v1456_v18 }
 0x6fb   :  { %7189 = vst [vmem:[#allocation16_spill] sm:$0xff] %v5471_v46 }
 0x6fc   :  { %v1447_v13 = vunpack.c.l.b16 %v1431_v36  ;;  %v1448_v43 = vunpack.c.l.b16 %v1432_v7 }
 0x6fe   :  { %v1459_v5 = vrot.slane %v1447_v13, 2  ;;  %v1461_v8 = vrot.slane %v1448_v43, 1  ;;  %v5521_v43 = vld [vmem:[#allocation3 + $0x2b] sm:$0x1] }
 0x700   :  { %v1460_v49 = vsel %vm608_vm14, %v1459_v5, %v1458_v9 }
 0x701   :  { %v1462_v26 = vsel %vm611_vm15, %v1461_v8, %v1460_v49  ;;  %v5525_v8 = vld [vmem:[#allocation3 + $0x23] sm:$0x1] }
 0x702   :  { %v1463_v52 = vpack.c.b16 %v1462_v26, %v1462_v26 }
 0x704   :  { %1464 = vrot.lane.b32.xlu1 %v1463_v52, %s4564_s22 }
 0x776   :  { %v1465_v1 = vpop.permute.xlu1 %1464 }
 0x777   :  { %4023 = vmatmul.msk.bf16.vlgmr.msra.gmra.mxu1 %vm43_vm1, %v1465_v1 }
 0x7f4   :  { %v1478_v11 = vpop.f32.mrf.mxu1 }
 0x7f5   :  { %v5485_v58 = vadd.f32 %v5234_v23, %v1478_v11 }
 0x7f7   :  { %1658 = vrot.lane.b32.xlu1 %v5485_v58, %s4562_s20  ;;  %v1484_v20 = vrot.slane %v5485_v58, 2  ;;  %v1483_v22 = vrot.slane %v5485_v58, 1  ;;  %v1487_v39 = vrot.slane %v5485_v58, 5  ;;  %v1486_v33 = vrot.slane %v5485_v58, 4 }
 0x7f8   :  { %v1485_v23 = vrot.slane %v5485_v58, 3  ;;  %v1489_v19 = vrot.slane %v5485_v58, 7  ;;  %v1488_v40 = vrot.slane %v5485_v58, 6  ;;  %v1498_v10 = vadd.f32 %v5485_v58, %v5512_v29 }
 0x7f9   :  { %1662 = vrot.lane.b32.xlu0 %v1484_v20, %s4562_s20  ;;  %1660 = vrot.lane.b32.xlu2 %v1483_v22, %s4562_s20  ;;  %v1499_v15 = vadd.f32 %v1483_v22, %v5503_v48  ;;  %v1500_v16 = vadd.f32 %v1484_v20, %v5516_v4  ;;  %v1503_v59 = vadd.f32 %v1487_v39, %v5521_v43 }
 0x7fa   :  { %v1501_v25 = vadd.f32 %v1485_v23, %v5506_v34  ;;  %v1504_v12 = vadd.f32 %v1488_v40, %v5509_v50  ;;  %v4024_v36 = vmul.f32 -1.442695, %v1498_v10  ;;  %v1502_v9 = vadd.f32 %v1486_v33, %v5525_v8 }
 0x7fb   :  { %v4025_v21 = vmul.f32 -1.442695, %v1499_v15  ;;  %v4026_v13 = vmul.f32 -1.442695, %v1500_v16  ;;  %v4029_v26 = vmul.f32 -1.442695, %v1503_v59 }
 0x7fc   :  { %v1480_v35 = vpop.f32.mrf.mxu1  ;;  %v4027_v51 = vmul.f32 -1.442695, %v1501_v25  ;;  %v4030_v3 = vmul.f32 -1.442695, %v1504_v12  ;;  %v4028_v58 = vmul.f32 -1.442695, %v1502_v9 }
 0x7fd   :  { %4270 = vpow2.f32 %v4025_v21 }
 0x7fe   :  { %4272 = vpow2.f32 %v4027_v51 }
 0x7ff   :  { %1668 = vrot.lane.b32.xlu1 %v1487_v39, %s4562_s20  ;;  %v5532_v39 = vld [vmem:[#allocation3 + $0x3b] sm:$0x1] }
 0x801   :  { %1666 = vrot.lane.b32.xlu0 %v1486_v33, %s4562_s20  ;;  %1664 = vrot.lane.b32.xlu2 %v1485_v23, %s4562_s20  ;;  %v1505_v33 = vadd.f32 %v1489_v19, %v5532_v39 }
 0x803   :  { %v4271_v41 = vpop.eup %4270  ;;  %v4031_v12 = vmul.f32 -1.442695, %v1505_v33 }
 0x804   :  { %v1531_v63 = vadd.f32 1.0, %v4271_v41  ;;  %v4273_v6 = vpop.eup %4272 }
 0x805   :  { %v5519_v42 = vadd.f32 1.0, %v4273_v6 }
 0x806   :  { %4274 = vrcp.f32 %v1531_v63  ;;  %v1564_v51 = vand.u32 2147483648, %v1531_v63  ;;  %vm1558_vm2 = vweird.f32 %v1531_v63 }
 0x807   :  { %4276 = vpow2.f32 %v4030_v3  ;;  %v1562_v3 = vand.u32 2147483647, %v1531_v63  ;;  %vm1588_vm6 = vweird.f32 %v5519_v42 }
 0x808   :  { %4278 = vrcp.f32 %v5519_v42 }
 0x809   :  { %1672 = vrot.lane.b32.xlu0 %v1489_v19, %s4562_s20  ;;  %1670 = vrot.lane.b32.xlu2 %v1488_v40, %s4562_s20  ;;  %4280 = vpow2.f32 %v4024_v36  ;;  %vm1563_vm4 = vcmp.eq.f32.partialorder %v1562_v3, 8.507059e+37 }
 0x80a   :  { %4282 = vpow2.f32 %v4026_v13  ;;  %v1565_v13 = vor.u32 1.1754944e-38, %v1564_v51 }
 0x80c   :  { %v4275_v7 = vpop.eup %4274 }
 0x80d   :  { %v4277_v18 = vpop.eup %4276  ;;  %v1554_v5 = vmul.f32 %v4275_v7, %v1531_v63  ;;  %vm1559_vm0 = vweird.f32 %v4275_v7 }
 0x80e   :  { %v5528_v49 = vadd.f32 1.0, %v4277_v18  ;;  %v4279_v1 = vpop.eup %4278  ;;  %vm1560_vm3 = vmor %vm1558_vm2, %vm1559_vm0 }
 0x80f   :  { %v1555_v52 = vsub.f32 1.0, %v1554_v5  ;;  %v4281_v11 = vpop.eup %4280  ;;  %v1584_v35 = vmul.f32 %v4279_v1, %v5519_v42  ;;  %vm1589_vm5 = vweird.f32 %v4279_v1 }
 0x810   :  { %4284 = vrcp.f32 %v5528_v49  ;;  %v4283_v20 = vpop.eup %4282  ;;  %v5534_v23 = vadd.f32 1.0, %v4281_v11  ;;  %v1594_v11 = vand.u32 2147483648, %v5519_v42  ;;  %vm1590_vm7 = vmor %vm1588_vm6, %vm1589_vm5  ;;  %vm1633_vm2 = vweird.f32 %v5528_v49 }
 0x811   :  { %4286 = vpow2.f32 %v4029_v26  ;;  %v1556_v22 = vmul.f32 %v4275_v7, %v1555_v52  ;;  %v5537_v40 = vadd.f32 1.0, %v4283_v20  ;;  %v1585_v21 = vsub.f32 1.0, %v1584_v35 }
 0x812   :  { %4288 = vpow2.f32 %v4028_v58  ;;  %v1592_v58 = vand.u32 2147483647, %v5519_v42  ;;  %vm1543_vm6 = vweird.f32 %v5534_v23 }
 0x813   :  { %v1557_v15 = vadd.f32 %v4275_v7, %v1556_v22  ;;  %4290 = vrcp.f32 %v5534_v23  ;;  %v1586_v19 = vmul.f32 %v4279_v1, %v1585_v21  ;;  %v1595_v21 = vor.u32 1.1754944e-38, %v1594_v11 }
 0x814   :  { %4292 = vrcp.f32 %v5537_v40  ;;  %vm1593_vm8 = vcmp.eq.f32.partialorder %v1592_v58, 8.507059e+37 }
 0x815   :  { %v1561_v10 = vsel %vm1560_vm3, %v4275_v7, %v1557_v15  ;;  %4294 = vpow2.f32 %v4031_v12  ;;  %v1587_v26 = vadd.f32 %v4279_v1, %v1586_v19 }
 0x816   :  { %v5539_v25 = vpop.eup %4284  ;;  %v5551_v63 = vsel %vm1563_vm4, %v1565_v13, %v1561_v10  ;;  %v1637_v13 = vand.u32 2147483647, %v5528_v49 }
 0x817   :  { %v4287_v41 = vpop.eup %4286  ;;  %v1629_v16 = vmul.f32 %v5539_v25, %v5528_v49  ;;  %v1591_v35 = vsel %vm1590_vm7, %v4279_v1, %v1587_v26  ;;  %vm1634_vm0 = vweird.f32 %v5539_v25 }
 0x818   :  { %v4289_v6 = vpop.eup %4288  ;;  %v5545_v36 = vadd.f32 1.0, %v4287_v41  ;;  %v5571_v42 = vsel %vm1593_vm8, %v1595_v21, %v1591_v35  ;;  %vm1635_vm3 = vmor %vm1633_vm2, %vm1634_vm0  ;;  %vm1638_vm4 = vcmp.eq.f32.partialorder %v1637_v13, 8.507059e+37  ;;  %vm1573_vm0 = vweird.f32 %v5537_v40 }
 0x819   :  { %v5547_v18 = vpop.eup %4290  ;;  %v5549_v59 = vadd.f32 1.0, %v4289_v6  ;;  %v1630_v7 = vsub.f32 1.0, %v1629_v16  ;;  %v1639_v16 = vand.u32 2147483648, %v5528_v49 }
 0x81a   :  { %v5554_v52 = vpop.eup %4292  ;;  %4296 = vrcp.f32 %v5545_v36  ;;  %v1539_v20 = vmul.f32 %v5547_v18, %v5534_v23  ;;  %vm1544_vm5 = vweird.f32 %v5547_v18 }
 0x81b   :  { %4298 = vrcp.f32 %v5549_v59  ;;  %v4295_v22 = vpop.eup %4294  ;;  %v1631_v33 = vmul.f32 %v5539_v25, %v1630_v7  ;;  %v1569_v15 = vmul.f32 %v5554_v52, %v5537_v40  ;;  %v1640_v58 = vor.u32 1.1754944e-38, %v1639_v16  ;;  %vm1545_vm8 = vmor %vm1543_vm6, %vm1544_vm5 }
 0x81c   :  { %v1540_v51 = vsub.f32 1.0, %v1539_v20  ;;  %v5569_v12 = vadd.f32 1.0, %v4295_v22  ;;  %vm1574_vm7 = vweird.f32 %v5554_v52  ;;  %vm1618_vm6 = vweird.f32 %v5545_v36 }
 0x81d   :  { %v1632_v10 = vadd.f32 %v5539_v25, %v1631_v33  ;;  %v1570_v1 = vsub.f32 1.0, %v1569_v15  ;;  %v1547_v33 = vand.u32 2147483647, %v5534_v23  ;;  %vm1575_vm2 = vmor %vm1573_vm0, %vm1574_vm7  ;;  %vm1603_vm0 = vweird.f32 %v5549_v59 }
 0x81e   :  { %4300 = vrcp.f32 %v5569_v12 }
 0x81f   :  { %v1636_v26 = vsel %vm1635_vm3, %v5539_v25, %v1632_v10  ;;  %v1571_v7 = vmul.f32 %v5554_v52, %v1570_v1  ;;  %v1549_v25 = vand.u32 2147483648, %v5534_v23  ;;  %v1577_v23 = vand.u32 2147483647, %v5537_v40 }
 0x820   :  { %v5567_v41 = vpop.eup %4296  ;;  %v5592_v22 = vsel %vm1638_vm4, %v1640_v58, %v1636_v26  ;;  %vm1548_vm3 = vcmp.eq.f32.partialorder %v1547_v33, 8.507059e+37 }
 0x821   :  { %v5576_v19 = vpop.eup %4298  ;;  %v1572_v21 = vadd.f32 %v5554_v52, %v1571_v7  ;;  %v1550_v16 = vor.u32 1.1754944e-38, %v1549_v25  ;;  %vm1578_vm4 = vcmp.eq.f32.partialorder %v1577_v23, 8.507059e+37  ;;  %vm1619_vm5 = vweird.f32 %v5567_v41 }
 0x822   :  { %v1599_v11 = vmul.f32 %v5576_v19, %v5549_v59  ;;  %vm1604_vm7 = vweird.f32 %v5576_v19 }
 0x823   :  { %v1576_v13 = vsel %vm1575_vm2, %v5554_v52, %v1572_v21  ;;  %v1622_v52 = vand.u32 2147483647, %v5545_v36  ;;  %vm1605_vm2 = vmor %vm1603_vm0, %vm1604_vm7 }
 0x853   :  { %v1661_v5 = vpop.permute.xlu2 %1660 }
 0x854   :  { %v1683_v9 = vmul.f32 %v1661_v5, %v5551_v63  ;;  %v1541_v5 = vmul.f32 %v5547_v18, %v1540_v51  ;;  %v1600_v51 = vsub.f32 1.0, %v1599_v11 }
 0x856   :  { %1700 = vrot.lane.b32.xlu1 %v1683_v9, %s4562_s20  ;;  %v1614_v9 = vmul.f32 %v5567_v41, %v5545_v36  ;;  %v1542_v20 = vadd.f32 %v5547_v18, %v1541_v5  ;;  %v1601_v5 = vmul.f32 %v5576_v19, %v1600_v51 }
 0x858   :  { %v1615_v49 = vsub.f32 1.0, %v1614_v9  ;;  %v1546_v10 = vsel %vm1545_vm8, %v5547_v18, %v1542_v20  ;;  %v1602_v33 = vadd.f32 %v5576_v19, %v1601_v5  ;;  %vm1620_vm8 = vmor %vm1618_vm6, %vm1619_vm5  ;;  %vm1648_vm6 = vweird.f32 %v5569_v12 }
 0x859   :  { %v5612_v7 = vsel %vm1548_vm3, %v1550_v16, %v1546_v10  ;;  %vm1623_vm3 = vcmp.eq.f32.partialorder %v1622_v52, 8.507059e+37 }
 0x85a   :  { %v1616_v1 = vmul.f32 %v5567_v41, %v1615_v49  ;;  %v1624_v49 = vand.u32 2147483648, %v5545_v36  ;;  %v1607_v36 = vand.u32 2147483647, %v5549_v59 }
 0x85b   :  { %v1665_v3 = vpop.permute.xlu2 %1664 }
 0x85c   :  { %v1685_v6 = vmul.f32 %v1665_v3, %v5571_v42  ;;  %v5600_v3 = vpop.eup %4300  ;;  %v1625_v51 = vor.u32 1.1754944e-38, %v1624_v49 }
 0x85d   :  { %v1644_v9 = vmul.f32 %v5600_v3, %v5569_v12  ;;  %vm1649_vm5 = vweird.f32 %v5600_v3 }
 0x85e   :  { %1704 = vrot.lane.b32.xlu1 %v1685_v6, %s4562_s20  ;;  %v1579_v6 = vand.u32 2147483648, %v5537_v40  ;;  %v1617_v40 = vadd.f32 %v5567_v41, %v1616_v1  ;;  %vm1650_vm7 = vmor %vm1648_vm6, %vm1649_vm5 }
 0x85f   :  { %v1645_v25 = vsub.f32 1.0, %v1644_v9 }
 0x860   :  { %v1580_v18 = vor.u32 1.1754944e-38, %v1579_v6  ;;  %v1621_v21 = vsel %vm1620_vm8, %v5567_v41, %v1617_v40  ;;  %v1606_v6 = vsel %vm1605_vm2, %v5576_v19, %v1602_v33  ;;  %v1654_v19 = vand.u32 2147483648, %v5569_v12 }
 0x861   :  { %v1646_v10 = vmul.f32 %v5600_v3, %v1645_v25  ;;  %v5633_v1 = vsel %vm1623_vm3, %v1625_v51, %v1621_v21 }
 0x862   :  { %v5617_v20 = vsel %vm1578_vm4, %v1580_v18, %v1576_v13  ;;  %vm1608_vm4 = vcmp.eq.f32.partialorder %v1607_v36, 8.507059e+37 }
 0x863   :  { %v1671_v35 = vpop.permute.xlu2 %1670 }
 0x864   :  { %v1688_v15 = vmul.f32 %v1671_v35, %v5592_v22 }
 0x866   :  { %1710 = vrot.lane.b32.xlu1 %v1688_v15, %s4562_s20  ;;  %v1609_v15 = vand.u32 2147483648, %v5549_v59  ;;  %v1647_v59 = vadd.f32 %v5600_v3, %v1646_v10 }
 0x868   :  { %v1610_v16 = vor.u32 1.1754944e-38, %v1609_v15  ;;  %v1651_v18 = vsel %vm1650_vm7, %v5600_v3, %v1647_v59 }
 0x869   :  { %v1659_v26 = vpop.permute.xlu1 %1658 }
 0x86a   :  { %v1682_v11 = vmul.f32 %v1659_v26, %v5612_v7  ;;  %v5636_v5 = vsel %vm1608_vm4, %v1610_v16, %v1606_v6  ;;  %v1652_v26 = vand.u32 2147483647, %v5569_v12 }
 0x86b   :  { %v1663_v58 = vpop.permute.xlu0 %1662 }
 0x86c   :  { %v1684_v35 = vmul.f32 %v1663_v58, %v5617_v20  ;;  %1698 = vrot.lane.b32.xlu0 %v1682_v11, %s4562_s20  ;;  %v1655_v11 = vor.u32 1.1754944e-38, %v1654_v19  ;;  %vm1653_vm8 = vcmp.eq.f32.partialorder %v1652_v26, 8.507059e+37  ;;  %v1739_v26 = vsub.f32 1.0, %v5551_v63 }
 0x86e   :  { %1702 = vrot.lane.b32.xlu2 %v1684_v35, %s4562_s20  ;;  %v5647_v40 = vsel %vm1653_vm8, %v1655_v11, %v1651_v18  ;;  %v1738_v11 = vsub.f32 1.0, %v5612_v7 }
 0x871   :  { %v1669_v23 = vpop.permute.xlu1 %1668 }
 0x872   :  { %v1687_v13 = vmul.f32 %v1669_v23, %v5633_v1 }
 0x873   :  { %v1667_v41 = vpop.permute.xlu0 %1666 }
 0x874   :  { %v1686_v9 = vmul.f32 %v1667_v41, %v5636_v5  ;;  %1708 = vrot.lane.b32.xlu0 %v1687_v13, %s4562_s20 }
 0x876   :  { %1706 = vrot.lane.b32.xlu2 %v1686_v9, %s4562_s20 }
 0x87b   :  { %v1673_v58 = vpop.permute.xlu0 %1672 }
 0x87c   :  { %v1689_v52 = vmul.f32 %v1673_v58, %v5647_v40 }
 0x87e   :  { %1712 = vrot.lane.b32.xlu2 %v1689_v52, %s4562_s20 }
 0x8c8   :  { %v1703_v49 = vpop.permute.xlu2 %1702  ;;  %v1701_v35 = vpop.permute.xlu1 %1700 }
 0x8c9   :  { %v1724_v33 = vadd.f32 %v1703_v49, %v5516_v4  ;;  %v1723_v25 = vadd.f32 %v1701_v35, %v5503_v48  ;;  %v1787_v49 = vmul.f32 %v5551_v63, %v5426_v17  ;;  %v1788_v35 = vmul.f32 %v5617_v20, %v5428_v0 }
 0x8ca   :  { %v1743_v63 = vsub.f32 1.0, %v5633_v1 }
 0x8cb   :  { %4302 = vtanh.f32 %v1724_v33 }
 0x8cc   :  { %4304 = vtanh.f32 %v1723_v25 }
 0x8d0   :  { %v1707_v12 = vpop.permute.xlu2 %1706  ;;  %v1705_v15 = vpop.permute.xlu1 %1704 }
 0x8d1   :  { %v4303_v3 = vpop.eup %4302  ;;  %v1726_v21 = vadd.f32 %v1707_v12, %v5525_v8  ;;  %v1725_v36 = vadd.f32 %v1705_v15, %v5506_v34  ;;  %v1786_v15 = vmul.f32 %v5612_v7, %v5434_v37  ;;  %v1790_v7 = vmul.f32 %v5636_v5, %v5453_v57 }
 0x8d2   :  { %v4305_v51 = vpop.eup %4304  ;;  %1758 = vrot.lane.b32.xlu1 %v4303_v3, %s4564_s22 }
 0x8d3   :  { %4306 = vtanh.f32 %v1726_v21  ;;  %1756 = vrot.lane.b32.xlu0 %v4305_v51, %s4564_s22  ;;  %v1742_v51 = vsub.f32 1.0, %v5636_v5 }
 0x8d4   :  { %4308 = vtanh.f32 %v1725_v36 }
 0x8d8   :  { %v1713_v6 = vpop.permute.xlu2 %1712  ;;  %v1711_v4 = vpop.permute.xlu1 %1710 }
 0x8d9   :  { %v4307_v10 = vpop.eup %4306  ;;  %v1729_v48 = vadd.f32 %v1713_v6, %v5532_v39  ;;  %v1728_v23 = vadd.f32 %v1711_v4, %v5509_v50  ;;  %v1741_v6 = vsub.f32 1.0, %v5571_v42 }
 0x8da   :  { %v4309_v16 = vpop.eup %4308  ;;  %1762 = vrot.lane.b32.xlu1 %v4307_v10, %s4564_s22 }
 0x8db   :  { %4310 = vtanh.f32 %v1729_v48  ;;  %1760 = vrot.lane.b32.xlu0 %v4309_v16, %s4564_s22 }
 0x8dc   :  { %4312 = vtanh.f32 %v1728_v23 }
 0x8de   :  { %v1699_v34 = vpop.permute.xlu0 %1698 }
 0x8df   :  { %v1722_v8 = vadd.f32 %v1699_v34, %v5512_v29  ;;  %v1740_v29 = vsub.f32 1.0, %v5617_v20  ;;  %v1789_v34 = vmul.f32 %v5571_v42, %v5449_v54 }
 0x8e1   :  { %v4311_v13 = vpop.eup %4310  ;;  %4314 = vtanh.f32 %v1722_v8 }
 0x8e2   :  { %v4313_v41 = vpop.eup %4312  ;;  %1768 = vrot.lane.b32.xlu1 %v4311_v13, %s4564_s22 }
 0x8e3   :  { %1766 = vrot.lane.b32.xlu0 %v4313_v41, %s4564_s22  ;;  %v1791_v41 = vmul.f32 %v5633_v1, %v5451_v62 }
 0x8e6   :  { %v1709_v39 = vpop.permute.xlu0 %1708 }
 0x8e7   :  { %v4315_v9 = vpop.eup %4314  ;;  %v1727_v50 = vadd.f32 %v1709_v39, %v5521_v43 }
 0x8e8   :  { %1754 = vrot.lane.b32.xlu2 %v4315_v9, %s4564_s22 }
 0x8e9   :  { %4316 = vtanh.f32 %v1727_v50 }
 0x8ef   :  { %v4317_v59 = vpop.eup %4316 }
 0x8f0   :  { %1764 = vrot.lane.b32.xlu2 %v4317_v59, %s4564_s22 }
 0x942   :  { %v1755_v19 = vpop.permute.xlu2 %1754 }
 0x943   :  { %v1778_v33 = vmul.f32 %v1755_v19, %v1738_v11 }
 0x944   :  { %v1759_v18 = vpop.permute.xlu1 %1758 }
 0x945   :  { %v1757_v58 = vpop.permute.xlu0 %1756  ;;  %v1780_v52 = vmul.f32 %v1759_v18, %v1740_v29  ;;  %v5682_v36 = vadd.f32 %v1786_v15, %v1778_v33  ;;  %v1793_v33 = vmul.f32 %v5647_v40, %v5471_v46 }
 0x946   :  { %v1779_v43 = vmul.f32 %v1757_v58, %v1739_v26  ;;  %v1745_v26 = vsub.f32 1.0, %v5647_v40  ;;  %v1744_v58 = vsub.f32 1.0, %v5592_v22 }
 0x947   :  { %v5676_v12 = vadd.f32 %v1788_v35, %v1780_v52  ;;  %v1850_v13 = vpack.c.bf16 %v5682_v36, %v5682_v36 }
 0x948   :  { %v5674_v25 = vadd.f32 %v1787_v49, %v1779_v43 }
 0x949   :  { %v1852_v20 = vpack.c.bf16 %v5676_v12, %v5676_v12  ;;  %v1866_v29 = vunpack.c.l.b16 %v1850_v13 }
 0x94a   :  { %v1851_v3 = vpack.c.bf16 %v5674_v25, %v5674_v25  ;;  %v1765_v21 = vpop.permute.xlu2 %1764 }
 0x94b   :  { %v1783_v48 = vmul.f32 %v1765_v21, %v1743_v63  ;;  %v1868_v9 = vunpack.c.l.b16 %v1852_v20  ;;  %v1792_v21 = vmul.f32 %v5592_v22, %v5469_v53 }
 0x94c   :  { %v1763_v4 = vpop.permute.xlu1 %1762  ;;  %v1867_v10 = vunpack.c.l.b16 %v1851_v3 }
 0x94d   :  { %v1761_v23 = vpop.permute.xlu0 %1760  ;;  %v1782_v16 = vmul.f32 %v1763_v4, %v1742_v51  ;;  %v5701_v19 = vadd.f32 %v1791_v41, %v1783_v48  ;;  %v1876_v18 = vrot.slane %v1868_v9, 6 }
 0x94e   :  { %v1781_v8 = vmul.f32 %v1761_v23, %v1741_v6  ;;  %v1874_v59 = vrot.slane %v1867_v10, 7 }
 0x94f   :  { %v5697_v39 = vadd.f32 %v1790_v7, %v1782_v16  ;;  %7191 = vst [vmem:[#allocation18_spill] sm:$0xff] %v5701_v19  ;;  %v1855_v43 = vpack.c.bf16 %v5701_v19, %v5701_v19 }
 0x950   :  { %v5699_v50 = vadd.f32 %v1789_v34, %v1781_v8  ;;  %v1875_v49 = vsel %vm593_vm9, %v1874_v59, %v1866_v29 }
 0x951   :  { %7190 = vst [vmem:[#allocation17_spill] sm:$0xff] %v5697_v39  ;;  %v1854_v5 = vpack.c.bf16 %v5697_v39, %v5697_v39  ;;  %v1877_v20 = vsel %vm596_vm10, %v1876_v18, %v1875_v49  ;;  %v1871_v10 = vunpack.c.l.b16 %v1855_v43 }
 0x952   :  { %v1853_v42 = vpack.c.bf16 %v5699_v50, %v5699_v50 }
 0x953   :  { %v1870_v1 = vunpack.c.l.b16 %v1854_v5  ;;  %v1882_v34 = vrot.slane %v1871_v10, 3 }
 0x954   :  { %v1869_v11 = vunpack.c.l.b16 %v1853_v42  ;;  %v1769_v52 = vpop.permute.xlu1 %1768 }
 0x955   :  { %v1767_v35 = vpop.permute.xlu0 %1766  ;;  %v1785_v15 = vmul.f32 %v1769_v52, %v1745_v26  ;;  %v1880_v6 = vrot.slane %v1870_v1, 4  ;;  %v5735_v26 = vld [vmem:[%s7131_s7] ss:$0 sm:$0xff] }
 0x956   :  { %v1878_v3 = vrot.slane %v1869_v11, 5  ;;  %v1784_v63 = vmul.f32 %v1767_v35, %v1744_v58 }
 0x957   :  { %v5716_v51 = vadd.f32 %v1793_v33, %v1785_v15  ;;  %v5746_v15 = vld [vmem:[#allocation3 + $0x4] sm:$0x1] }
 0x958   :  { %v5719_v4 = vadd.f32 %v1792_v21, %v1784_v63  ;;  %v1879_v23 = vsel %vm599_vm11, %v1878_v3, %v1877_v20  ;;  %v5749_v63 = vld [vmem:[#allocation3 + $0x2c] sm:$0x1] }
 0x959   :  { %7192 = vst [vmem:[#allocation19_spill] sm:$0xff] %v5716_v51  ;;  %v1857_v48 = vpack.c.bf16 %v5716_v51, %v5716_v51  ;;  %v1881_v22 = vsel %vm602_vm12, %v1880_v6, %v1879_v23 }
 0x95a   :  { %7193 = vst [vmem:[#allocation20_spill] sm:$0xff] %v5719_v4  ;;  %v1856_v40 = vpack.c.bf16 %v5719_v4, %v5719_v4  ;;  %v1883_v41 = vsel %vm605_vm13, %v1882_v34, %v1881_v22 }
 0x95b   :  { %v1873_v7 = vunpack.c.l.b16 %v1857_v48 }
 0x95c   :  { %v1872_v16 = vunpack.c.l.b16 %v1856_v40  ;;  %v5752_v40 = vld [vmem:[#allocation3 + $0x14] sm:$0x1] }
 0x95d   :  { %v1886_v8 = vrot.slane %v1873_v7, 1 }
 0x95e   :  { %v1884_v13 = vrot.slane %v1872_v16, 2  ;;  %v5755_v16 = vld [vmem:[#allocation3 + $0xc] sm:$0x1] }
 0x960   :  { %v1885_v9 = vsel %vm608_vm14, %v1884_v13, %v1883_v41 }
 0x961   :  { %v1887_v59 = vsel %vm611_vm15, %v1886_v8, %v1885_v9 }
 0x962   :  { %v1888_v5 = vpack.c.b16 %v1887_v59, %v1887_v59  ;;  %v5761_v59 = vld [vmem:[#allocation3 + $0x24] sm:$0x1] }
 0x964   :  { %1889 = vrot.lane.b32.xlu2 %v1888_v5, %s4564_s22 }
 0x9be   :  { %v1890_v42 = vpop.permute.xlu2 %1889 }
 0x9bf   :  { %4032 = vmatmul.msk.bf16.vlgmr.msra.gmra.mxu2 %vm43_vm1, %v1890_v42  ;;  %v5764_v42 = vld [vmem:[#allocation3 + $0x1c] sm:$0x1] }
 0xa42   :  { %v1903_v29 = vpop.f32.mrf.mxu2 }
 0xa43   :  { %v1904_v18 = vadd.f32 %v5735_v26, %v1903_v29 }
 0xa45   :  { %2083 = vrot.lane.b32.xlu2 %v1904_v18, %s4562_s20  ;;  %v1909_v11 = vrot.slane %v1904_v18, 2  ;;  %v1908_v1 = vrot.slane %v1904_v18, 1  ;;  %v1912_v52 = vrot.slane %v1904_v18, 5  ;;  %v1911_v49 = vrot.slane %v1904_v18, 4 }
 0xa46   :  { %v1910_v43 = vrot.slane %v1904_v18, 3  ;;  %v1914_v35 = vrot.slane %v1904_v18, 7  ;;  %v1913_v33 = vrot.slane %v1904_v18, 6  ;;  %v1923_v3 = vadd.f32 %v1904_v18, %v5746_v15 }
 0xa47   :  { %2087 = vrot.lane.b32.xlu1 %v1909_v11, %s4562_s20  ;;  %2085 = vrot.lane.b32.xlu0 %v1908_v1, %s4562_s20  ;;  %v1928_v20 = vadd.f32 %v1912_v52, %v5749_v63  ;;  %v1925_v7 = vadd.f32 %v1909_v11, %v5752_v40  ;;  %v1924_v34 = vadd.f32 %v1908_v1, %v5755_v16 }
 0xa48   :  { %v4033_v21 = vmul.f32 -1.442695, %v1923_v3  ;;  %v1927_v5 = vadd.f32 %v1911_v49, %v5761_v59  ;;  %v1926_v29 = vadd.f32 %v1910_v43, %v5764_v42 }
 0xa49   :  { %v4038_v6 = vmul.f32 -1.442695, %v1928_v20  ;;  %v4035_v13 = vmul.f32 -1.442695, %v1925_v7  ;;  %v4034_v41 = vmul.f32 -1.442695, %v1924_v34 }
 0xa4a   :  { %v1905_v58 = vpop.f32.mrf.mxu2  ;;  %4318 = vpow2.f32 %v4033_v21  ;;  %v4036_v1 = vmul.f32 -1.442695, %v1926_v29  ;;  %v5768_v20 = vld [vmem:[#allocation3 + $0x3c] sm:$0x1] }
 0xa4b   :  { %4320 = vpow2.f32 %v4038_v6  ;;  %v4037_v58 = vmul.f32 -1.442695, %v1927_v5 }
 0xa4d   :  { %2093 = vrot.lane.b32.xlu2 %v1912_v52, %s4562_s20 }
 0xa4f   :  { %2091 = vrot.lane.b32.xlu1 %v1911_v49, %s4562_s20  ;;  %2089 = vrot.lane.b32.xlu0 %v1910_v43, %s4562_s20  ;;  %v1930_v49 = vadd.f32 %v1914_v35, %v5768_v20 }
 0xa50   :  { %v4319_v10 = vpop.eup %4318 }
 0xa51   :  { %v1955_v48 = vadd.f32 1.0, %v4319_v10  ;;  %v4321_v23 = vpop.eup %4320  ;;  %v5771_v10 = vld [vmem:[#allocation3 + $0x34] sm:$0x1] }
 0xa52   :  { %v5757_v22 = vadd.f32 1.0, %v4321_v23  ;;  %v1929_v43 = vadd.f32 %v1913_v33, %v5771_v10 }
 0xa53   :  { %4322 = vrcp.f32 %v1955_v48  ;;  %vm1968_vm2 = vweird.f32 %v1955_v48  ;;  %v1972_v5 = vand.u32 2147483647, %v1955_v48 }
 0xa54   :  { %4324 = vrcp.f32 %v5757_v22  ;;  %v4039_v29 = vmul.f32 -1.442695, %v1929_v43  ;;  %vm2043_vm6 = vweird.f32 %v5757_v22 }
 0xa55   :  { %4326 = vpow2.f32 %v4035_v13  ;;  %vm1973_vm4 = vcmp.eq.f32.partialorder %v1972_v5, 8.507059e+37 }
 0xa56   :  { %4328 = vpow2.f32 %v4034_v41  ;;  %v1974_v41 = vand.u32 2147483648, %v1955_v48 }
 0xa57   :  { %2097 = vrot.lane.b32.xlu1 %v1914_v35, %s4562_s20  ;;  %2095 = vrot.lane.b32.xlu0 %v1913_v33, %s4562_s20  ;;  %4330 = vpow2.f32 %v4037_v58 }
 0xa58   :  { %4332 = vpow2.f32 %v4036_v1  ;;  %v1975_v33 = vor.u32 1.1754944e-38, %v1974_v41 }
 0xa59   :  { %v4323_v8 = vpop.eup %4322 }
 0xa5a   :  { %v1964_v9 = vmul.f32 %v4323_v8, %v1955_v48  ;;  %v4325_v11 = vpop.eup %4324  ;;  %vm1969_vm0 = vweird.f32 %v4323_v8 }
 0xa5b   :  { %v2039_v3 = vmul.f32 %v4325_v11, %v5757_v22  ;;  %v4327_v21 = vpop.eup %4326  ;;  %vm1970_vm3 = vmor %vm1968_vm2, %vm1969_vm0  ;;  %vm2044_vm5 = vweird.f32 %v4325_v11 }
 0xa5c   :  { %v1965_v18 = vsub.f32 1.0, %v1964_v9  ;;  %v4329_v6 = vpop.eup %4328  ;;  %v5774_v23 = vadd.f32 1.0, %v4327_v21  ;;  %v4040_v9 = vmul.f32 -1.442695, %v1930_v49  ;;  %vm2045_vm7 = vmor %vm2043_vm6, %vm2044_vm5 }
 0xa5d   :  { %v2040_v34 = vsub.f32 1.0, %v2039_v3  ;;  %v5776_v13 = vadd.f32 1.0, %v4329_v6 }
 0xa5e   :  { %v1966_v52 = vmul.f32 %v4323_v8, %v1965_v18  ;;  %v4331_v18 = vpop.eup %4330  ;;  %4334 = vrcp.f32 %v5774_v23  ;;  %v2004_v53 = vand.u32 2147483648, %v5774_v23 }
 0xa5f   :  { %v2041_v58 = vmul.f32 %v4325_v11, %v2040_v34  ;;  %v4333_v1 = vpop.eup %4332  ;;  %4336 = vrcp.f32 %v5776_v13  ;;  %v1989_v46 = vand.u32 2147483648, %v5776_v13  ;;  %vm1983_vm5 = vweird.f32 %v5776_v13 }
 0xa60   :  { %v1967_v7 = vadd.f32 %v4323_v8, %v1966_v52  ;;  %4338 = vpow2.f32 %v4040_v9  ;;  %v5780_v52 = vadd.f32 1.0, %v4331_v18  ;;  %v5784_v48 = vadd.f32 1.0, %v4333_v1 }
 0xa61   :  { %4340 = vpow2.f32 %v4039_v29  ;;  %v2042_v49 = vadd.f32 %v4325_v11, %v2041_v58  ;;  %v2005_v61 = vor.u32 1.1754944e-38, %v2004_v53  ;;  %v1990_v31 = vor.u32 1.1754944e-38, %v1989_v46 }
 0xa62   :  { %v1971_v35 = vsel %vm1970_vm3, %v4323_v8, %v1967_v7  ;;  %v2049_v8 = vand.u32 2147483648, %v5757_v22  ;;  %v2047_v7 = vand.u32 2147483647, %v5757_v22  ;;  %4342 = vrcp.f32 %v5780_v52 }
 0xa63   :  { %v5782_v21 = vsel %vm1973_vm4, %v1975_v33, %v1971_v35  ;;  %4344 = vrcp.f32 %v5784_v48  ;;  %v2046_v9 = vsel %vm2045_vm7, %v4325_v11, %v2042_v49  ;;  %vm1998_vm3 = vweird.f32 %v5774_v23 }
 0xa64   :  { %v4335_v43 = vpop.eup %4334  ;;  %v2050_v29 = vor.u32 1.1754944e-38, %v2049_v8  ;;  %vm2048_vm8 = vcmp.eq.f32.partialorder %v2047_v7, 8.507059e+37 }
 0xa65   :  { %v4337_v34 = vpop.eup %4336  ;;  %v1994_v18 = vmul.f32 %v4335_v43, %v5774_v23  ;;  %vm1999_vm0 = vweird.f32 %v4335_v43 }
 0xa66   :  { %v4339_v41 = vpop.eup %4338  ;;  %v1979_v35 = vmul.f32 %v4337_v34, %v5776_v13  ;;  %v5795_v1 = vsel %vm2048_vm8, %v2050_v29, %v2046_v9  ;;  %vm1984_vm2 = vweird.f32 %v4337_v34  ;;  %vm5820_vm4 = vmor %vm1998_vm3, %vm1999_vm0  ;;  %vm2028_vm3 = vweird.f32 %v5780_v52 }
 0xa67   :  { %v4341_v5 = vpop.eup %4340  ;;  %v5797_v33 = vadd.f32 1.0, %v4339_v41  ;;  %v1995_v11 = vsub.f32 1.0, %v1994_v18  ;;  %vm5827_vm6 = vmor %vm1983_vm5, %vm1984_vm2  ;;  %vm2013_vm5 = vweird.f32 %v5784_v48 }
 0xa68   :  { %v1980_v49 = vsub.f32 1.0, %v1979_v35 }
 0xa69   :  { %4346 = vrcp.f32 %v5797_v33  ;;  %v1996_v41 = vmul.f32 %v4335_v43, %v1995_v11  ;;  %v2002_v11 = vand.u32 2147483647, %v5774_v23 }
 0xa6a   :  { %v1981_v9 = vmul.f32 %v4337_v34, %v1980_v49  ;;  %v1987_v49 = vand.u32 2147483647, %v5776_v13 }
 0xa6b   :  { %vm2003_vm7 = vcmp.eq.f32.partialorder %v2002_v11, 8.507059e+37 }
 0xa6c   :  { %v1982_v18 = vadd.f32 %v4337_v34, %v1981_v9  ;;  %vm1988_vm8 = vcmp.eq.f32.partialorder %v1987_v49, 8.507059e+37  ;;  %v2034_v49 = vand.u32 2147483648, %v5780_v52 }
 0xa6e   :  { %v1986_v45 = vsel %vm5827_vm6, %v4337_v34, %v1982_v18 }
 0xa9f   :  { %v2084_v3 = vpop.permute.xlu2 %2083 }
 0xaa0   :  { %v2107_v6 = vmul.f32 %v2084_v3, %v5782_v21  ;;  %v5800_v3 = vpop.eup %4342 }
 0xaa1   :  { %v5804_v56 = vpop.eup %4344  ;;  %v2024_v8 = vmul.f32 %v5800_v3, %v5780_v52  ;;  %vm2029_vm0 = vweird.f32 %v5800_v3 }
 0xaa2   :  { %2123 = vrot.lane.b32.xlu1 %v2107_v6, %s4562_s20  ;;  %v5802_v6 = vadd.f32 1.0, %v4341_v5  ;;  %v2009_v7 = vmul.f32 %v5804_v56, %v5784_v48  ;;  %vm2014_vm2 = vweird.f32 %v5804_v56 }
 0xaa3   :  { %v2025_v5 = vsub.f32 1.0, %v2024_v8  ;;  %vm2015_vm6 = vmor %vm2013_vm5, %vm2014_vm2 }
 0xaa4   :  { %4348 = vrcp.f32 %v5802_v6  ;;  %v2010_v29 = vsub.f32 1.0, %v2009_v7  ;;  %vm2058_vm5 = vweird.f32 %v5802_v6 }
 0xaa5   :  { %v2026_v7 = vmul.f32 %v5800_v3, %v2025_v5 }
 0xaa7   :  { %v2094_v58 = vpop.permute.xlu2 %2093  ;;  %v2027_v34 = vadd.f32 %v5800_v3, %v2026_v7 }
 0xaa8   :  { %v2112_v22 = vmul.f32 %v2094_v58, %v5795_v1  ;;  %v5813_v58 = vpop.eup %4346 }
 0xaa9   :  { %v2069_v23 = vmul.f32 %v5813_v58, %v5797_v33 }
 0xaaa   :  { %2133 = vrot.lane.b32.xlu1 %v2112_v22, %s4562_s20  ;;  %v1997_v22 = vadd.f32 %v4335_v43, %v1996_v41  ;;  %v5815_v35 = vpop.eup %4348  ;;  %v2011_v41 = vmul.f32 %v5804_v56, %v2010_v29  ;;  %v5845_v29 = vsel %vm1988_vm8, %v1990_v31, %v1986_v45  ;;  %v2032_v45 = vand.u32 2147483647, %v5780_v52 }
 0xaab   :  { %v2054_v13 = vmul.f32 %v5815_v35, %v5802_v6  ;;  %v2070_v46 = vsub.f32 1.0, %v2069_v23  ;;  %v2017_v31 = vand.u32 2147483647, %v5784_v48  ;;  %v2035_v23 = vor.u32 1.1754944e-38, %v2034_v49 }
 0xaac   :  { %v2001_v9 = vsel %vm5820_vm4, %v4335_v43, %v1997_v22  ;;  %v2012_v22 = vadd.f32 %v5804_v56, %v2011_v41  ;;  %vm2030_vm4 = vmor %vm2028_vm3, %vm2029_vm0  ;;  %vm2074_vm0 = vweird.f32 %v5813_v58  ;;  %vm2059_vm2 = vweird.f32 %v5815_v35 }
 0xaad   :  { %v5843_v14 = vsel %vm2003_vm7, %v2005_v61, %v2001_v9  ;;  %v2055_v11 = vsub.f32 1.0, %v2054_v13  ;;  %v2019_v61 = vand.u32 2147483648, %v5784_v48  ;;  %v2031_v8 = vsel %vm2030_vm4, %v5800_v3, %v2027_v34 }
 0xaae   :  { %v2016_v7 = vsel %vm2015_vm6, %v5804_v56, %v2012_v22  ;;  %v2071_v41 = vmul.f32 %v5813_v58, %v2070_v46  ;;  %vm2033_vm7 = vcmp.eq.f32.partialorder %v2032_v45, 8.507059e+37  ;;  %vm2018_vm8 = vcmp.eq.f32.partialorder %v2017_v31, 8.507059e+37  ;;  %vm2060_vm6 = vmor %vm2058_vm5, %vm2059_vm2 }
 0xaaf   :  { %v2056_v9 = vmul.f32 %v5815_v35, %v2055_v11  ;;  %v2020_v13 = vor.u32 1.1754944e-38, %v2019_v61  ;;  %v5867_v52 = vsel %vm2033_vm7, %v2035_v23, %v2031_v8  ;;  %vm2073_vm3 = vweird.f32 %v5797_v33 }
 0xab0   :  { %v2072_v34 = vadd.f32 %v5813_v58, %v2071_v41  ;;  %vm2075_vm4 = vmor %vm2073_vm3, %vm2074_vm0  ;;  %v2077_v46 = vand.u32 2147483647, %v5797_v33  ;;  %v2062_v11 = vand.u32 2147483647, %v5802_v6 }
 0xab1   :  { %v2057_v22 = vadd.f32 %v5815_v35, %v2056_v9 }
 0xab2   :  { %v2076_v49 = vsel %vm2075_vm4, %v5813_v58, %v2072_v34  ;;  %vm2078_vm7 = vcmp.eq.f32.partialorder %v2077_v46, 8.507059e+37 }
 0xab3   :  { %v2061_v61 = vsel %vm2060_vm6, %v5815_v35, %v2057_v22 }
 0xab9   :  { %v2088_v5 = vpop.permute.xlu1 %2087  ;;  %v2086_v43 = vpop.permute.xlu0 %2085 }
 0xaba   :  { %v2109_v18 = vmul.f32 %v2088_v5, %v5843_v14  ;;  %v2108_v53 = vmul.f32 %v2086_v43, %v5845_v29  ;;  %v5869_v43 = vsel %vm2018_vm8, %v2020_v13, %v2016_v7  ;;  %vm2063_vm8 = vcmp.eq.f32.partialorder %v2062_v11, 8.507059e+37 }
 0xabc   :  { %2127 = vrot.lane.b32.xlu0 %v2109_v18, %s4562_s20  ;;  %2125 = vrot.lane.b32.xlu2 %v2108_v53, %s4562_s20  ;;  %v2079_v18 = vand.u32 2147483648, %v5797_v33  ;;  %v2064_v53 = vand.u32 2147483648, %v5802_v6 }
 0xabe   :  { %v2080_v45 = vor.u32 1.1754944e-38, %v2079_v18  ;;  %v2065_v31 = vor.u32 1.1754944e-38, %v2064_v53 }
 0xac0   :  { %v5887_v8 = vsel %vm2078_vm7, %v2080_v45, %v2076_v49  ;;  %v5889_v41 = vsel %vm2063_vm8, %v2065_v31, %v2061_v61 }
 0xac1   :  { %v2092_v5 = vpop.permute.xlu1 %2091  ;;  %v2090_v48 = vpop.permute.xlu0 %2089 }
 0xac2   :  { %v2111_v56 = vmul.f32 %v2092_v5, %v5867_v52  ;;  %v2110_v3 = vmul.f32 %v2090_v48, %v5869_v43 }
 0xac4   :  { %2131 = vrot.lane.b32.xlu0 %v2111_v56, %s4562_s20  ;;  %2129 = vrot.lane.b32.xlu2 %v2110_v3, %s4562_s20 }
 0xac9   :  { %v2098_v7 = vpop.permute.xlu1 %2097  ;;  %v2096_v9 = vpop.permute.xlu0 %2095 }
 0xaca   :  { %v2114_v33 = vmul.f32 %v2098_v7, %v5887_v8  ;;  %v2113_v23 = vmul.f32 %v2096_v9, %v5889_v41  ;;  %v2164_v9 = vsub.f32 1.0, %v5845_v29 }
 0xacc   :  { %2137 = vrot.lane.b32.xlu0 %v2114_v33, %s4562_s20  ;;  %2135 = vrot.lane.b32.xlu2 %v2113_v23, %s4562_s20  ;;  %v2165_v33 = vsub.f32 1.0, %v5843_v14 }
 0xb14   :  { %v2124_v6 = vpop.permute.xlu1 %2123 }
 0xb15   :  { %v2147_v58 = vadd.f32 %v2124_v6, %v5746_v15 }
 0xb16   :  { %v2126_v35 = vpop.permute.xlu2 %2125 }
 0xb17   :  { %4350 = vtanh.f32 %v2147_v58  ;;  %v2148_v13 = vadd.f32 %v2126_v35, %v5755_v16  ;;  %v2212_v58 = vmul.f32 %v5845_v29, %v5674_v25  ;;  %v2168_v29 = vsub.f32 1.0, %v5795_v1 }
 0xb19   :  { %4352 = vtanh.f32 %v2148_v13 }
 0xb1c   :  { %v2134_v5 = vpop.permute.xlu1 %2133 }
 0xb1d   :  { %v4351_v48 = vpop.eup %4350  ;;  %v2152_v56 = vadd.f32 %v2134_v5, %v5749_v63 }
 0xb1e   :  { %2179 = vrot.lane.b32.xlu0 %v4351_v48, %s4564_s22  ;;  %v2130_v3 = vpop.permute.xlu2 %2129 }
 0xb1f   :  { %v4353_v34 = vpop.eup %4352  ;;  %4354 = vtanh.f32 %v2152_v56  ;;  %v2150_v22 = vadd.f32 %v2130_v3, %v5764_v42  ;;  %v2211_v3 = vmul.f32 %v5782_v21, %v5682_v36 }
 0xb20   :  { %2181 = vrot.lane.b32.xlu1 %v4353_v34, %s4564_s22 }
 0xb21   :  { %4356 = vtanh.f32 %v2150_v22 }
 0xb25   :  { %v4355_v15 = vpop.eup %4354 }
 0xb26   :  { %2189 = vrot.lane.b32.xlu0 %v4355_v15, %s4564_s22  ;;  %v2136_v18 = vpop.permute.xlu2 %2135 }
 0xb27   :  { %v4357_v16 = vpop.eup %4356  ;;  %v2153_v53 = vadd.f32 %v2136_v18, %v5771_v10  ;;  %v2166_v18 = vsub.f32 1.0, %v5869_v43 }
 0xb28   :  { %2185 = vrot.lane.b32.xlu1 %v4357_v16, %s4564_s22 }
 0xb29   :  { %4358 = vtanh.f32 %v2153_v53 }
 0xb2e   :  { %v2128_v63 = vpop.permute.xlu0 %2127 }
 0xb2f   :  { %v4359_v46 = vpop.eup %4358  ;;  %v2149_v11 = vadd.f32 %v2128_v63, %v5752_v40 }
 0xb30   :  { %2191 = vrot.lane.b32.xlu1 %v4359_v46, %s4564_s22  ;;  %v2167_v46 = vsub.f32 1.0, %v5867_v52 }
 0xb31   :  { %4360 = vtanh.f32 %v2149_v11 }
 0xb36   :  { %v2132_v42 = vpop.permute.xlu0 %2131 }
 0xb37   :  { %v4361_v49 = vpop.eup %4360  ;;  %v2151_v61 = vadd.f32 %v2132_v42, %v5761_v59  ;;  %v2163_v59 = vsub.f32 1.0, %v5782_v21  ;;  %v2214_v21 = vmul.f32 %v5869_v43, %v5699_v50 }
 0xb38   :  { %2183 = vrot.lane.b32.xlu2 %v4361_v49, %s4564_s22 }
 0xb39   :  { %4362 = vtanh.f32 %v2151_v61  ;;  %v2216_v61 = vmul.f32 %v5795_v1, %v5701_v19 }
 0xb3e   :  { %v2138_v45 = vpop.permute.xlu0 %2137 }
 0xb3f   :  { %v4363_v31 = vpop.eup %4362  ;;  %v2154_v10 = vadd.f32 %v2138_v45, %v5768_v20  ;;  %v2213_v20 = vmul.f32 %v5843_v14, %v5676_v12  ;;  %v2215_v45 = vmul.f32 %v5867_v52, %v5697_v39  ;;  %v2169_v52 = vsub.f32 1.0, %v5889_v41 }
 0xb40   :  { %2187 = vrot.lane.b32.xlu2 %v4363_v31, %s4564_s22 }
 0xb41   :  { %4364 = vtanh.f32 %v2154_v10 }
 0xb47   :  { %v4365_v7 = vpop.eup %4364 }
 0xb48   :  { %2193 = vrot.lane.b32.xlu2 %v4365_v7, %s4564_s22 }
 0xb90   :  { %v2180_v40 = vpop.permute.xlu0 %2179 }
 0xb91   :  { %v2203_v5 = vmul.f32 %v2180_v40, %v2163_v59 }
 0xb92   :  { %v2182_v23 = vpop.permute.xlu1 %2181  ;;  %v2184_v6 = vpop.permute.xlu2 %2183 }
 0xb93   :  { %v2204_v35 = vmul.f32 %v2182_v23, %v2164_v9  ;;  %v2205_v13 = vmul.f32 %v2184_v6, %v2165_v33  ;;  %v5926_v22 = vadd.f32 %v2211_v3, %v2203_v5  ;;  %v2218_v3 = vmul.f32 %v5887_v8, %v5716_v51 }
 0xb95   :  { %v5918_v48 = vadd.f32 %v2212_v58, %v2204_v35  ;;  %v5920_v56 = vadd.f32 %v2213_v20, %v2205_v13  ;;  %v2275_v49 = vpack.c.bf16 %v5926_v22, %v5926_v22  ;;  %v2170_v58 = vsub.f32 1.0, %v5887_v8 }
 0xb97   :  { %v2276_v34 = vpack.c.bf16 %v5918_v48, %v5918_v48  ;;  %v2277_v14 = vpack.c.bf16 %v5920_v56, %v5920_v56  ;;  %v2291_v59 = vunpack.c.l.b16 %v2275_v49 }
 0xb98   :  { %v2190_v15 = vpop.permute.xlu0 %2189 }
 0xb99   :  { %v2292_v16 = vunpack.c.l.b16 %v2276_v34  ;;  %v2208_v53 = vmul.f32 %v2190_v15, %v2168_v29  ;;  %v2293_v10 = vunpack.c.l.b16 %v2277_v14  ;;  %v2217_v15 = vmul.f32 %v5889_v41, %v5719_v4 }
 0xb9a   :  { %v2186_v63 = vpop.permute.xlu1 %2185  ;;  %v2188_v11 = vpop.permute.xlu2 %2187 }
 0xb9b   :  { %v2206_v42 = vmul.f32 %v2186_v63, %v2166_v18  ;;  %v2207_v31 = vmul.f32 %v2188_v11, %v2167_v46  ;;  %v2299_v40 = vrot.slane %v2292_v16, 7  ;;  %v5943_v9 = vadd.f32 %v2216_v61, %v2208_v53 }
 0xb9c   :  { %v2301_v1 = vrot.slane %v2293_v10, 6 }
 0xb9d   :  { %v5941_v7 = vadd.f32 %v2214_v21, %v2206_v42  ;;  %7199 = vst [vmem:[#allocation22_spill] sm:$0xff] %v5943_v9  ;;  %v5945_v33 = vadd.f32 %v2215_v45, %v2207_v31  ;;  %v2300_v35 = vsel %vm593_vm9, %v2299_v40, %v2291_v59  ;;  %v2280_v20 = vpack.c.bf16 %v5943_v9, %v5943_v9 }
 0xb9e   :  { %v2302_v16 = vsel %vm596_vm10, %v2301_v1, %v2300_v35 }
 0xb9f   :  { %7198 = vst [vmem:[#allocation21_spill] sm:$0xff] %v5941_v7  ;;  %v2278_v43 = vpack.c.bf16 %v5941_v7, %v5941_v7  ;;  %v2279_v23 = vpack.c.bf16 %v5945_v33, %v5945_v33  ;;  %v2296_v11 = vunpack.c.l.b16 %v2280_v20 }
 0xba0   :  { %7200 = vst [vmem:[#allocation23_spill] sm:$0xff] %v5945_v33 }
 0xba1   :  { %v2294_v6 = vunpack.c.l.b16 %v2278_v43  ;;  %v2295_v13 = vunpack.c.l.b16 %v2279_v23  ;;  %v2307_v45 = vrot.slane %v2296_v11, 3 }
 0xba2   :  { %v2192_v5 = vpop.permute.xlu1 %2191  ;;  %v2194_v34 = vpop.permute.xlu2 %2193 }
 0xba3   :  { %v2303_v29 = vrot.slane %v2294_v6, 5  ;;  %v2209_v14 = vmul.f32 %v2192_v5, %v2169_v52  ;;  %v2210_v18 = vmul.f32 %v2194_v34, %v2170_v58  ;;  %v2305_v53 = vrot.slane %v2295_v13, 4 }
 0xba5   :  { %v5961_v63 = vadd.f32 %v2217_v15, %v2209_v14  ;;  %v5963_v46 = vadd.f32 %v2218_v3, %v2210_v18  ;;  %v2304_v21 = vsel %vm599_vm11, %v2303_v29, %v2302_v16  ;;  %v5995_v29 = vld [vmem:[#allocation3 + $0x15] sm:$0x1]  ;;  %v5998_v18 = vld [vmem:[#allocation3 + $0x25] sm:$0x1] }
 0xba6   :  { %v2306_v61 = vsel %vm602_vm12, %v2305_v53, %v2304_v21  ;;  %v6001_v21 = vld [vmem:[#allocation3 + $0x3d] sm:$0x1] }
 0xba7   :  { %7201 = vst [vmem:[#allocation24_spill] sm:$0xff] %v5961_v63  ;;  %v2281_v8 = vpack.c.bf16 %v5961_v63, %v5961_v63  ;;  %v2282_v42 = vpack.c.bf16 %v5963_v46, %v5963_v46  ;;  %v2308_v40 = vsel %vm605_vm13, %v2307_v45, %v2306_v61 }
 0xba8   :  { %7202 = vst [vmem:[#allocation25_spill] sm:$0xff] %v5963_v46 }
 0xba9   :  { %v2297_v49 = vunpack.c.l.b16 %v2281_v8  ;;  %v2298_v41 = vunpack.c.l.b16 %v2282_v42 }
 0xbab   :  { %v2309_v31 = vrot.slane %v2297_v49, 2  ;;  %v2311_v10 = vrot.slane %v2298_v41, 1  ;;  %v6004_v41 = vld [vmem:[#allocation3 + $0x5] sm:$0x1] }
 0xbad   :  { %v2310_v43 = vsel %vm608_vm14, %v2309_v31, %v2308_v40  ;;  %v6008_v31 = vld [vmem:[#allocation3 + $0xd] sm:$0x1] }
 0xbae   :  { %v2312_v59 = vsel %vm611_vm15, %v2311_v10, %v2310_v43 }
 0xbaf   :  { %v2313_v23 = vpack.c.b16 %v2312_v59, %v2312_v59 }
 0xbb1   :  { %2314 = vrot.lane.b32.xlu0 %v2313_v23, %s4564_s22 }
 0xc23   :  { %v2315_v1 = vpop.permute.xlu0 %2314 }
 0xc24   :  { %4041 = vmatmul.msk.bf16.vlgmr.msrb.gmra.mxu3 %vm43_vm1, %v2315_v1  ;;  %v6013_v1 = vld [vmem:[#allocation3 + $0x2d] sm:$0x1] }
 0xca7   :  { %v2328_v6 = vpop.f32.mrf.mxu3 }
 0xca8   :  { %v5977_v52 = vadd.f32 %v5735_v26, %v2328_v6 }
 0xcaa   :  { %2508 = vrot.lane.b32.xlu0 %v5977_v52, %s4562_s20  ;;  %v2334_v58 = vrot.slane %v5977_v52, 2  ;;  %v2333_v35 = vrot.slane %v5977_v52, 1  ;;  %v2337_v13 = vrot.slane %v5977_v52, 5  ;;  %v2336_v5 = vrot.slane %v5977_v52, 4 }
 0xcab   :  { %v2335_v26 = vrot.slane %v5977_v52, 3  ;;  %v2339_v3 = vrot.slane %v5977_v52, 7  ;;  %v2338_v34 = vrot.slane %v5977_v52, 6  ;;  %v2348_v45 = vadd.f32 %v5977_v52, %v6004_v41  ;;  %v6017_v52 = vld [vmem:[#allocation3 + $0x1d] sm:$0x1] }
 0xcac   :  { %2512 = vrot.lane.b32.xlu2 %v2334_v58, %s4562_s20  ;;  %2510 = vrot.lane.b32.xlu1 %v2333_v35, %s4562_s20  ;;  %v2350_v15 = vadd.f32 %v2334_v58, %v5995_v29  ;;  %v2352_v16 = vadd.f32 %v2336_v5, %v5998_v18  ;;  %v2349_v10 = vadd.f32 %v2333_v35, %v6008_v31 }
 0xcad   :  { %v2355_v8 = vadd.f32 %v2339_v3, %v6001_v21  ;;  %v4042_v43 = vmul.f32 -1.442695, %v2348_v45  ;;  %v2353_v58 = vadd.f32 %v2337_v13, %v6013_v1  ;;  %v2351_v35 = vadd.f32 %v2335_v26, %v6017_v52 }
 0xcae   :  { %v4044_v14 = vmul.f32 -1.442695, %v2350_v15  ;;  %v4046_v53 = vmul.f32 -1.442695, %v2352_v16  ;;  %v4043_v23 = vmul.f32 -1.442695, %v2349_v10 }
 0xcaf   :  { %v2330_v20 = vpop.f32.mrf.mxu3  ;;  %v4049_v49 = vmul.f32 -1.442695, %v2355_v8 }
 0xcb0   :  { %4366 = vpow2.f32 %v4044_v14 }
 0xcb1   :  { %4368 = vpow2.f32 %v4046_v53  ;;  %v4045_v53 = vmul.f32 -1.442695, %v2351_v35 }
 0xcb2   :  { %2518 = vrot.lane.b32.xlu0 %v2337_v13, %s4562_s20 }
 0xcb4   :  { %2516 = vrot.lane.b32.xlu2 %v2336_v5, %s4562_s20  ;;  %2514 = vrot.lane.b32.xlu1 %v2335_v26, %s4562_s20 }
 0xcb6   :  { %v4367_v11 = vpop.eup %4366 }
 0xcb7   :  { %v2382_v42 = vadd.f32 1.0, %v4367_v11  ;;  %v4369_v61 = vpop.eup %4368 }
 0xcb8   :  { %v6011_v40 = vadd.f32 1.0, %v4369_v61 }
 0xcb9   :  { %4370 = vrcp.f32 %v2382_v42  ;;  %vm2423_vm2 = vweird.f32 %v2382_v42  ;;  %v2427_v35 = vand.u32 2147483647, %v2382_v42 }
 0xcba   :  { %4372 = vpow2.f32 %v4049_v49  ;;  %v6024_v49 = vld [vmem:[#allocation3 + $0x35] sm:$0x1]  ;;  %vm2453_vm6 = vweird.f32 %v6011_v40 }
 0xcbb   :  { %4374 = vrcp.f32 %v6011_v40  ;;  %v2354_v26 = vadd.f32 %v2338_v34, %v6024_v49  ;;  %vm2428_vm4 = vcmp.eq.f32.partialorder %v2427_v35, 8.507059e+37 }
 0xcbc   :  { %2522 = vrot.lane.b32.xlu2 %v2339_v3, %s4562_s20  ;;  %2520 = vrot.lane.b32.xlu1 %v2338_v34, %s4562_s20  ;;  %4376 = vpow2.f32 %v4042_v43  ;;  %v4047_v3 = vmul.f32 -1.442695, %v2353_v58 }
 0xcbd   :  { %4378 = vpow2.f32 %v4043_v23 }
 0xcbf   :  { %v4371_v59 = vpop.eup %4370 }
 0xcc0   :  { %v4373_v6 = vpop.eup %4372  ;;  %v2419_v20 = vmul.f32 %v4371_v59, %v2382_v42  ;;  %vm2424_vm0 = vweird.f32 %v4371_v59 }
 0xcc1   :  { %v6020_v5 = vadd.f32 1.0, %v4373_v6  ;;  %v4375_v14 = vpop.eup %4374  ;;  %v2429_v6 = vand.u32 2147483648, %v2382_v42  ;;  %vm2425_vm3 = vmor %vm2423_vm2, %vm2424_vm0 }
 0xcc2   :  { %v2420_v15 = vsub.f32 1.0, %v2419_v20  ;;  %v4377_v16 = vpop.eup %4376  ;;  %v2449_v13 = vmul.f32 %v4375_v14, %v6011_v40  ;;  %v4048_v20 = vmul.f32 -1.442695, %v2354_v26  ;;  %vm2454_vm5 = vweird.f32 %v4375_v14 }
 0xcc3   :  { %4380 = vrcp.f32 %v6020_v5  ;;  %v4379_v11 = vpop.eup %4378  ;;  %v6026_v61 = vadd.f32 1.0, %v4377_v16  ;;  %vm2455_vm7 = vmor %vm2453_vm6, %vm2454_vm5  ;;  %vm2498_vm2 = vweird.f32 %v6020_v5 }
 0xcc4   :  { %4382 = vpow2.f32 %v4047_v3  ;;  %v2421_v8 = vmul.f32 %v4371_v59, %v2420_v15  ;;  %v6029_v45 = vadd.f32 1.0, %v4379_v11  ;;  %v2450_v43 = vsub.f32 1.0, %v2449_v13 }
 0xcc5   :  { %4384 = vpow2.f32 %v4045_v53  ;;  %v2430_v11 = vor.u32 1.1754944e-38, %v2429_v6  ;;  %v2457_v6 = vand.u32 2147483647, %v6011_v40  ;;  %vm2393_vm6 = vweird.f32 %v6026_v61 }
 0xcc6   :  { %v2422_v10 = vadd.f32 %v4371_v59, %v2421_v8  ;;  %4386 = vrcp.f32 %v6026_v61  ;;  %v2451_v34 = vmul.f32 %v4375_v14, %v2450_v43  ;;  %v2459_v43 = vand.u32 2147483648, %v6011_v40 }
 0xcc7   :  { %4388 = vrcp.f32 %v6029_v45  ;;  %vm2458_vm8 = vcmp.eq.f32.partialorder %v2457_v6, 8.507059e+37 }
 0xcc8   :  { %v2426_v15 = vsel %vm2425_vm3, %v4371_v59, %v2422_v10  ;;  %4390 = vpow2.f32 %v4048_v20  ;;  %v2452_v51 = vadd.f32 %v4375_v14, %v2451_v34  ;;  %v2460_v34 = vor.u32 1.1754944e-38, %v2459_v43 }
 0xcc9   :  { %v6031_v23 = vpop.eup %4380  ;;  %v6043_v42 = vsel %vm2428_vm4, %v2430_v11, %v2426_v15  ;;  %v2502_v43 = vand.u32 2147483647, %v6020_v5 }
 0xcca   :  { %v4383_v58 = vpop.eup %4382  ;;  %v2494_v16 = vmul.f32 %v6031_v23, %v6020_v5  ;;  %v2456_v35 = vsel %vm2455_vm7, %v4375_v14, %v2452_v51  ;;  %vm2499_vm0 = vweird.f32 %v6031_v23 }
 0xccb   :  { %v4385_v3 = vpop.eup %4384  ;;  %v6037_v53 = vadd.f32 1.0, %v4383_v58  ;;  %v6063_v40 = vsel %vm2458_vm8, %v2460_v34, %v2456_v35  ;;  %vm2500_vm3 = vmor %vm2498_vm2, %vm2499_vm0  ;;  %vm2503_vm4 = vcmp.eq.f32.partialorder %v2502_v43, 8.507059e+37  ;;  %vm2408_vm0 = vweird.f32 %v6029_v45 }
 0xccc   :  { %v6039_v8 = vpop.eup %4386  ;;  %v6041_v13 = vadd.f32 1.0, %v4385_v3  ;;  %v2495_v59 = vsub.f32 1.0, %v2494_v16 }
 0xccd   :  { %v6046_v10 = vpop.eup %4388  ;;  %4392 = vrcp.f32 %v6037_v53  ;;  %v2389_v58 = vmul.f32 %v6039_v8, %v6026_v61  ;;  %vm2394_vm5 = vweird.f32 %v6039_v8 }
 0xcce   :  { %4394 = vrcp.f32 %v6041_v13  ;;  %v4391_v20 = vpop.eup %4390  ;;  %v2496_v3 = vmul.f32 %v6031_v23, %v2495_v59  ;;  %v2404_v15 = vmul.f32 %v6046_v10, %v6029_v45  ;;  %v2504_v59 = vand.u32 2147483648, %v6020_v5  ;;  %vm2395_vm8 = vmor %vm2393_vm6, %vm2394_vm5 }
 0xccf   :  { %v6061_v11 = vadd.f32 1.0, %v4391_v20  ;;  %vm2409_vm7 = vweird.f32 %v6046_v10  ;;  %vm2468_vm6 = vweird.f32 %v6037_v53 }
 0xcd0   :  { %v2497_v62 = vadd.f32 %v6031_v23, %v2496_v3  ;;  %v2405_v51 = vsub.f32 1.0, %v2404_v15  ;;  %vm2410_vm2 = vmor %vm2408_vm0, %vm2409_vm7  ;;  %vm2438_vm0 = vweird.f32 %v6041_v13 }
 0xcd1   :  { %4396 = vrcp.f32 %v6061_v11 }
 0xcd2   :  { %v2501_v20 = vsel %vm2500_vm3, %v6031_v23, %v2497_v62  ;;  %v2406_v35 = vmul.f32 %v6046_v10, %v2405_v51  ;;  %v2399_v62 = vand.u32 2147483648, %v6026_v61 }
 0xcd3   :  { %v6059_v16 = vpop.eup %4392 }
 0xcd4   :  { %v6068_v14 = vpop.eup %4394  ;;  %v2407_v51 = vadd.f32 %v6046_v10, %v2406_v35  ;;  %vm2469_vm5 = vweird.f32 %v6059_v16 }
 0xcd5   :  { %v2434_v3 = vmul.f32 %v6068_v14, %v6041_v13  ;;  %vm2439_vm7 = vweird.f32 %v6068_v14 }
 0xcd6   :  { %v2411_v35 = vsel %vm2410_vm2, %v6046_v10, %v2407_v51  ;;  %v2472_v10 = vand.u32 2147483647, %v6037_v53  ;;  %vm2440_vm2 = vmor %vm2438_vm0, %vm2439_vm7 }
 0xcd7   :  { %v6092_v43 = vpop.eup %4396 }
 0xd06   :  { %v2513_v26 = vpop.permute.xlu2 %2512 }
 0xd07   :  { %v2534_v4 = vmul.f32 %v2513_v26, %v6043_v42 }
 0xd09   :  { %2552 = vrot.lane.b32.xlu1 %v2534_v4, %s4562_s20  ;;  %v2390_v4 = vsub.f32 1.0, %v2389_v58  ;;  %v2464_v58 = vmul.f32 %v6059_v16, %v6037_v53 }
 0xd0b   :  { %v2391_v6 = vmul.f32 %v6039_v8, %v2390_v4  ;;  %v2465_v5 = vsub.f32 1.0, %v2464_v58 }
 0xd0d   :  { %v2392_v15 = vadd.f32 %v6039_v8, %v2391_v6  ;;  %v2414_v6 = vand.u32 2147483648, %v6029_v45 }
 0xd0e   :  { %v2517_v26 = vpop.permute.xlu2 %2516 }
 0xd0f   :  { %v2536_v39 = vmul.f32 %v2517_v26, %v6063_v40  ;;  %v2397_v26 = vand.u32 2147483647, %v6026_v61  ;;  %v2396_v58 = vsel %vm2395_vm8, %v6039_v8, %v2392_v15  ;;  %v2412_v61 = vand.u32 2147483647, %v6029_v45  ;;  %vm2470_vm8 = vmor %vm2468_vm6, %vm2469_vm5 }
 0xd10   :  { %v2415_v8 = vor.u32 1.1754944e-38, %v2414_v6  ;;  %v2444_v6 = vand.u32 2147483648, %v6041_v13  ;;  %vm2484_vm5 = vweird.f32 %v6092_v43  ;;  %vm2483_vm6 = vweird.f32 %v6061_v11 }
 0xd11   :  { %2556 = vrot.lane.b32.xlu1 %v2536_v39, %s4562_s20  ;;  %v2505_v39 = vor.u32 1.1754944e-38, %v2504_v59  ;;  %v2435_v59 = vsub.f32 1.0, %v2434_v3  ;;  %vm2398_vm3 = vcmp.eq.f32.partialorder %v2397_v26, 8.507059e+37  ;;  %vm2485_vm7 = vmor %vm2483_vm6, %vm2484_vm5 }
 0xd13   :  { %v6084_v34 = vsel %vm2503_vm4, %v2505_v39, %v2501_v20  ;;  %v2466_v20 = vmul.f32 %v6059_v16, %v2465_v5  ;;  %v2400_v39 = vor.u32 1.1754944e-38, %v2399_v62  ;;  %v2436_v3 = vmul.f32 %v6068_v14, %v2435_v59 }
 0xd14   :  { %vm2413_vm4 = vcmp.eq.f32.partialorder %v2412_v61, 8.507059e+37  ;;  %v2474_v62 = vand.u32 2147483648, %v6037_v53  ;;  %v2442_v53 = vand.u32 2147483647, %v6041_v13 }
 0xd15   :  { %v2467_v45 = vadd.f32 %v6059_v16, %v2466_v20  ;;  %v6109_v26 = vsel %vm2413_vm4, %v2415_v8, %v2411_v35 }
 0xd16   :  { %v2523_v4 = vpop.permute.xlu2 %2522  ;;  %v2475_v61 = vor.u32 1.1754944e-38, %v2474_v62  ;;  %vm2443_vm4 = vcmp.eq.f32.partialorder %v2442_v53, 8.507059e+37 }
 0xd17   :  { %v2539_v23 = vmul.f32 %v2523_v4, %v6084_v34  ;;  %v2479_v4 = vmul.f32 %v6092_v43, %v6061_v11 }
 0xd19   :  { %2562 = vrot.lane.b32.xlu1 %v2539_v23, %s4562_s20  ;;  %v6104_v23 = vsel %vm2398_vm3, %v2400_v39, %v2396_v58  ;;  %v2480_v59 = vsub.f32 1.0, %v2479_v4  ;;  %v2471_v58 = vsel %vm2470_vm8, %v6059_v16, %v2467_v45  ;;  %vm2473_vm3 = vcmp.eq.f32.partialorder %v2472_v10, 8.507059e+37 }
 0xd1a   :  { %v2445_v4 = vor.u32 1.1754944e-38, %v2444_v6 }
 0xd1b   :  { %v2481_v39 = vmul.f32 %v6092_v43, %v2480_v59 }
 0xd1c   :  { %v2509_v19 = vpop.permute.xlu0 %2508 }
 0xd1d   :  { %v2532_v15 = vmul.f32 %v2509_v19, %v6104_v23  ;;  %v2437_v19 = vadd.f32 %v6068_v14, %v2436_v3  ;;  %v6125_v3 = vsel %vm2473_vm3, %v2475_v61, %v2471_v58  ;;  %v2482_v13 = vadd.f32 %v6092_v43, %v2481_v39 }
 0xd1e   :  { %v2511_v5 = vpop.permute.xlu1 %2510 }
 0xd1f   :  { %v2533_v51 = vmul.f32 %v2511_v5, %v6109_v26  ;;  %2548 = vrot.lane.b32.xlu2 %v2532_v15, %s4562_s20  ;;  %v2441_v20 = vsel %vm2440_vm2, %v6068_v14, %v2437_v19  ;;  %v2489_v14 = vand.u32 2147483648, %v6061_v11  ;;  %v2487_v5 = vand.u32 2147483647, %v6061_v11 }
 0xd20   :  { %v6128_v15 = vsel %vm2443_vm4, %v2445_v4, %v2441_v20  ;;  %v2486_v10 = vsel %vm2485_vm7, %v6092_v43, %v2482_v13 }
 0xd21   :  { %2550 = vrot.lane.b32.xlu0 %v2533_v51, %s4562_s20  ;;  %v2490_v62 = vor.u32 1.1754944e-38, %v2489_v14  ;;  %vm2488_vm8 = vcmp.eq.f32.partialorder %v2487_v5, 8.507059e+37 }
 0xd23   :  { %v6139_v51 = vsel %vm2488_vm8, %v2490_v62, %v2486_v10 }
 0xd24   :  { %v2519_v35 = vpop.permute.xlu0 %2518 }
 0xd25   :  { %v2537_v8 = vmul.f32 %v2519_v35, %v6125_v3 }
 0xd26   :  { %v2515_v16 = vpop.permute.xlu1 %2514 }
 0xd27   :  { %v2535_v45 = vmul.f32 %v2515_v16, %v6128_v15  ;;  %2558 = vrot.lane.b32.xlu2 %v2537_v8, %s4562_s20 }
 0xd29   :  { %2554 = vrot.lane.b32.xlu0 %v2535_v45, %s4562_s20 }
 0xd2e   :  { %v2521_v19 = vpop.permute.xlu1 %2520 }
 0xd2f   :  { %v2538_v59 = vmul.f32 %v2521_v19, %v6139_v51 }
 0xd31   :  { %2560 = vrot.lane.b32.xlu0 %v2538_v59, %s4562_s20  ;;  %v2589_v59 = vsub.f32 1.0, %v6109_v26 }
 0xd79   :  { %v2549_v6 = vpop.permute.xlu2 %2548 }
 0xd7a   :  { %v2572_v58 = vadd.f32 %v2549_v6, %v6004_v41  ;;  %v2590_v6 = vsub.f32 1.0, %v6043_v42 }
 0xd7b   :  { %v2553_v53 = vpop.permute.xlu1 %2552 }
 0xd7c   :  { %4398 = vtanh.f32 %v2572_v58  ;;  %v2574_v61 = vadd.f32 %v2553_v53, %v5995_v29 }
 0xd7e   :  { %4400 = vtanh.f32 %v2574_v61  ;;  %v2637_v61 = vmul.f32 %v6109_v26, %v5918_v48  ;;  %v2593_v26 = vsub.f32 1.0, %v6125_v3 }
 0xd81   :  { %v2559_v11 = vpop.permute.xlu2 %2558 }
 0xd82   :  { %v4399_v20 = vpop.eup %4398  ;;  %v2577_v43 = vadd.f32 %v2559_v11, %v6013_v1 }
 0xd83   :  { %2604 = vrot.lane.b32.xlu1 %v4399_v20, %s4564_s22  ;;  %v2557_v39 = vpop.permute.xlu1 %2556 }
 0xd84   :  { %v4401_v35 = vpop.eup %4400  ;;  %4402 = vtanh.f32 %v2577_v43  ;;  %v2576_v4 = vadd.f32 %v2557_v39, %v5998_v18 }
 0xd85   :  { %2608 = vrot.lane.b32.xlu0 %v4401_v35, %s4564_s22 }
 0xd86   :  { %4404 = vtanh.f32 %v2576_v4  ;;  %v2636_v4 = vmul.f32 %v6104_v23, %v5926_v22 }
 0xd8a   :  { %v4403_v41 = vpop.eup %4402 }
 0xd8b   :  { %2614 = vrot.lane.b32.xlu1 %v4403_v41, %s4564_s22  ;;  %v2563_v8 = vpop.permute.xlu1 %2562 }
 0xd8c   :  { %v4405_v29 = vpop.eup %4404  ;;  %v2579_v16 = vadd.f32 %v2563_v8, %v6001_v21 }
 0xd8d   :  { %2612 = vrot.lane.b32.xlu0 %v4405_v29, %s4564_s22 }
 0xd8e   :  { %4406 = vtanh.f32 %v2579_v16  ;;  %v2591_v16 = vsub.f32 1.0, %v6128_v15 }
 0xd93   :  { %v2551_v1 = vpop.permute.xlu0 %2550 }
 0xd94   :  { %v4407_v45 = vpop.eup %4406  ;;  %v2573_v13 = vadd.f32 %v2551_v1, %v6008_v31 }
 0xd95   :  { %2618 = vrot.lane.b32.xlu0 %v4407_v45, %s4564_s22 }
 0xd96   :  { %4408 = vtanh.f32 %v2573_v13 }
 0xd9b   :  { %v2555_v18 = vpop.permute.xlu0 %2554 }
 0xd9c   :  { %v4409_v14 = vpop.eup %4408  ;;  %v2575_v5 = vadd.f32 %v2555_v18, %v6017_v52  ;;  %v2588_v52 = vsub.f32 1.0, %v6104_v23  ;;  %v2592_v18 = vsub.f32 1.0, %v6063_v40  ;;  %v2639_v23 = vmul.f32 %v6128_v15, %v5941_v7 }
 0xd9d   :  { %2606 = vrot.lane.b32.xlu2 %v4409_v14, %s4564_s22 }
 0xd9e   :  { %4410 = vtanh.f32 %v2575_v5 }
 0xda3   :  { %v2561_v10 = vpop.permute.xlu0 %2560 }
 0xda4   :  { %v4411_v62 = vpop.eup %4410  ;;  %v2578_v21 = vadd.f32 %v2561_v10, %v6024_v49  ;;  %v2638_v49 = vmul.f32 %v6043_v42, %v5920_v56 }
 0xda5   :  { %2610 = vrot.lane.b32.xlu2 %v4411_v62, %s4564_s22  ;;  %v2641_v62 = vmul.f32 %v6125_v3, %v5943_v9 }
 0xda6   :  { %4412 = vtanh.f32 %v2578_v21  ;;  %v2640_v21 = vmul.f32 %v6063_v40, %v5945_v33  ;;  %v2594_v40 = vsub.f32 1.0, %v6139_v51 }
 0xdac   :  { %v4413_v19 = vpop.eup %4412 }
 0xdad   :  { %2616 = vrot.lane.b32.xlu2 %v4413_v19, %s4564_s22 }
 0xdf5   :  { %v2605_v31 = vpop.permute.xlu1 %2604 }
 0xdf6   :  { %v2628_v43 = vmul.f32 %v2605_v31, %v2588_v52 }
 0xdf7   :  { %v2607_v58 = vpop.permute.xlu2 %2606  ;;  %v2609_v53 = vpop.permute.xlu0 %2608 }
 0xdf8   :  { %v2629_v11 = vmul.f32 %v2607_v58, %v2589_v59  ;;  %v2630_v20 = vmul.f32 %v2609_v53, %v2590_v6  ;;  %v6174_v8 = vadd.f32 %v2636_v4, %v2628_v43 }
 0xdfa   :  { %v6166_v39 = vadd.f32 %v2637_v61, %v2629_v11  ;;  %v6168_v35 = vadd.f32 %v2638_v49, %v2630_v20  ;;  %v2700_v10 = vpack.c.bf16 %v6174_v8, %v6174_v8  ;;  %v2595_v49 = vsub.f32 1.0, %v6084_v34 }
 0xdfc   :  { %v2701_v41 = vpack.c.bf16 %v6166_v39, %v6166_v39  ;;  %v2702_v42 = vpack.c.bf16 %v6168_v35, %v6168_v35  ;;  %v2716_v53 = vunpack.c.l.b16 %v2700_v10 }
 0xdfd   :  { %v2615_v29 = vpop.permute.xlu1 %2614 }
 0xdfe   :  { %v2717_v1 = vunpack.c.l.b16 %v2701_v41  ;;  %v2633_v45 = vmul.f32 %v2615_v29, %v2593_v26  ;;  %v2718_v31 = vunpack.c.l.b16 %v2702_v42  ;;  %v2643_v26 = vmul.f32 %v6084_v34, %v5963_v46 }
 0xdff   :  { %v2611_v13 = vpop.permute.xlu2 %2610  ;;  %v2613_v14 = vpop.permute.xlu0 %2612 }
 0xe00   :  { %v2631_v5 = vmul.f32 %v2611_v13, %v2591_v16  ;;  %v2632_v19 = vmul.f32 %v2613_v14, %v2592_v18  ;;  %v2724_v6 = vrot.slane %v2717_v1, 7  ;;  %v6191_v52 = vadd.f32 %v2641_v62, %v2633_v45 }
 0xe01   :  { %v2726_v3 = vrot.slane %v2718_v31, 6  ;;  %v2642_v16 = vmul.f32 %v6139_v51, %v5961_v63 }
 0xe02   :  { %v6189_v59 = vadd.f32 %v2639_v23, %v2631_v5  ;;  %v6193_v58 = vadd.f32 %v2640_v21, %v2632_v19  ;;  %v2725_v20 = vsel %vm593_vm9, %v2724_v6, %v2716_v53  ;;  %v2705_v43 = vpack.c.bf16 %v6191_v52, %v6191_v52 }
 0xe03   :  { %v2727_v13 = vsel %vm596_vm10, %v2726_v3, %v2725_v20  ;;  %v6227_v20 = vld [vmem:[%s7131_s7] ss:$0 sm:$0xff] }
 0xe04   :  { %v2703_v15 = vpack.c.bf16 %v6189_v59, %v6189_v59  ;;  %v2704_v61 = vpack.c.bf16 %v6193_v58, %v6193_v58  ;;  %v2721_v5 = vunpack.c.l.b16 %v2705_v43 }
 0xe06   :  { %v2719_v11 = vunpack.c.l.b16 %v2703_v15  ;;  %v2720_v4 = vunpack.c.l.b16 %v2704_v61  ;;  %v2732_v31 = vrot.slane %v2721_v5, 3 }
 0xe07   :  { %v2617_v41 = vpop.permute.xlu2 %2616  ;;  %v2619_v29 = vpop.permute.xlu0 %2618 }
 0xe08   :  { %v2728_v42 = vrot.slane %v2719_v11, 5  ;;  %v2634_v1 = vmul.f32 %v2617_v41, %v2594_v40  ;;  %v2635_v45 = vmul.f32 %v2619_v29, %v2595_v49  ;;  %v2730_v18 = vrot.slane %v2720_v4, 4 }
 0xe0a   :  { %v6209_v14 = vadd.f32 %v2642_v16, %v2634_v1  ;;  %v6211_v23 = vadd.f32 %v2643_v26, %v2635_v45  ;;  %v2729_v10 = vsel %vm599_vm11, %v2728_v42, %v2727_v13  ;;  %v6248_v13 = vld [vmem:[#allocation3 + $0xe] sm:$0x1] }
 0xe0b   :  { %v2731_v51 = vsel %vm602_vm12, %v2730_v18, %v2729_v10  ;;  %v6251_v10 = vld [vmem:[#allocation3 + $0x1e] sm:$0x1] }
 0xe0c   :  { %v2706_v34 = vpack.c.bf16 %v6209_v14, %v6209_v14  ;;  %v2707_v62 = vpack.c.bf16 %v6211_v23, %v6211_v23  ;;  %v2733_v53 = vsel %vm605_vm13, %v2732_v31, %v2731_v51 }
 0xe0e   :  { %v2722_v21 = vunpack.c.l.b16 %v2706_v34  ;;  %v2723_v19 = vunpack.c.l.b16 %v2707_v62 }
 0xe10   :  { %v2734_v6 = vrot.slane %v2722_v21, 2  ;;  %v2736_v15 = vrot.slane %v2723_v19, 1  ;;  %v6254_v21 = vld [vmem:[#allocation3 + $0x36] sm:$0x1] }
 0xe12   :  { %v2735_v61 = vsel %vm608_vm14, %v2734_v6, %v2733_v53 }
 0xe13   :  { %v2737_v3 = vsel %vm611_vm15, %v2736_v15, %v2735_v61  ;;  %v6257_v15 = vld [vmem:[#allocation3 + $0x6] sm:$0x1] }
 0xe14   :  { %v2738_v11 = vpack.c.b16 %v2737_v3, %v2737_v3  ;;  %v6261_v3 = vld [vmem:[#allocation3 + $0x16] sm:$0x1] }
 0xe16   :  { %2739 = vrot.lane.b32.xlu1 %v2738_v11, %s4564_s22 }
 0xe88   :  { %v2740_v40 = vpop.permute.xlu1 %2739 }
 0xe89   :  { %4050 = vmatmul.msk.bf16.vlgmr.msrb.gmra.mxu1 %vm43_vm1, %v2740_v40 }
 0xf06   :  { %v2753_v49 = vpop.f32.mrf.mxu1 }
 0xf07   :  { %v6230_v43 = vadd.f32 %v6227_v20, %v2753_v49 }
 0xf09   :  { %2933 = vrot.lane.b32.xlu1 %v6230_v43, %s4562_s20  ;;  %v2759_v4 = vrot.slane %v6230_v43, 2  ;;  %v2758_v41 = vrot.slane %v6230_v43, 1  ;;  %v2762_v29 = vrot.slane %v6230_v43, 5  ;;  %v2761_v42 = vrot.slane %v6230_v43, 4 }
 0xf0a   :  { %v2760_v16 = vrot.slane %v6230_v43, 3  ;;  %v2764_v1 = vrot.slane %v6230_v43, 7  ;;  %v2763_v45 = vrot.slane %v6230_v43, 6  ;;  %v2773_v61 = vadd.f32 %v6230_v43, %v6257_v15  ;;  %v6270_v43 = vld [vmem:[#allocation3 + $0x26] sm:$0x1] }
 0xf0b   :  { %2937 = vrot.lane.b32.xlu0 %v2759_v4, %s4562_s20  ;;  %2935 = vrot.lane.b32.xlu2 %v2758_v41, %s4562_s20  ;;  %v2774_v18 = vadd.f32 %v2758_v41, %v6248_v13  ;;  %v2775_v11 = vadd.f32 %v2759_v4, %v6261_v3  ;;  %v2777_v4 = vadd.f32 %v2761_v42, %v6270_v43 }
 0xf0c   :  { %v2776_v34 = vadd.f32 %v2760_v16, %v6251_v10  ;;  %v2779_v19 = vadd.f32 %v2763_v45, %v6254_v21  ;;  %v4051_v49 = vmul.f32 -1.442695, %v2773_v61 }
 0xf0d   :  { %v4052_v5 = vmul.f32 -1.442695, %v2774_v18 }
 0xf0e   :  { %v2755_v26 = vpop.f32.mrf.mxu1  ;;  %v4054_v62 = vmul.f32 -1.442695, %v2776_v34  ;;  %v4057_v6 = vmul.f32 -1.442695, %v2779_v19 }
 0xf0f   :  { %4414 = vpow2.f32 %v4052_v5  ;;  %v4053_v26 = vmul.f32 -1.442695, %v2775_v11 }
 0xf10   :  { %4416 = vpow2.f32 %v4054_v62 }
 0xf11   :  { %2943 = vrot.lane.b32.xlu1 %v2762_v29, %s4562_s20 }
 0xf13   :  { %2941 = vrot.lane.b32.xlu0 %v2761_v42, %s4562_s20  ;;  %2939 = vrot.lane.b32.xlu2 %v2760_v16, %s4562_s20  ;;  %v6266_v16 = vld [vmem:[#allocation3 + $0x2e] sm:$0x1] }
 0xf14   :  { %v2778_v18 = vadd.f32 %v2762_v29, %v6266_v16 }
 0xf15   :  { %v4415_v51 = vpop.eup %4414 }
 0xf16   :  { %v2806_v31 = vadd.f32 1.0, %v4415_v51  ;;  %v4417_v53 = vpop.eup %4416  ;;  %v4056_v62 = vmul.f32 -1.442695, %v2778_v18 }
 0xf17   :  { %v6264_v40 = vadd.f32 1.0, %v4417_v53  ;;  %v4055_v53 = vmul.f32 -1.442695, %v2777_v4 }
 0xf18   :  { %4418 = vrcp.f32 %v2806_v31  ;;  %v2839_v4 = vand.u32 2147483648, %v2806_v31  ;;  %vm2833_vm2 = vweird.f32 %v2806_v31  ;;  %v2837_v63 = vand.u32 2147483647, %v2806_v31 }
 0xf19   :  { %4420 = vpow2.f32 %v4057_v6  ;;  %vm2863_vm6 = vweird.f32 %v6264_v40 }
 0xf1a   :  { %4422 = vrcp.f32 %v6264_v40  ;;  %vm2838_vm4 = vcmp.eq.f32.partialorder %v2837_v63, 8.507059e+37  ;;  %v2867_v63 = vand.u32 2147483647, %v6264_v40 }
 0xf1b   :  { %2947 = vrot.lane.b32.xlu0 %v2764_v1, %s4562_s20  ;;  %2945 = vrot.lane.b32.xlu2 %v2763_v45, %s4562_s20  ;;  %4424 = vpow2.f32 %v4051_v49  ;;  %v6277_v49 = vld [vmem:[#allocation3 + $0x3e] sm:$0x1] }
 0xf1c   :  { %4426 = vpow2.f32 %v4053_v26  ;;  %v2780_v42 = vadd.f32 %v2764_v1, %v6277_v49  ;;  %vm2868_vm8 = vcmp.eq.f32.partialorder %v2867_v63, 8.507059e+37 }
 0xf1e   :  { %v4419_v41 = vpop.eup %4418 }
 0xf1f   :  { %v4421_v45 = vpop.eup %4420  ;;  %v2829_v5 = vmul.f32 %v4419_v41, %v2806_v31  ;;  %vm2834_vm0 = vweird.f32 %v4419_v41 }
 0xf20   :  { %v6273_v34 = vadd.f32 1.0, %v4421_v45  ;;  %v4423_v19 = vpop.eup %4422  ;;  %vm2835_vm3 = vmor %vm2833_vm2, %vm2834_vm0 }
 0xf21   :  { %v2830_v51 = vsub.f32 1.0, %v2829_v5  ;;  %v4425_v6 = vpop.eup %4424  ;;  %v2859_v29 = vmul.f32 %v4423_v19, %v6264_v40  ;;  %vm2864_vm5 = vweird.f32 %v4423_v19 }
 0xf22   :  { %4428 = vrcp.f32 %v6273_v34  ;;  %v4427_v61 = vpop.eup %4426  ;;  %v6279_v46 = vadd.f32 1.0, %v4425_v6  ;;  %vm2865_vm7 = vmor %vm2863_vm6, %vm2864_vm5  ;;  %vm2908_vm2 = vweird.f32 %v6273_v34 }
 0xf23   :  { %4430 = vpow2.f32 %v4056_v62  ;;  %v2831_v11 = vmul.f32 %v4419_v41, %v2830_v51  ;;  %v6282_v26 = vadd.f32 1.0, %v4427_v61  ;;  %v2860_v18 = vsub.f32 1.0, %v2859_v29 }
 0xf24   :  { %4432 = vpow2.f32 %v4055_v53  ;;  %v4058_v51 = vmul.f32 -1.442695, %v2780_v42  ;;  %v2840_v29 = vor.u32 1.1754944e-38, %v2839_v4  ;;  %vm2818_vm6 = vweird.f32 %v6279_v46 }
 0xf25   :  { %v2832_v45 = vadd.f32 %v4419_v41, %v2831_v11  ;;  %4434 = vrcp.f32 %v6279_v46  ;;  %v2861_v1 = vmul.f32 %v4423_v19, %v2860_v18  ;;  %v2869_v18 = vand.u32 2147483648, %v6264_v40 }
 0xf26   :  { %4436 = vrcp.f32 %v6282_v26 }
 0xf27   :  { %v2836_v53 = vsel %vm2835_vm3, %v4419_v41, %v2832_v45  ;;  %4438 = vpow2.f32 %v4058_v51  ;;  %v2862_v44 = vadd.f32 %v4423_v19, %v2861_v1  ;;  %v2870_v1 = vor.u32 1.1754944e-38, %v2869_v18 }
 0xf28   :  { %v6284_v5 = vpop.eup %4428  ;;  %v6296_v31 = vsel %vm2838_vm4, %v2840_v29, %v2836_v53  ;;  %v2912_v18 = vand.u32 2147483647, %v6273_v34 }
 0xf29   :  { %v4431_v62 = vpop.eup %4430  ;;  %v2904_v61 = vmul.f32 %v6284_v5, %v6273_v34  ;;  %v2866_v51 = vsel %vm2865_vm7, %v4423_v19, %v2862_v44  ;;  %vm2909_vm0 = vweird.f32 %v6284_v5 }
 0xf2a   :  { %v4433_v6 = vpop.eup %4432  ;;  %v6290_v11 = vadd.f32 1.0, %v4431_v62  ;;  %v6316_v40 = vsel %vm2868_vm8, %v2870_v1, %v2866_v51  ;;  %vm2910_vm3 = vmor %vm2908_vm2, %vm2909_vm0  ;;  %vm2913_vm4 = vcmp.eq.f32.partialorder %v2912_v18, 8.507059e+37  ;;  %vm2848_vm0 = vweird.f32 %v6282_v26 }
 0xf2b   :  { %v6292_v9 = vpop.eup %4434  ;;  %v6294_v33 = vadd.f32 1.0, %v4433_v6  ;;  %v2905_v41 = vsub.f32 1.0, %v2904_v61 }
 0xf2c   :  { %v6299_v45 = vpop.eup %4436  ;;  %4440 = vrcp.f32 %v6290_v11  ;;  %v2814_v4 = vmul.f32 %v6292_v9, %v6279_v46  ;;  %vm2819_vm5 = vweird.f32 %v6292_v9 }
 0xf2d   :  { %4442 = vrcp.f32 %v6294_v33  ;;  %v4439_v62 = vpop.eup %4438  ;;  %v2906_v6 = vmul.f32 %v6284_v5, %v2905_v41  ;;  %v2844_v53 = vmul.f32 %v6299_v45, %v6282_v26  ;;  %v2914_v41 = vand.u32 2147483648, %v6273_v34  ;;  %vm2820_vm8 = vmor %vm2818_vm6, %vm2819_vm5 }
 0xf2e   :  { %v6314_v29 = vadd.f32 1.0, %v4439_v62  ;;  %vm2849_vm7 = vweird.f32 %v6299_v45  ;;  %vm2893_vm6 = vweird.f32 %v6290_v11 }
 0xf2f   :  { %v2907_v38 = vadd.f32 %v6284_v5, %v2906_v6  ;;  %v2845_v44 = vsub.f32 1.0, %v2844_v53  ;;  %vm2850_vm2 = vmor %vm2848_vm0, %vm2849_vm7  ;;  %vm2878_vm0 = vweird.f32 %v6294_v33 }
 0xf30   :  { %4444 = vrcp.f32 %v6314_v29 }
 0xf31   :  { %v2911_v62 = vsel %vm2910_vm3, %v6284_v5, %v2907_v38  ;;  %v2846_v51 = vmul.f32 %v6299_v45, %v2845_v44  ;;  %v2824_v38 = vand.u32 2147483648, %v6279_v46 }
 0xf32   :  { %v6312_v61 = vpop.eup %4440 }
 0xf33   :  { %v6321_v19 = vpop.eup %4442  ;;  %v2847_v44 = vadd.f32 %v6299_v45, %v2846_v51  ;;  %vm2894_vm5 = vweird.f32 %v6312_v61 }
 0xf34   :  { %v2874_v6 = vmul.f32 %v6321_v19, %v6294_v33  ;;  %vm2879_vm7 = vweird.f32 %v6321_v19 }
 0xf35   :  { %v2851_v51 = vsel %vm2850_vm2, %v6299_v45, %v2847_v44  ;;  %v2897_v45 = vand.u32 2147483647, %v6290_v11  ;;  %vm2880_vm2 = vmor %vm2878_vm0, %vm2879_vm7  ;;  %vm551_vm0 = vcmask 253952  }
 0xf36   :  { %v6345_v18 = vpop.eup %4444 }
 0xf65   :  { %v2936_v42 = vpop.permute.xlu2 %2935 }
 0xf66   :  { %v2958_v57 = vmul.f32 %v2936_v42, %v6296_v31 }
 0xf68   :  { %2975 = vrot.lane.b32.xlu1 %v2958_v57, %s4562_s20  ;;  %v2815_v57 = vsub.f32 1.0, %v2814_v4  ;;  %v2889_v4 = vmul.f32 %v6312_v61, %v6290_v11 }
 0xf6a   :  { %v2816_v63 = vmul.f32 %v6292_v9, %v2815_v57  ;;  %v2890_v34 = vsub.f32 1.0, %v2889_v4 }
 0xf6c   :  { %v2817_v53 = vadd.f32 %v6292_v9, %v2816_v63  ;;  %v2854_v63 = vand.u32 2147483648, %v6282_v26 }
 0xf6d   :  { %v2940_v42 = vpop.permute.xlu2 %2939 }
 0xf6e   :  { %v2960_v27 = vmul.f32 %v2940_v42, %v6316_v40  ;;  %v2822_v42 = vand.u32 2147483647, %v6279_v46  ;;  %v2821_v4 = vsel %vm2820_vm8, %v6292_v9, %v2817_v53  ;;  %v2852_v46 = vand.u32 2147483647, %v6282_v26  ;;  %vm2895_vm8 = vmor %vm2893_vm6, %vm2894_vm5 }
 0xf6f   :  { %v2855_v9 = vor.u32 1.1754944e-38, %v2854_v63  ;;  %v2884_v63 = vand.u32 2147483648, %v6294_v33  ;;  %vm2924_vm5 = vweird.f32 %v6345_v18  ;;  %vm2923_vm6 = vweird.f32 %v6314_v29 }
 0xf70   :  { %2979 = vrot.lane.b32.xlu1 %v2960_v27, %s4562_s20  ;;  %v2915_v27 = vor.u32 1.1754944e-38, %v2914_v41  ;;  %v2875_v41 = vsub.f32 1.0, %v2874_v6  ;;  %vm2823_vm3 = vcmp.eq.f32.partialorder %v2822_v42, 8.507059e+37  ;;  %vm2925_vm7 = vmor %vm2923_vm6, %vm2924_vm5 }
 0xf72   :  { %v6337_v1 = vsel %vm2913_vm4, %v2915_v27, %v2911_v62  ;;  %v2891_v62 = vmul.f32 %v6312_v61, %v2890_v34  ;;  %v2825_v27 = vor.u32 1.1754944e-38, %v2824_v38  ;;  %v2876_v6 = vmul.f32 %v6321_v19, %v2875_v41 }
 0xf73   :  { %vm2853_vm4 = vcmp.eq.f32.partialorder %v2852_v46, 8.507059e+37  ;;  %v2899_v38 = vand.u32 2147483648, %v6290_v11  ;;  %v2882_v11 = vand.u32 2147483647, %v6294_v33 }
 0xf74   :  { %v2892_v26 = vadd.f32 %v6312_v61, %v2891_v62  ;;  %v6362_v42 = vsel %vm2853_vm4, %v2855_v9, %v2851_v51 }
 0xf75   :  { %v2946_v57 = vpop.permute.xlu2 %2945  ;;  %v2900_v46 = vor.u32 1.1754944e-38, %v2899_v38  ;;  %vm2883_vm4 = vcmp.eq.f32.partialorder %v2882_v11, 8.507059e+37 }
 0xf76   :  { %v2963_v5 = vmul.f32 %v2946_v57, %v6337_v1  ;;  %v2919_v57 = vmul.f32 %v6345_v18, %v6314_v29 }
 0xf78   :  { %2985 = vrot.lane.b32.xlu1 %v2963_v5, %s4562_s20  ;;  %v6357_v5 = vsel %vm2823_vm3, %v2825_v27, %v2821_v4  ;;  %v2920_v41 = vsub.f32 1.0, %v2919_v57  ;;  %v2896_v4 = vsel %vm2895_vm8, %v6312_v61, %v2892_v26  ;;  %vm2898_vm3 = vcmp.eq.f32.partialorder %v2897_v45, 8.507059e+37 }
 0xf79   :  { %v2885_v57 = vor.u32 1.1754944e-38, %v2884_v63 }
 0xf7a   :  { %v2921_v27 = vmul.f32 %v6345_v18, %v2920_v41 }
 0xf7b   :  { %v2934_v7 = vpop.permute.xlu1 %2933 }
 0xf7c   :  { %v2957_v53 = vmul.f32 %v2934_v7, %v6357_v5  ;;  %v2877_v7 = vadd.f32 %v6321_v19, %v2876_v6  ;;  %v6378_v6 = vsel %vm2898_vm3, %v2900_v46, %v2896_v4  ;;  %v2922_v33 = vadd.f32 %v6345_v18, %v2921_v27 }
 0xf7d   :  { %v2938_v34 = vpop.permute.xlu0 %2937 }
 0xf7e   :  { %v2959_v44 = vmul.f32 %v2938_v34, %v6362_v42  ;;  %2973 = vrot.lane.b32.xlu0 %v2957_v53, %s4562_s20  ;;  %v2881_v62 = vsel %vm2880_vm2, %v6321_v19, %v2877_v7  ;;  %v2929_v19 = vand.u32 2147483648, %v6314_v29  ;;  %v2927_v34 = vand.u32 2147483647, %v6314_v29 }
 0xf7f   :  { %v6381_v53 = vsel %vm2883_vm4, %v2885_v57, %v2881_v62  ;;  %v2926_v45 = vsel %vm2925_vm7, %v6345_v18, %v2922_v33 }
 0xf80   :  { %2977 = vrot.lane.b32.xlu2 %v2959_v44, %s4562_s20  ;;  %v2930_v38 = vor.u32 1.1754944e-38, %v2929_v19  ;;  %vm2928_vm8 = vcmp.eq.f32.partialorder %v2927_v34, 8.507059e+37 }
 0xf82   :  { %v6392_v44 = vsel %vm2928_vm8, %v2930_v38, %v2926_v45 }
 0xf83   :  { %v2944_v51 = vpop.permute.xlu1 %2943 }
 0xf84   :  { %v2962_v9 = vmul.f32 %v2944_v51, %v6378_v6 }
 0xf85   :  { %v2942_v61 = vpop.permute.xlu0 %2941 }
 0xf86   :  { %v2961_v26 = vmul.f32 %v2942_v61, %v6381_v53  ;;  %2983 = vrot.lane.b32.xlu0 %v2962_v9, %s4562_s20 }
 0xf88   :  { %2981 = vrot.lane.b32.xlu2 %v2961_v26, %s4562_s20 }
 0xf8d   :  { %v2948_v7 = vpop.permute.xlu0 %2947 }
 0xf8e   :  { %v2964_v41 = vmul.f32 %v2948_v7, %v6392_v44 }
 0xf90   :  { %2987 = vrot.lane.b32.xlu2 %v2964_v41, %s4562_s20 }
 0xfda   :  { %v2978_v63 = vpop.permute.xlu2 %2977  ;;  %v2976_v4 = vpop.permute.xlu1 %2975 }
 0xfdb   :  { %v2999_v11 = vadd.f32 %v2978_v63, %v6261_v3  ;;  %v2998_v46 = vadd.f32 %v2976_v4, %v6248_v13  ;;  %v3063_v4 = vmul.f32 %v6362_v42, %v6168_v35 }
 0xfdd   :  { %4446 = vtanh.f32 %v2999_v11 }
 0xfde   :  { %4448 = vtanh.f32 %v2998_v46 }
 0xfe2   :  { %v2982_v29 = vpop.permute.xlu2 %2981  ;;  %v2980_v62 = vpop.permute.xlu1 %2979 }
 0xfe3   :  { %v4447_v18 = vpop.eup %4446  ;;  %v3001_v27 = vadd.f32 %v2982_v29, %v6270_v43  ;;  %v3000_v51 = vadd.f32 %v2980_v62, %v6251_v10  ;;  %v3018_v62 = vsub.f32 1.0, %v6378_v6 }
 0xfe4   :  { %v4449_v57 = vpop.eup %4448  ;;  %3033 = vrot.lane.b32.xlu1 %v4447_v18, %s4564_s22  ;;  %v3017_v18 = vsub.f32 1.0, %v6381_v53 }
 0xfe5   :  { %4450 = vtanh.f32 %v3001_v27  ;;  %3031 = vrot.lane.b32.xlu0 %v4449_v57, %s4564_s22 }
 0xfe6   :  { %4452 = vtanh.f32 %v3000_v51 }
 0xfea   :  { %v2988_v9 = vpop.permute.xlu2 %2987  ;;  %v2986_v3 = vpop.permute.xlu1 %2985 }
 0xfeb   :  { %v4451_v61 = vpop.eup %4450  ;;  %v3004_v13 = vadd.f32 %v2988_v9, %v6277_v49  ;;  %v3003_v26 = vadd.f32 %v2986_v3, %v6254_v21  ;;  %v3065_v9 = vmul.f32 %v6381_v53, %v6193_v58 }
 0xfec   :  { %v4453_v33 = vpop.eup %4452  ;;  %3037 = vrot.lane.b32.xlu1 %v4451_v61, %s4564_s22  ;;  %v3064_v61 = vmul.f32 %v6316_v40, %v6189_v59 }
 0xfed   :  { %4454 = vtanh.f32 %v3004_v13  ;;  %3035 = vrot.lane.b32.xlu0 %v4453_v33, %s4564_s22  ;;  %v3066_v33 = vmul.f32 %v6378_v6, %v6191_v52 }
 0xfee   :  { %4456 = vtanh.f32 %v3003_v26 }
 0xff0   :  { %v2974_v10 = vpop.permute.xlu0 %2973 }
 0xff1   :  { %v2997_v43 = vadd.f32 %v2974_v10, %v6257_v15 }
 0xff3   :  { %v4455_v19 = vpop.eup %4454  ;;  %4458 = vtanh.f32 %v2997_v43 }
 0xff4   :  { %v4457_v34 = vpop.eup %4456  ;;  %3043 = vrot.lane.b32.xlu1 %v4455_v19, %s4564_s22 }
 0xff5   :  { %3041 = vrot.lane.b32.xlu0 %v4457_v34, %s4564_s22 }
 0xff8   :  { %v2984_v49 = vpop.permute.xlu0 %2983 }
 0xff9   :  { %v4459_v45 = vpop.eup %4458  ;;  %v3002_v21 = vadd.f32 %v2984_v49, %v6266_v16 }
 0xffa   :  { %3029 = vrot.lane.b32.xlu2 %v4459_v45, %s4564_s22 }
 0xffb   :  { %4460 = vtanh.f32 %v3002_v21  ;;  %v3020_v21 = vsub.f32 1.0, %v6392_v44 }
 0xffc   :  { %527 = vrot.lane.b32.xlu1 %v4953_v32, %s4564_s22  ;;  %v3013_v32 = vsub.f32 1.0, %v6357_v5 }
 0xffd   :  { %960 = vrot.lane.b32.xlu0 %v5181_v28, %s4564_s22 }
0x1001   :  { %v4461_v15 = vpop.eup %4460 }
0x1002   :  { %3039 = vrot.lane.b32.xlu2 %v4461_v15, %s4564_s22 }
0x1004   :  { %962 = vrot.lane.b32.xlu1 %v5173_v60, %s4564_s22  ;;  %v3061_v60 = vmul.f32 %v6357_v5, %v6174_v8 }
0x1005   :  { %1387 = vrot.lane.b32.xlu0 %v5426_v17, %s4564_s22  ;;  %v3015_v17 = vsub.f32 1.0, %v6362_v42 }
0x100c   :  { %1810 = vrot.lane.b32.xlu1 %v5682_v36, %s4564_s22  ;;  %v3014_v36 = vsub.f32 1.0, %v6296_v31 }
0x100d   :  { %2235 = vrot.lane.b32.xlu0 %v5926_v22, %s4564_s22 }
0x1014   :  { %2237 = vrot.lane.b32.xlu1 %v5918_v48, %s4564_s22  ;;  %v3062_v48 = vmul.f32 %v6296_v31, %v6166_v39  ;;  %v3016_v31 = vsub.f32 1.0, %v6316_v40 }
0x1015   :  { %2662 = vrot.lane.b32.xlu0 %v6166_v39, %s4564_s22 }
0x1054   :  { %v3030_v28 = vpop.permute.xlu2 %3029 }
0x1055   :  { %v3053_v16 = vmul.f32 %v3030_v28, %v3013_v32  ;;  %v3019_v28 = vsub.f32 1.0, %v6337_v1 }
0x1056   :  { %v3034_v38 = vpop.permute.xlu1 %3033 }
0x1057   :  { %v6433_v7 = vadd.f32 %v3061_v60, %v3053_v16  ;;  %v3032_v22 = vpop.permute.xlu0 %3031  ;;  %v3055_v41 = vmul.f32 %v3034_v38, %v3015_v17  ;;  %v3068_v38 = vmul.f32 %v6392_v44, %v6211_v23 }
0x1058   :  { %v3054_v63 = vmul.f32 %v3032_v22, %v3014_v36 }
0x1059   :  { %3085 = vrot.lane.b32.xlu1 %v6433_v7, %s4564_s22  ;;  %v6443_v11 = vadd.f32 %v3063_v4, %v3055_v41  ;;  %v3125_v26 = vpack.c.bf16 %v6433_v7, %v6433_v7 }
0x105a   :  { %v6441_v5 = vadd.f32 %v3062_v48, %v3054_v63  ;;  %v3067_v48 = vmul.f32 %v6337_v1, %v6209_v14 }
0x105b   :  { %v3127_v39 = vpack.c.bf16 %v6443_v11, %v6443_v11  ;;  %v3141_v45 = vunpack.c.l.b16 %v3125_v26 }
0x105c   :  { %v3126_v46 = vpack.c.bf16 %v6441_v5, %v6441_v5  ;;  %v3040_v29 = vpop.permute.xlu2 %3039 }
0x105d   :  { %v3058_v51 = vmul.f32 %v3040_v29, %v3018_v62  ;;  %v3143_v43 = vunpack.c.l.b16 %v3127_v39 }
0x105e   :  { %v3038_v42 = vpop.permute.xlu1 %3037  ;;  %v3142_v27 = vunpack.c.l.b16 %v3126_v46 }
0x105f   :  { %v3036_v57 = vpop.permute.xlu0 %3035  ;;  %v3057_v3 = vmul.f32 %v3038_v42, %v3017_v18  ;;  %v6464_v49 = vadd.f32 %v3066_v33, %v3058_v51  ;;  %v3151_v15 = vrot.slane %v3143_v43, 6 }
0x1060   :  { %v3056_v13 = vmul.f32 %v3036_v57, %v3016_v31  ;;  %v3149_v34 = vrot.slane %v3142_v27, 7 }
0x1061   :  { %v6460_v10 = vadd.f32 %v3065_v9, %v3057_v3  ;;  %v3130_v17 = vpack.c.bf16 %v6464_v49, %v6464_v49 }
0x1062   :  { %v6462_v19 = vadd.f32 %v3064_v61, %v3056_v13  ;;  %v3150_v16 = vsel %vm593_vm9, %v3149_v34, %v3141_v45 }
0x1063   :  { %v3129_v53 = vpack.c.bf16 %v6460_v10, %v6460_v10  ;;  %v3152_v46 = vsel %vm596_vm10, %v3151_v15, %v3150_v16  ;;  %v3146_v18 = vunpack.c.l.b16 %v3130_v17 }
0x1064   :  { %v3128_v40 = vpack.c.bf16 %v6462_v19, %v6462_v19 }
0x1065   :  { %v3145_v6 = vunpack.c.l.b16 %v3129_v53  ;;  %v3157_v57 = vrot.slane %v3146_v18, 3 }
0x1066   :  { %v3144_v32 = vunpack.c.l.b16 %v3128_v40  ;;  %v3044_v60 = vpop.permute.xlu1 %3043 }
0x1067   :  { %v3042_v36 = vpop.permute.xlu0 %3041  ;;  %v3060_v22 = vmul.f32 %v3044_v60, %v3020_v21  ;;  %v3155_v29 = vrot.slane %v3145_v6, 4 }
0x1068   :  { %v3153_v41 = vrot.slane %v3144_v32, 5  ;;  %v3059_v63 = vmul.f32 %v3042_v36, %v3019_v28 }
0x1069   :  { %v6479_v4 = vadd.f32 %v3068_v38, %v3060_v22 }
0x106a   :  { %v6482_v62 = vadd.f32 %v3067_v48, %v3059_v63  ;;  %v3154_v39 = vsel %vm599_vm11, %v3153_v41, %v3152_v46  ;;  %v6569_v46 = vld [vmem:[#allocation3 + $0x17] sm:$0x1] }
0x106b   :  { %v3132_v31 = vpack.c.bf16 %v6479_v4, %v6479_v4  ;;  %v3156_v1 = vsel %vm602_vm12, %v3155_v29, %v3154_v39 }
0x106c   :  { %v3131_v44 = vpack.c.bf16 %v6482_v62, %v6482_v62  ;;  %v3158_v13 = vsel %vm605_vm13, %v3157_v57, %v3156_v1 }
0x106d   :  { %v3148_v42 = vunpack.c.l.b16 %v3132_v31 }
0x106e   :  { %v3147_v27 = vunpack.c.l.b16 %v3131_v44  ;;  %v528_v51 = vpop.permute.xlu1 %527 }
0x106f   :  { %v3161_v9 = vrot.slane %v3148_v42, 1  ;;  %v961_v3 = vpop.permute.xlu0 %960  ;;  %552 = vst.msk [vmem:[#allocation4] sm:$0x1] %vm551_vm0, %v528_v51  ;;  %v6577_v51 = vld [vmem:[#allocation3 + $0x1f] sm:$0x1] }
0x1070   :  { %v3159_v61 = vrot.slane %v3147_v27, 2  ;;  %984 = vst.msk [vmem:[#allocation4 + $0x1] sm:$0x1] %vm551_vm0, %v961_v3 }
0x1072   :  { %v3160_v26 = vsel %vm608_vm14, %v3159_v61, %v3158_v13 }
0x1073   :  { %v3162_v33 = vsel %vm611_vm15, %v3161_v9, %v3160_v26  ;;  %v6579_v9 = vld [vmem:[#allocation3 + $0x2f] sm:$0x1]  ;;  %v6584_v26 = vld [vmem:[#allocation3 + $0x27] sm:$0x1] }
0x1074   :  { %v3163_v43 = vpack.c.b16 %v3162_v33, %v3162_v33 }
0x1076   :  { %3164 = vrot.lane.b32.xlu2 %v3163_v43, %s4564_s22  ;;  %v963_v34 = vpop.permute.xlu1 %962 }
0x1077   :  { %v1388_v53 = vpop.permute.xlu0 %1387  ;;  %985 = vst.msk [vmem:[#allocation4 + $0x9] sm:$0x1] %vm551_vm0, %v963_v34 }
0x1078   :  { %1410 = vst.msk [vmem:[#allocation4 + $0xa] sm:$0x1] %vm551_vm0, %v1388_v53 }
0x107e   :  { %529 = vrot.lane.b32.xlu2 %v4941_v47, %s4564_s22  ;;  %v1811_v40 = vpop.permute.xlu1 %1810 }
0x107f   :  { %v2236_v45 = vpop.permute.xlu0 %2235  ;;  %1834 = vst.msk [vmem:[#allocation4 + $0x3] sm:$0x1] %vm551_vm0, %v1811_v40 }
0x1080   :  { %2259 = vst.msk [vmem:[#allocation4 + $0x4] sm:$0x1] %vm551_vm0, %v2236_v45 }
0x1086   :  { %1385 = vrot.lane.b32.xlu2 %v5434_v37, %s4564_s22  ;;  %v2238_v21 = vpop.permute.xlu1 %2237 }
0x1087   :  { %v2663_v15 = vpop.permute.xlu0 %2662  ;;  %2260 = vst.msk [vmem:[#allocation4 + $0xc] sm:$0x1] %vm551_vm0, %v2238_v21 }
0x1088   :  { %2685 = vst.msk [vmem:[#allocation4 + $0xd] sm:$0x1] %vm551_vm0, %v2663_v15 }
0x108e   :  { %1812 = vrot.lane.b32.xlu2 %v5674_v25, %s4564_s22 }
0x1096   :  { %2660 = vrot.lane.b32.xlu2 %v6174_v8, %s4564_s22 }
0x109e   :  { %3087 = vrot.lane.b32.xlu2 %v6441_v5, %s4564_s22 }
0x10a6   :  { %533 = vrot.lane.b32.xlu2 %v4947_v30, %s4564_s22 }
0x10ae   :  { %1389 = vrot.lane.b32.xlu2 %v5428_v0, %s4564_s22 }
0x10cb   :  { %v3086_v47 = vpop.permute.xlu1 %3085 }
0x10cc   :  { %3109 = vst.msk [vmem:[#allocation4 + $0x6] sm:$0x1] %vm551_vm0, %v3086_v47 }
0x10d0   :  { %v3165_v37 = vpop.permute.xlu2 %3164 }
0x10d1   :  { %4059 = vmatmul.msk.bf16.vlgmr.msrb.gmra.mxu2 %vm43_vm1, %v3165_v37 }
0x10d8   :  { %v530_v32 = vpop.permute.xlu2 %529 }
0x10d9   :  { %553 = vst.msk [vmem:[#allocation4 + $0x8] sm:$0x1] %vm551_vm0, %v530_v32  ;;  %v6591_v32 = vld [vmem:[#allocation3 + $0x3f] sm:$0x1] }
0x10e0   :  { %v1386_v25 = vpop.permute.xlu2 %1385 }
0x10e1   :  { %1409 = vst.msk [vmem:[#allocation4 + $0x2] sm:$0x1] %vm551_vm0, %v1386_v25 }
0x10e8   :  { %v1813_v8 = vpop.permute.xlu2 %1812 }
0x10e9   :  { %1835 = vst.msk [vmem:[#allocation4 + $0xb] sm:$0x1] %vm551_vm0, %v1813_v8 }
0x10f0   :  { %v2661_v6 = vpop.permute.xlu2 %2660 }
0x10f1   :  { %2684 = vst.msk [vmem:[#allocation4 + $0x5] sm:$0x1] %vm551_vm0, %v2661_v6 }
0x10f8   :  { %v3088_v30 = vpop.permute.xlu2 %3087 }
0x10f9   :  { %3110 = vst.msk [vmem:[#allocation4 + $0xe] sm:$0x1] %vm551_vm0, %v3088_v30 }
0x1100   :  { %v534_v0 = vpop.permute.xlu2 %533 }
0x1101   :  { %555 = vst.msk [vmem:[#allocation4 + $0x18] sm:$0x1] %vm551_vm0, %v534_v0 }
0x1108   :  { %v1390_v28 = vpop.permute.xlu2 %1389 }
0x1109   :  { %1411 = vst.msk [vmem:[#allocation4 + $0x12] sm:$0x1] %vm551_vm0, %v1390_v28 }
0x1154   :  { %v3178_v60 = vpop.f32.mrf.mxu2 }
0x1155   :  { %v6526_v16 = vadd.f32 %v6227_v20, %v3178_v60 }
0x1157   :  { %3358 = vrot.lane.b32.xlu0 %v6526_v16, %s4562_s20  ;;  %v3184_v17 = vrot.slane %v6526_v16, 2  ;;  %v3183_v36 = vrot.slane %v6526_v16, 1  ;;  %v3187_v20 = vrot.slane %v6526_v16, 5 }
0x1159   :  { %3362 = vrot.lane.b32.xlu2 %v3184_v17, %s4562_s20  ;;  %3360 = vrot.lane.b32.xlu1 %v3183_v36, %s4562_s20  ;;  %v3200_v18 = vadd.f32 %v3184_v17, %v6569_v46  ;;  %v3203_v13 = vadd.f32 %v3187_v20, %v6579_v9 }
0x115b   :  { %v4062_v31 = vmul.f32 -1.442695, %v3200_v18  ;;  %v4065_v21 = vmul.f32 -1.442695, %v3203_v13 }
0x115c   :  { %v3180_v38 = vpop.f32.mrf.mxu2 }
0x115f   :  { %964 = vrot.lane.b32.xlu0 %v5175_v2, %s4564_s22  ;;  %v3188_v2 = vrot.slane %v6526_v16, 6 }
0x1161   :  { %1816 = vrot.lane.b32.xlu2 %v5699_v50, %s4564_s22  ;;  %531 = vrot.lane.b32.xlu1 %v4945_v24, %s4564_s22  ;;  %v3185_v24 = vrot.slane %v6526_v16, 3  ;;  %v6562_v50 = vld [vmem:[#allocation3 + $0x7] sm:$0x1] }
0x1163   :  { %v3201_v3 = vadd.f32 %v3185_v24, %v6577_v51 }
0x1165   :  { %v4063_v40 = vmul.f32 -1.442695, %v3201_v3 }
0x1167   :  { %1391 = vrot.lane.b32.xlu0 %v5449_v54, %s4564_s22  ;;  %v3186_v54 = vrot.slane %v6526_v16, 4 }
0x1169   :  { %3368 = vrot.lane.b32.xlu2 %v3187_v20, %s4562_s20  ;;  %966 = vrot.lane.b32.xlu1 %v5196_v55, %s4564_s22  ;;  %v3189_v55 = vrot.slane %v6526_v16, 7  ;;  %v3202_v33 = vadd.f32 %v3186_v54, %v6584_v26 }
0x116b   :  { %v4064_v15 = vmul.f32 -1.442695, %v3202_v33  ;;  %v3205_v25 = vadd.f32 %v3189_v55, %v6591_v32  ;;  %v6633_v33 = vld [vmem:[#allocation3 + $0x37] sm:$0x1] }
0x116d   :  { %v4067_v20 = vmul.f32 -1.442695, %v3205_v25 }
0x116f   :  { %2239 = vrot.lane.b32.xlu0 %v5920_v56, %s4564_s22  ;;  %v6566_v56 = vld [vmem:[#allocation3 + $0xf] sm:$0x1] }
0x1170   :  { %v3199_v22 = vadd.f32 %v3183_v36, %v6566_v56 }
0x1171   :  { %3370 = vrot.lane.b32.xlu2 %v3188_v2, %s4562_s20  ;;  %1814 = vrot.lane.b32.xlu1 %v5676_v12, %s4564_s22  ;;  %v3198_v12 = vadd.f32 %v6526_v16, %v6562_v50 }
0x1172   :  { %v4061_v48 = vmul.f32 -1.442695, %v3199_v22 }
0x1173   :  { %v4060_v41 = vmul.f32 -1.442695, %v3198_v12 }
0x1175   :  { %4462 = vpow2.f32 %v4060_v41 }
0x1176   :  { %4464 = vpow2.f32 %v4061_v48 }
0x1177   :  { %3364 = vrot.lane.b32.xlu0 %v3185_v24, %s4562_s20 }
0x1179   :  { %2664 = vrot.lane.b32.xlu2 %v6168_v35, %s4564_s22  ;;  %3366 = vrot.lane.b32.xlu1 %v3186_v54, %s4562_s20 }
0x117b   :  { %v4463_v35 = vpop.eup %4462 }
0x117c   :  { %v4465_v63 = vpop.eup %4464  ;;  %v3230_v29 = vadd.f32 1.0, %v4463_v35 }
0x117d   :  { %v6572_v39 = vadd.f32 1.0, %v4465_v63 }
0x117e   :  { %4466 = vrcp.f32 %v3230_v29  ;;  %v3249_v30 = vand.u32 2147483648, %v3230_v29  ;;  %vm3243_vm3 = vweird.f32 %v3230_v29  ;;  %v3247_v0 = vand.u32 2147483647, %v3230_v29 }
0x117f   :  { %3372 = vrot.lane.b32.xlu0 %v3189_v55, %s4562_s20  ;;  %4468 = vrcp.f32 %v6572_v39  ;;  %v3264_v36 = vand.u32 2147483648, %v6572_v39  ;;  %vm3258_vm6 = vweird.f32 %v6572_v39  ;;  %v3262_v54 = vand.u32 2147483647, %v6572_v39 }
0x1180   :  { %4470 = vpow2.f32 %v4062_v31  ;;  %v3250_v12 = vor.u32 1.1754944e-38, %v3249_v30  ;;  %vm3248_vm8 = vcmp.eq.f32.partialorder %v3247_v0, 8.507059e+37 }
0x1184   :  { %v4467_v44 = vpop.eup %4466 }
0x1185   :  { %v4469_v1 = vpop.eup %4468  ;;  %v3239_v27 = vmul.f32 %v4467_v44, %v3230_v29  ;;  %vm3244_vm2 = vweird.f32 %v4467_v44 }
0x1186   :  { %v4471_v57 = vpop.eup %4470  ;;  %v3254_v61 = vmul.f32 %v4469_v1, %v6572_v39  ;;  %vm3259_vm4 = vweird.f32 %v4469_v1  ;;  %vm6598_vm5 = vmor %vm3243_vm3, %vm3244_vm2  ;;  %v3265_v39 = vor.u32 1.1754944e-38, %v3264_v36  ;;  %vm3263_vm2 = vcmp.eq.f32.partialorder %v3262_v54, 8.507059e+37 }
0x1187   :  { %v3240_v43 = vsub.f32 1.0, %v3239_v27  ;;  %v6587_v34 = vadd.f32 1.0, %v4471_v57  ;;  %vm6607_vm7 = vmor %vm3258_vm6, %vm3259_vm4 }
0x1188   :  { %v3255_v45 = vsub.f32 1.0, %v3254_v61 }
0x1189   :  { %v3241_v47 = vmul.f32 %v4467_v44, %v3240_v43  ;;  %4472 = vrcp.f32 %v6587_v34  ;;  %vm3273_vm4 = vweird.f32 %v6587_v34  ;;  %v3277_v0 = vand.u32 2147483647, %v6587_v34 }
0x118a   :  { %4474 = vpow2.f32 %v4063_v40  ;;  %v3256_v37 = vmul.f32 %v4469_v1, %v3255_v45 }
0x118b   :  { %4476 = vpow2.f32 %v4065_v21  ;;  %v3242_v8 = vadd.f32 %v4467_v44, %v3241_v47  ;;  %vm3278_vm6 = vcmp.eq.f32.partialorder %v3277_v0, 8.507059e+37 }
0x118c   :  { %4478 = vpow2.f32 %v4064_v15  ;;  %v3257_v28 = vadd.f32 %v4469_v1, %v3256_v37 }
0x118d   :  { %v3246_v24 = vsel %vm6598_vm5, %v4467_v44, %v3242_v8  ;;  %4480 = vpow2.f32 %v4067_v20 }
0x118e   :  { %v3261_v35 = vsel %vm6607_vm7, %v4469_v1, %v3257_v28  ;;  %v6617_v18 = vsel %vm3248_vm8, %v3250_v12, %v3246_v24  ;;  %v7207_v28 = vld [vmem:[#allocation21_spill] sm:$0xff] }
0x118f   :  { %v6596_v60 = vpop.eup %4472  ;;  %v6626_v3 = vsel %vm3263_vm2, %v3265_v39, %v3261_v35 }
0x1190   :  { %v4475_v38 = vpop.eup %4474  ;;  %v3269_v48 = vmul.f32 %v6596_v60, %v6587_v34  ;;  %vm3274_vm3 = vweird.f32 %v6596_v60 }
0x1191   :  { %v4477_v55 = vpop.eup %4476  ;;  %v6615_v63 = vadd.f32 1.0, %v4475_v38  ;;  %vm3275_vm5 = vmor %vm3273_vm4, %vm3274_vm3 }
0x1192   :  { %v4479_v41 = vpop.eup %4478  ;;  %v6619_v31 = vadd.f32 1.0, %v4477_v55  ;;  %v3270_v1 = vsub.f32 1.0, %v3269_v48 }
0x1193   :  { %v6622_v27 = vadd.f32 1.0, %v4479_v41  ;;  %4482 = vrcp.f32 %v6615_v63  ;;  %v4481_v43 = vpop.eup %4480  ;;  %vm3288_vm2 = vweird.f32 %v6615_v63 }
0x1194   :  { %4484 = vrcp.f32 %v6619_v31  ;;  %v3271_v40 = vmul.f32 %v6596_v60, %v3270_v1  ;;  %v6643_v15 = vadd.f32 1.0, %v4481_v43  ;;  %vm3318_vm4 = vweird.f32 %v6619_v31 }
0x1195   :  { %4486 = vrcp.f32 %v6622_v27 }
0x1196   :  { %v3272_v30 = vadd.f32 %v6596_v60, %v3271_v40  ;;  %4488 = vrcp.f32 %v6643_v15  ;;  %v3294_v40 = vand.u32 2147483648, %v6615_v63 }
0x1198   :  { %v3276_v36 = vsel %vm3275_vm5, %v6596_v60, %v3272_v30  ;;  %v7208_v60 = vld [vmem:[#allocation5_spill] sm:$0xff] }
0x1199   :  { %v6641_v21 = vpop.eup %4482 }
0x119a   :  { %v6645_v25 = vpop.eup %4484  ;;  %v3284_v17 = vmul.f32 %v6641_v21, %v6615_v63  ;;  %vm3289_vm7 = vweird.f32 %v6641_v21 }
0x119b   :  { %v6652_v16 = vpop.eup %4486  ;;  %vm3319_vm8 = vweird.f32 %v6645_v25  ;;  %vm6700_vm5 = vmor %vm3288_vm2, %vm3289_vm7  ;;  %vm3303_vm7 = vweird.f32 %v6622_v27 }
0x119c   :  { %v3299_v38 = vmul.f32 %v6652_v16, %v6622_v27  ;;  %v3285_v24 = vsub.f32 1.0, %v3284_v17  ;;  %v6676_v48 = vpop.eup %4488  ;;  %vm3304_vm3 = vweird.f32 %v6652_v16  ;;  %v3307_v17 = vand.u32 2147483647, %v6622_v27 }
0x119d   :  { %vm3305_vm2 = vmor %vm3303_vm7, %vm3304_vm3  ;;  %vm3349_vm3 = vweird.f32 %v6676_v48 }
0x119e   :  { %v3300_v41 = vsub.f32 1.0, %v3299_v38 }
0x11b3   :  { %v6575_v42 = vpop.permute.xlu2 %3362 }
0x11bb   :  { %v1817_v53 = vpop.permute.xlu2 %1816 }
0x11bc   :  { %1837 = vst.msk [vmem:[#allocation4 + $0x1b] sm:$0x1] %vm551_vm0, %v1817_v53  ;;  %v3204_v53 = vadd.f32 %v3188_v2, %v6633_v33  ;;  %v3279_v2 = vand.u32 2147483648, %v6587_v34 }
0x11be   :  { %v4066_v8 = vmul.f32 -1.442695, %v3204_v53  ;;  %v3280_v20 = vor.u32 1.1754944e-38, %v3279_v2  ;;  %v3309_v2 = vand.u32 2147483648, %v6622_v27 }
0x11c0   :  { %4490 = vpow2.f32 %v4066_v8  ;;  %v6669_v54 = vsel %vm3278_vm6, %v3280_v20, %v3276_v36  ;;  %v3324_v8 = vand.u32 2147483648, %v6619_v31  ;;  %vm6705_vm6 = vmor %vm3318_vm4, %vm3319_vm8 }
0x11c1   :  { %v3384_v22 = vmul.f32 %v6575_v42, %v6669_v54  ;;  %v3344_v42 = vmul.f32 %v6676_v48, %v6643_v15 }
0x11c2   :  { %v3325_v20 = vor.u32 1.1754944e-38, %v3324_v8  ;;  %v7215_v8 = vld [vmem:[#allocation14_spill] sm:$0xff] }
0x11c3   :  { %v6594_v6 = vpop.permute.xlu2 %3368 }
0x11c6   :  { %v4491_v35 = vpop.eup %4490 }
0x11c9   :  { %v3359_v29 = vpop.permute.xlu0 %3358 }
0x11ca   :  { %v3382_v44 = vmul.f32 %v3359_v29, %v6617_v18  ;;  %v3286_v29 = vmul.f32 %v6641_v21, %v3285_v24 }
0x11cb   :  { %v6624_v57 = vpop.permute.xlu2 %3370  ;;  %v3361_v61 = vpop.permute.xlu1 %3360 }
0x11cc   :  { %v3383_v13 = vmul.f32 %v3361_v61, %v6626_v3  ;;  %3398 = vrot.lane.b32.xlu0 %v3382_v44, %s4562_s20  ;;  %v3301_v44 = vmul.f32 %v6652_v16, %v3300_v41  ;;  %v6684_v61 = vadd.f32 1.0, %v4491_v35  ;;  %v3354_v35 = vand.u32 2147483648, %v6643_v15 }
0x11ce   :  { %3400 = vrot.lane.b32.xlu1 %v3383_v13, %s4562_s20  ;;  %v3287_v13 = vadd.f32 %v6641_v21, %v3286_v29  ;;  %4492 = vrcp.f32 %v6684_v61 }
0x11d1   :  { %v965_v45 = vpop.permute.xlu0 %964 }
0x11d2   :  { %986 = vst.msk [vmem:[#allocation4 + $0x11] sm:$0x1] %vm551_vm0, %v965_v45  ;;  %v3292_v45 = vand.u32 2147483647, %v6615_v63  ;;  %v3322_v63 = vand.u32 2147483647, %v6619_v31 }
0x11d3   :  { %v2665_v47 = vpop.permute.xlu2 %2664  ;;  %v532_v37 = vpop.permute.xlu1 %531 }
0x11d4   :  { %2686 = vst.msk [vmem:[#allocation4 + $0x15] sm:$0x1] %vm551_vm0, %v2665_v47  ;;  %2666 = vrot.lane.b32.xlu0 %v6189_v59, %s4564_s22  ;;  %v3314_v59 = vmul.f32 %v6645_v25, %v6619_v31  ;;  %v3302_v47 = vadd.f32 %v6652_v16, %v3301_v44  ;;  %vm3293_vm8 = vcmp.eq.f32.partialorder %v3292_v45, 8.507059e+37  ;;  %vm3323_vm4 = vcmp.eq.f32.partialorder %v3322_v63, 8.507059e+37  ;;  %v4493_v27 = vpop.eup %4492  ;;  %v7216_v63 = vld [vmem:[#allocation18_spill] sm:$0xff] }
0x11d5   :  { %554 = vst.msk [vmem:[#allocation4 + $0x10] sm:$0x1] %vm551_vm0, %v532_v37  ;;  %v3345_v37 = vsub.f32 1.0, %v3344_v42  ;;  %v3329_v29 = vmul.f32 %v4493_v27, %v6684_v61  ;;  %v3355_v44 = vor.u32 1.1754944e-38, %v3354_v35  ;;  %v3337_v45 = vand.u32 2147483647, %v6684_v61 }
0x11d6   :  { %2241 = vrot.lane.b32.xlu1 %v7207_v28, %s4564_s22  ;;  %v3315_v55 = vsub.f32 1.0, %v3314_v59  ;;  %v3291_v28 = vsel %vm6700_vm5, %v6641_v21, %v3287_v13  ;;  %v3295_v59 = vor.u32 1.1754944e-38, %v3294_v40  ;;  %v3306_v31 = vsel %vm3305_vm2, %v6652_v16, %v3302_v47  ;;  %v7213_v40 = vld [vmem:[#allocation10_spill] sm:$0xff]  ;;  %v7219_v35 = vld [vmem:[#allocation17_spill] sm:$0xff] }
0x11d7   :  { %v3346_v38 = vmul.f32 %v6676_v48, %v3345_v37  ;;  %v3310_v21 = vor.u32 1.1754944e-38, %v3309_v2  ;;  %vm3308_vm5 = vcmp.eq.f32.partialorder %v3307_v17, 8.507059e+37  ;;  %v7214_v47 = vld [vmem:[#allocation6_spill] sm:$0xff] }
0x11d8   :  { %v3316_v39 = vmul.f32 %v6645_v25, %v3315_v55  ;;  %v6722_v24 = vsel %vm3293_vm8, %v3295_v59, %v3291_v28  ;;  %vm3334_vm8 = vweird.f32 %v4493_v27 }
0x11d9   :  { %v1392_v34 = vpop.permute.xlu0 %1391  ;;  %v3347_v41 = vadd.f32 %v6676_v48, %v3346_v38 }
0x11da   :  { %1412 = vst.msk [vmem:[#allocation4 + $0x1a] sm:$0x1] %vm551_vm0, %v1392_v34  ;;  %v3317_v43 = vadd.f32 %v6645_v25, %v3316_v39 }
0x11db   :  { %v967_v12 = vpop.permute.xlu1 %966 }
0x11dc   :  { %987 = vst.msk [vmem:[#allocation4 + $0x19] sm:$0x1] %vm551_vm0, %v967_v12  ;;  %537 = vrot.lane.b32.xlu0 %v7208_v60, %s4564_s22  ;;  %v3321_v36 = vsel %vm6705_vm6, %v6645_v25, %v3317_v43  ;;  %vm3348_vm6 = vweird.f32 %v6643_v15 }
0x11dd   :  { %v6725_v12 = vsel %vm3323_vm4, %v3325_v20, %v3321_v36  ;;  %vm3350_vm7 = vmor %vm3348_vm6, %vm3349_vm3  ;;  %vm3333_vm4 = vweird.f32 %v6684_v61  ;;  %vm3338_vm3 = vcmp.eq.f32.partialorder %v3337_v45, 8.507059e+37 }
0x11de   :  { %3402 = vrot.lane.b32.xlu1 %v3384_v22, %s4562_s20  ;;  %v6727_v22 = vsel %vm3308_vm5, %v3310_v21, %v3306_v31  ;;  %v3387_v16 = vmul.f32 %v6594_v6, %v6725_v12  ;;  %v3352_v6 = vand.u32 2147483647, %v6643_v15  ;;  %v3351_v39 = vsel %vm3350_vm7, %v6676_v48, %v3347_v41  ;;  %vm3335_vm5 = vmor %vm3333_vm4, %vm3334_vm8 }
0x11df   :  { %v3339_v48 = vand.u32 2147483648, %v6684_v61 }
0x11e0   :  { %vm3353_vm2 = vcmp.eq.f32.partialorder %v3352_v6, 8.507059e+37 }
0x11e1   :  { %v2240_v1 = vpop.permute.xlu0 %2239  ;;  %v6742_v13 = vsel %vm3353_vm2, %v3355_v44, %v3351_v39  ;;  %v3340_v30 = vor.u32 1.1754944e-38, %v3339_v48  ;;  %v7221_v44 = vld [vmem:[#allocation22_spill] sm:$0xff] }
0x11e2   :  { %2261 = vst.msk [vmem:[#allocation4 + $0x14] sm:$0x1] %vm551_vm0, %v2240_v1  ;;  %v3330_v1 = vsub.f32 1.0, %v3329_v29 }
0x11e3   :  { %v1815_v53 = vpop.permute.xlu1 %1814 }
0x11e4   :  { %1836 = vst.msk [vmem:[#allocation4 + $0x13] sm:$0x1] %vm551_vm0, %v1815_v53  ;;  %v3331_v53 = vmul.f32 %v4493_v27, %v3330_v1 }
0x11e6   :  { %3089 = vrot.lane.b32.xlu1 %v6443_v11, %s4564_s22  ;;  %v3332_v15 = vadd.f32 %v4493_v27, %v3331_v53 }
0x11e8   :  { %v3336_v37 = vsel %vm3335_vm5, %v4493_v27, %v3332_v15 }
0x11e9   :  { %v3365_v34 = vpop.permute.xlu0 %3364  ;;  %v6757_v2 = vsel %vm3338_vm3, %v3340_v30, %v3336_v37  ;;  %v7224_v37 = vld [vmem:[#allocation11_spill] sm:$0xff]  ;;  %v3439_v30 = vsub.f32 1.0, %v6626_v3 }
0x11ea   :  { %v3385_v55 = vmul.f32 %v3365_v34, %v6722_v24  ;;  %v3388_v0 = vmul.f32 %v6624_v57, %v6757_v2 }
0x11eb   :  { %v3367_v25 = vpop.permute.xlu1 %3366 }
0x11ec   :  { %v3386_v60 = vmul.f32 %v3367_v25, %v6727_v22  ;;  %3404 = vrot.lane.b32.xlu2 %v3385_v55, %s4562_s20  ;;  %v7218_v25 = vld [vmem:[#allocation9_spill] sm:$0xff] }
0x11ee   :  { %3408 = vrot.lane.b32.xlu1 %v3387_v16, %s4562_s20  ;;  %3406 = vrot.lane.b32.xlu0 %v3386_v60, %s4562_s20 }
0x11f1   :  { %v3373_v42 = vpop.permute.xlu0 %3372 }
0x11f2   :  { %v3389_v43 = vmul.f32 %v3373_v42, %v6742_v13 }
0x11f4   :  { %3091 = vrot.lane.b32.xlu2 %v6462_v19, %s4564_s22 }
0x11f6   :  { %968 = vrot.lane.b32.xlu1 %v7213_v40, %s4564_s22  ;;  %3412 = vrot.lane.b32.xlu0 %v3389_v43, %s4562_s20 }
0x11fc   :  { %535 = vrot.lane.b32.xlu2 %v7214_v47, %s4564_s22 }
0x11fe   :  { %1393 = vrot.lane.b32.xlu0 %v7215_v8, %s4564_s22  ;;  %v7225_v8 = vld [vmem:[#allocation16_spill] sm:$0xff] }
0x1204   :  { %3410 = vrot.lane.b32.xlu2 %v3388_v0, %s4562_s20 }
0x1206   :  { %1820 = vrot.lane.b32.xlu0 %v7216_v63, %s4564_s22  ;;  %v3487_v63 = vmul.f32 %v6626_v3, %v6441_v5 }
0x123e   :  { %v3399_v61 = vpop.permute.xlu0 %3398 }
0x123f   :  { %v3422_v28 = vadd.f32 %v3399_v61, %v6562_v50 }
0x1240   :  { %v3401_v17 = vpop.permute.xlu1 %3400 }
0x1241   :  { %4494 = vtanh.f32 %v3422_v28  ;;  %v3423_v59 = vadd.f32 %v3401_v17, %v6566_v56  ;;  %v7217_v56 = vld [vmem:[#allocation13_spill] sm:$0xff] }
0x1243   :  { %4496 = vtanh.f32 %v3423_v59  ;;  %v7227_v59 = vld [vmem:[#allocation15_spill] sm:$0xff] }
0x1246   :  { %v2667_v36 = vpop.permute.xlu0 %2666  ;;  %v3405_v31 = vpop.permute.xlu2 %3404 }
0x1247   :  { %v4495_v38 = vpop.eup %4494  ;;  %2687 = vst.msk [vmem:[#allocation4 + $0x1d] sm:$0x1] %vm551_vm0, %v2667_v36  ;;  %v3425_v50 = vadd.f32 %v3405_v31, %v6577_v51  ;;  %v3438_v31 = vsub.f32 1.0, %v6617_v18 }
0x1248   :  { %3454 = vrot.lane.b32.xlu1 %v4495_v38, %s4564_s22  ;;  %v2242_v57 = vpop.permute.xlu1 %2241 }
0x1249   :  { %v4497_v20 = vpop.eup %4496  ;;  %2262 = vst.msk [vmem:[#allocation4 + $0x1c] sm:$0x1] %vm551_vm0, %v2242_v57  ;;  %4498 = vtanh.f32 %v3425_v50  ;;  %v3486_v57 = vmul.f32 %v6617_v18, %v6433_v7  ;;  %v3441_v7 = vsub.f32 1.0, %v6722_v24 }
0x124a   :  { %3456 = vrot.lane.b32.xlu2 %v4497_v20, %s4564_s22 }
0x124e   :  { %v538_v34 = vpop.permute.xlu0 %537  ;;  %v3092_v21 = vpop.permute.xlu2 %3091 }
0x124f   :  { %557 = vst.msk [vmem:[#allocation4 + $0x28] sm:$0x1] %vm551_vm0, %v538_v34  ;;  %v4499_v60 = vpop.eup %4498 }
0x1250   :  { %3112 = vst.msk [vmem:[#allocation4 + $0x1e] sm:$0x1] %vm551_vm0, %v3092_v21  ;;  %1395 = vrot.lane.b32.xlu1 %v7217_v56, %s4564_s22  ;;  %v3403_v55 = vpop.permute.xlu1 %3402 }
0x1251   :  { %v3424_v27 = vadd.f32 %v3403_v55, %v6569_v46  ;;  %v7220_v46 = vld [vmem:[#allocation23_spill] sm:$0xff]  ;;  %v7228_v55 = vld [vmem:[#allocation12_spill] sm:$0xff] }
0x1252   :  { %970 = vrot.lane.b32.xlu2 %v7218_v25, %s4564_s22 }
0x1253   :  { %4500 = vtanh.f32 %v3424_v27  ;;  %v3442_v27 = vsub.f32 1.0, %v6727_v22 }
0x1256   :  { %v536_v16 = vpop.permute.xlu2 %535 }
0x1257   :  { %556 = vst.msk [vmem:[#allocation4 + $0x20] sm:$0x1] %vm551_vm0, %v536_v16  ;;  %v3489_v16 = vmul.f32 %v6722_v24, %v6462_v19 }
0x1258   :  { %3460 = vrot.lane.b32.xlu1 %v4499_v60, %s4564_s22  ;;  %v3090_v51 = vpop.permute.xlu1 %3089 }
0x1259   :  { %v4501_v41 = vpop.eup %4500  ;;  %3111 = vst.msk [vmem:[#allocation4 + $0x16] sm:$0x1] %vm551_vm0, %v3090_v51  ;;  %v3440_v51 = vsub.f32 1.0, %v6669_v54 }
0x125a   :  { %1818 = vrot.lane.b32.xlu2 %v7219_v35, %s4564_s22  ;;  %3458 = vrot.lane.b32.xlu0 %v4501_v41, %s4564_s22 }
0x1260   :  { %2243 = vrot.lane.b32.xlu1 %v7220_v46, %s4564_s22  ;;  %v3407_v29 = vpop.permute.xlu0 %3406  ;;  %v3409_v6 = vpop.permute.xlu1 %3408  ;;  %v3490_v46 = vmul.f32 %v6727_v22, %v6460_v10 }
0x1261   :  { %v3426_v39 = vadd.f32 %v3407_v29, %v6584_v26  ;;  %v3411_v26 = vpop.permute.xlu2 %3410  ;;  %v3427_v40 = vadd.f32 %v3409_v6, %v6579_v9  ;;  %v3488_v6 = vmul.f32 %v6669_v54, %v6443_v11  ;;  %v7229_v54 = vld [vmem:[#allocation19_spill] sm:$0xff] }
0x1262   :  { %2245 = vrot.lane.b32.xlu2 %v7221_v44, %s4564_s22  ;;  %2668 = vrot.lane.b32.xlu0 %v6193_v58, %s4564_s22  ;;  %v3428_v53 = vadd.f32 %v3411_v26, %v6633_v33  ;;  %v7222_v58 = vld [vmem:[#allocation8_spill] sm:$0xff] }
0x1263   :  { %4502 = vtanh.f32 %v3426_v39 }
0x1264   :  { %4504 = vtanh.f32 %v3428_v53 }
0x1265   :  { %4506 = vtanh.f32 %v3427_v40  ;;  %v7230_v40 = vld [vmem:[#allocation20_spill] sm:$0xff] }
0x1268   :  { %2670 = vrot.lane.b32.xlu1 %v6191_v52, %s4564_s22  ;;  %v3413_v42 = vpop.permute.xlu0 %3412  ;;  %v969_v1 = vpop.permute.xlu1 %968  ;;  %v7223_v52 = vld [vmem:[#allocation7_spill] sm:$0xff] }
0x1269   :  { %v4503_v43 = vpop.eup %4502  ;;  %988 = vst.msk [vmem:[#allocation4 + $0x21] sm:$0x1] %vm551_vm0, %v969_v1  ;;  %v3429_v48 = vadd.f32 %v3413_v42, %v6591_v32  ;;  %v7226_v32 = vld [vmem:[#allocation24_spill] sm:$0xff] }
0x126a   :  { %3462 = vrot.lane.b32.xlu2 %v4503_v43, %s4564_s22  ;;  %3095 = vrot.lane.b32.xlu0 %v6464_v49, %s4564_s22  ;;  %v4505_v45 = vpop.eup %4504 }
0x126b   :  { %v4507_v47 = vpop.eup %4506  ;;  %4508 = vtanh.f32 %v3429_v48  ;;  %v7231_v48 = vld [vmem:[#allocation25_spill] sm:$0xff] }
0x1270   :  { %541 = vrot.lane.b32.xlu1 %v7222_v58, %s4564_s22  ;;  %v1394_v15 = vpop.permute.xlu0 %1393 }
0x1271   :  { %1413 = vst.msk [vmem:[#allocation4 + $0x22] sm:$0x1] %vm551_vm0, %v1394_v15  ;;  %v4509_v9 = vpop.eup %4508 }
0x1272   :  { %3093 = vrot.lane.b32.xlu2 %v6460_v10, %s4564_s22  ;;  %539 = vrot.lane.b32.xlu0 %v7223_v52, %s4564_s22 }
0x1278   :  { %v1821_v33 = vpop.permute.xlu0 %1820 }
0x1279   :  { %1839 = vst.msk [vmem:[#allocation4 + $0x2b] sm:$0x1] %vm551_vm0, %v1821_v33 }
0x127a   :  { %3466 = vrot.lane.b32.xlu2 %v4505_v45, %s4564_s22  ;;  %3464 = vrot.lane.b32.xlu0 %v4507_v47, %s4564_s22 }
0x1282   :  { %972 = vrot.lane.b32.xlu2 %v7224_v37, %s4564_s22  ;;  %3468 = vrot.lane.b32.xlu0 %v4509_v9, %s4564_s22  ;;  %v3444_v9 = vsub.f32 1.0, %v6757_v2 }
0x128a   :  { %1399 = vrot.lane.b32.xlu2 %v7225_v8, %s4564_s22  ;;  %v3443_v8 = vsub.f32 1.0, %v6725_v12 }
0x1292   :  { %2247 = vrot.lane.b32.xlu2 %v7226_v32, %s4564_s22  ;;  %v3492_v32 = vmul.f32 %v6757_v2, %v6482_v62 }
0x12a4   :  { %v3457_v0 = vpop.permute.xlu2 %3456 }
0x12a5   :  { %v3479_v61 = vmul.f32 %v3457_v0, %v3439_v30 }
0x12a7   :  { %v3495_v28 = vadd.f32 %v3487_v63, %v3479_v61  ;;  %v3491_v63 = vmul.f32 %v6725_v12, %v6464_v49  ;;  %v3493_v49 = vmul.f32 %v6742_v13, %v6479_v4 }
0x12a9   :  { %3512 = vrot.lane.b32.xlu1 %v3495_v28, %s4564_s22  ;;  %v3542_v20 = vrot.slane %v3495_v28, 7 }
0x12ac   :  { %v971_v17 = vpop.permute.xlu2 %970 }
0x12ad   :  { %989 = vst.msk [vmem:[#allocation4 + $0x29] sm:$0x1] %vm551_vm0, %v971_v17 }
0x12b1   :  { %1397 = vrot.lane.b32.xlu1 %v7227_v59, %s4564_s22 }
0x12b4   :  { %v1819_v36 = vpop.permute.xlu2 %1818 }
0x12b5   :  { %1838 = vst.msk [vmem:[#allocation4 + $0x23] sm:$0x1] %vm551_vm0, %v1819_v36  ;;  %v3445_v36 = vsub.f32 1.0, %v6742_v13 }
0x12ba   :  { %v3455_v38 = vpop.permute.xlu1 %3454 }
0x12bb   :  { %v3478_v5 = vmul.f32 %v3455_v38, %v3438_v31 }
0x12bc   :  { %v2246_v3 = vpop.permute.xlu2 %2245 }
0x12bd   :  { %v3494_v50 = vadd.f32 %v3486_v57, %v3478_v5  ;;  %2264 = vst.msk [vmem:[#allocation4 + $0x2c] sm:$0x1] %vm551_vm0, %v2246_v3  ;;  %v4108_v3 = vld [vmem:[%s7133_s3 + $0x8] sm:$0xff] }
0x12be   :  { %3610 = vmatpush.bf16.msra.mxu3 %v4108_v3  ;;  %v4111_v3 = vld [vmem:[%s7137_s5] sm:$0xff] }
0x12bf   :  { %v3543_v34 = vsel %vm593_vm9, %v3542_v20, %v3494_v50  ;;  %3510 = vrot.lane.b32.xlu0 %v3494_v50, %s4564_s22 }
0x12c2   :  { %v1396_v21 = vpop.permute.xlu1 %1395 }
0x12c3   :  { %1414 = vst.msk [vmem:[#allocation4 + $0x2a] sm:$0x1] %vm551_vm0, %v1396_v21 }
0x12c4   :  { %v3463_v56 = vpop.permute.xlu2 %3462 }
0x12c5   :  { %v3482_v25 = vmul.f32 %v3463_v56, %v3442_v27 }
0x12c7   :  { %974 = vrot.lane.b32.xlu0 %v7228_v55, %s4564_s22  ;;  %v3498_v44 = vadd.f32 %v3490_v46, %v3482_v25 }
0x12c9   :  { %v3548_v43 = vrot.slane %v3498_v44, 4 }
0x12ca   :  { %v3461_v18 = vpop.permute.xlu1 %3460 }
0x12cb   :  { %v3481_v60 = vmul.f32 %v3461_v18, %v3441_v7 }
0x12cc   :  { %v3094_v41 = vpop.permute.xlu2 %3093  ;;  %v3459_v35 = vpop.permute.xlu0 %3458 }
0x12cd   :  { %v3497_v29 = vadd.f32 %v3489_v16, %v3481_v60  ;;  %3113 = vst.msk [vmem:[#allocation4 + $0x26] sm:$0x1] %vm551_vm0, %v3094_v41  ;;  %v3480_v39 = vmul.f32 %v3459_v35, %v3440_v51 }
0x12cf   :  { %v3496_v42 = vadd.f32 %v3488_v6, %v3480_v39  ;;  %3516 = vrot.lane.b32.xlu1 %v3497_v29, %s4564_s22  ;;  %v3546_v24 = vrot.slane %v3497_v29, 5 }
0x12d1   :  { %v3544_v19 = vrot.slane %v3496_v42, 6  ;;  %3514 = vrot.lane.b32.xlu0 %v3496_v42, %s4564_s22 }
0x12d2   :  { %v2244_v1 = vpop.permute.xlu1 %2243 }
0x12d3   :  { %v3545_v26 = vsel %vm596_vm10, %v3544_v19, %v3543_v34  ;;  %2263 = vst.msk [vmem:[#allocation4 + $0x24] sm:$0x1] %vm551_vm0, %v2244_v1 }
0x12d4   :  { %v3547_v10 = vsel %vm599_vm11, %v3546_v24, %v3545_v26  ;;  %v3467_v22 = vpop.permute.xlu2 %3466  ;;  %v2669_v53 = vpop.permute.xlu0 %2668 }
0x12d5   :  { %2688 = vst.msk [vmem:[#allocation4 + $0x25] sm:$0x1] %vm551_vm0, %v2669_v53  ;;  %v3549_v11 = vsel %vm602_vm12, %v3548_v43, %v3547_v10  ;;  %v3484_v37 = vmul.f32 %v3467_v22, %v3444_v9  ;;  %v4110_v22 = vld [vmem:[%s7135_s4 + $0x8] sm:$0xff]  ;;  %v4109_v53 = vld [vmem:[%s7135_s4] sm:$0xff] }
0x12d6   :  { %3683 = vmatpush.bf16.msra.mxu1 %v4110_v22 }
0x12d7   :  { %1824 = vrot.lane.b32.xlu1 %v7229_v54, %s4564_s22  ;;  %v4123_v54 = vld [vmem:[%s7132_s8] ss:$0 sm:$0xff] }
0x12d9   :  { %1822 = vrot.lane.b32.xlu0 %v7230_v40, %s4564_s22 }
0x12da   :  { %v2671_v58 = vpop.permute.xlu1 %2670  ;;  %3684 = vmatpush.bf16.msra.mxu1 %v4109_v53 }
0x12db   :  { %2689 = vst.msk [vmem:[#allocation4 + $0x2d] sm:$0x1] %vm551_vm0, %v2671_v58 }
0x12dc   :  { %v973_v15 = vpop.permute.xlu2 %972  ;;  %v3096_v52 = vpop.permute.xlu0 %3095 }
0x12dd   :  { %990 = vst.msk [vmem:[#allocation4 + $0x31] sm:$0x1] %vm551_vm0, %v973_v15 }
0x12de   :  { %3114 = vst.msk [vmem:[#allocation4 + $0x2e] sm:$0x1] %vm551_vm0, %v3096_v52 }
0x12df   :  { %3518 = vrot.lane.b32.xlu1 %v3498_v44, %s4564_s22 }
0x12e1   :  { %2249 = vrot.lane.b32.xlu0 %v7231_v48, %s4564_s22 }
0x12e2   :  { %v542_v45 = vpop.permute.xlu1 %541 }
0x12e3   :  { %559 = vst.msk [vmem:[#allocation4 + $0x38] sm:$0x1] %vm551_vm0, %v542_v45 }
0x12e4   :  { %v1400_v33 = vpop.permute.xlu2 %1399  ;;  %v540_v47 = vpop.permute.xlu0 %539 }
0x12e5   :  { %1416 = vst.msk [vmem:[#allocation4 + $0x3a] sm:$0x1] %vm551_vm0, %v1400_v33 }
0x12e6   :  { %558 = vst.msk [vmem:[#allocation4 + $0x30] sm:$0x1] %vm551_vm0, %v540_v47 }
0x12e7   :  { %2672 = vrot.lane.b32.xlu1 %v6209_v14, %s4564_s22  ;;  %v3500_v14 = vadd.f32 %v3492_v32, %v3484_v37 }
0x12e9   :  { %3097 = vrot.lane.b32.xlu0 %v6482_v62, %s4564_s22  ;;  %v3552_v59 = vrot.slane %v3500_v14, 2 }
0x12ec   :  { %v2248_v30 = vpop.permute.xlu2 %2247  ;;  %v3465_v0 = vpop.permute.xlu0 %3464 }
0x12ed   :  { %2265 = vst.msk [vmem:[#allocation4 + $0x34] sm:$0x1] %vm551_vm0, %v2248_v30  ;;  %v3483_v61 = vmul.f32 %v3465_v0, %v3443_v8 }
0x12ef   :  { %v3499_v28 = vadd.f32 %v3491_v63, %v3483_v61  ;;  %3099 = vrot.lane.b32.xlu1 %v6479_v4, %s4564_s22  ;;  %v4107_v4 = vld [vmem:[%s7133_s3] sm:$0xff] }
0x12f0   :  { %3611 = vmatpush.bf16.msra.mxu3 %v4107_v4 }
0x12f1   :  { %v3550_v17 = vrot.slane %v3499_v28, 3  ;;  %3520 = vrot.lane.b32.xlu2 %v3499_v28, %s4564_s22 }
0x12f3   :  { %v3551_v62 = vsel %vm605_vm13, %v3550_v17, %v3549_v11 }
0x12f4   :  { %v3469_v2 = vpop.permute.xlu0 %3468  ;;  %v3553_v31 = vsel %vm608_vm14, %v3552_v59, %v3551_v62 }
0x12f5   :  { %v3485_v12 = vmul.f32 %v3469_v2, %v3445_v36 }
0x12f7   :  { %v3501_v38 = vadd.f32 %v3493_v49, %v3485_v12 }
0x12f9   :  { %v3554_v57 = vrot.slane %v3501_v38, 1  ;;  %2674 = vrot.lane.b32.xlu2 %v6211_v23, %s4564_s22  ;;  %3524 = vrot.lane.b32.xlu0 %v3501_v38, %s4564_s22 }
0x12fb   :  { %v6887_v5 = vsel %vm611_vm15, %v3554_v57, %v3553_v31  ;;  %v4112_v57 = vld [vmem:[%s7137_s5 + $0x8] sm:$0xff] }
0x12fc   :  { %3764 = vmatpush.bf16.msra.mxu2 %v4112_v57 }
0x1300   :  { %3765 = vmatpush.bf16.msra.mxu2 %v4111_v3 }
0x1301   :  { %3522 = vrot.lane.b32.xlu2 %v3500_v14, %s4564_s22 }
0x131b   :  { %v3513_v13 = vpop.permute.xlu1 %3512 }
0x131c   :  { %3535 = vst.msk [vmem:[#allocation4 + $0xf] sm:$0x1] %vm551_vm0, %v3513_v13  ;;  %v4124_v13 = vld [vmem:[%s7134_s9] ss:$0 sm:$0xff] }
0x1323   :  { %v1398_v23 = vpop.permute.xlu1 %1397  ;;  %v3561_v21 = vld [vmem:[#allocation4 + $0x8] sm:$0xff] }
0x1324   :  { %1415 = vst.msk [vmem:[#allocation4 + $0x32] sm:$0x1] %vm551_vm0, %v1398_v23 }
0x1331   :  { %v3511_v20 = vpop.permute.xlu0 %3510 }
0x1332   :  { %3534 = vst.msk [vmem:[#allocation4 + $0x7] sm:$0x1] %vm551_vm0, %v3511_v20 }
0x1339   :  { %v975_v50 = vpop.permute.xlu0 %974  ;;  %v3560_v34 = vld [vmem:[#allocation4] sm:$0xff] }
0x133a   :  { %991 = vst.msk [vmem:[#allocation4 + $0x39] sm:$0x1] %vm551_vm0, %v975_v50  ;;  %v3568_v56 = vpack.c.bf16 %v3561_v21, %v3560_v34 }
0x133c   :  { %4076 = vmatmul.msk.bf16.vlgmr.msra.gmra.mxu3 %vm43_vm1, %v3568_v56 }
0x1341   :  { %v3517_v55 = vpop.permute.xlu1 %3516 }
0x1342   :  { %3537 = vst.msk [vmem:[#allocation4 + $0x1f] sm:$0x1] %vm551_vm0, %v3517_v55 }
0x1343   :  { %v3515_v27 = vpop.permute.xlu0 %3514 }
0x1344   :  { %3536 = vst.msk [vmem:[#allocation4 + $0x17] sm:$0x1] %vm551_vm0, %v3515_v27 }
0x1349   :  { %v1825_v7 = vpop.permute.xlu1 %1824  ;;  %v3563_v60 = vld [vmem:[#allocation4 + $0x18] sm:$0xff] }
0x134a   :  { %1841 = vst.msk [vmem:[#allocation4 + $0x3b] sm:$0x1] %vm551_vm0, %v1825_v7 }
0x134b   :  { %v3521_v18 = vpop.permute.xlu2 %3520  ;;  %v1823_v25 = vpop.permute.xlu0 %1822  ;;  %v3562_v16 = vld [vmem:[#allocation4 + $0x10] sm:$0xff] }
0x134c   :  { %3539 = vst.msk [vmem:[#allocation4 + $0x2f] sm:$0x1] %vm551_vm0, %v3521_v18  ;;  %v3569_v51 = vpack.c.bf16 %v3563_v60, %v3562_v16 }
0x134d   :  { %1840 = vst.msk [vmem:[#allocation4 + $0x33] sm:$0x1] %vm551_vm0, %v1823_v25 }
0x134e   :  { %4077 = vmatmul.msk.bf16.gmra.mxu3 %vm43_vm1, %v3569_v51 }
0x1351   :  { %v3519_v41 = vpop.permute.xlu1 %3518 }
0x1352   :  { %3538 = vst.msk [vmem:[#allocation4 + $0x27] sm:$0x1] %vm551_vm0, %v3519_v41 }
0x1353   :  { %v2675_v35 = vpop.permute.xlu2 %2674  ;;  %v2250_v46 = vpop.permute.xlu0 %2249  ;;  %v3565_v42 = vld [vmem:[#allocation4 + $0x28] sm:$0xff] }
0x1354   :  { %2691 = vst.msk [vmem:[#allocation4 + $0x3d] sm:$0x1] %vm551_vm0, %v2675_v35 }
0x1355   :  { %2266 = vst.msk [vmem:[#allocation4 + $0x3c] sm:$0x1] %vm551_vm0, %v2250_v46 }
0x1359   :  { %v2673_v29 = vpop.permute.xlu1 %2672  ;;  %v3564_v6 = vld [vmem:[#allocation4 + $0x20] sm:$0xff] }
0x135a   :  { %2690 = vst.msk [vmem:[#allocation4 + $0x35] sm:$0x1] %vm551_vm0, %v2673_v29  ;;  %v3570_v19 = vpack.c.bf16 %v3565_v42, %v3564_v6 }
0x135b   :  { %v3523_v39 = vpop.permute.xlu2 %3522  ;;  %v3098_v44 = vpop.permute.xlu0 %3097 }
0x135c   :  { %3540 = vst.msk [vmem:[#allocation4 + $0x37] sm:$0x1] %vm551_vm0, %v3523_v39 }
0x135d   :  { %3115 = vst.msk [vmem:[#allocation4 + $0x36] sm:$0x1] %vm551_vm0, %v3098_v44 }
0x135e   :  { %4078 = vmatmul.msk.bf16.gmra.mxu3 %vm43_vm1, %v3570_v19 }
0x1361   :  { %v3100_v24 = vpop.permute.xlu1 %3099 }
0x1362   :  { %3116 = vst.msk [vmem:[#allocation4 + $0x3e] sm:$0x1] %vm551_vm0, %v3100_v24 }
0x1364   :  { %v3566_v43 = vld [vmem:[#allocation4 + $0x30] sm:$0xff] }
0x136b   :  { %v3525_v1 = vpop.permute.xlu0 %3524 }
0x136c   :  { %3541 = vst.msk [vmem:[#allocation4 + $0x3f] sm:$0x1] %vm551_vm0, %v3525_v1 }
0x1373   :  { %v3567_v26 = vld [vmem:[#allocation4 + $0x38] sm:$0xff] }
0x1374   :  { %v3571_v10 = vpack.c.bf16 %v3567_v26, %v3566_v43 }
0x1376   :  { %4079 = vmatmul.msk.bf16.gmra.mxu3 %vm43_vm1, %v3571_v10 }
0x13bf   :  { %v3613_v11 = vpop.f32.mrf.mxu3 }
0x13c0   :  { %v3614_v40 = vadd.f32 %v4123_v54, %v3613_v11 }
0x13c2   :  { %4510 = vtanh.f32 %v3614_v40 }
0x13c7   :  { %v3615_v58 = vpop.f32.mrf.mxu3 }
0x13c8   :  { %v3616_v15 = vadd.f32 %v4123_v54, %v3615_v58  ;;  %v4511_v52 = vpop.eup %4510 }
0x13ca   :  { %4512 = vtanh.f32 %v3616_v15 }
0x13d0   :  { %v4513_v48 = vpop.eup %4512 }
0x13d1   :  { %v3641_v45 = vpack.c.bf16 %v4513_v48, %v4511_v52  ;;  %v3618_v33 = vpop.f32.mrf.mxu3 }
0x13d2   :  { %v3619_v47 = vadd.f32 %v4123_v54, %v3618_v33 }
0x13d3   :  { %4088 = vmatmul.msk.bf16.vlgmr.msra.gmra.mxu1 %vm43_vm1, %v3641_v45 }
0x13d4   :  { %4514 = vtanh.f32 %v3619_v47 }
0x13d9   :  { %v3620_v9 = vpop.f32.mrf.mxu3 }
0x13da   :  { %v3621_v37 = vadd.f32 %v4123_v54, %v3620_v9  ;;  %v4515_v8 = vpop.eup %4514 }
0x13dc   :  { %4516 = vtanh.f32 %v3621_v37 }
0x13e1   :  { %v3623_v32 = vpop.f32.mrf.mxu3 }
0x13e2   :  { %v4517_v30 = vpop.eup %4516  ;;  %v3624_v63 = vadd.f32 %v4123_v54, %v3623_v32  ;;  %v3787_v32 = vlaneseq }
0x13e3   :  { %v3642_v0 = vpack.c.bf16 %v4517_v30, %v4515_v8 }
0x13e4   :  { %4518 = vtanh.f32 %v3624_v63 }
0x13e5   :  { %4089 = vmatmul.msk.bf16.gmra.mxu1 %vm43_vm1, %v3642_v0  ;;  %v6950_v0 = vand.u32 127, %v3787_v32 }
0x13e7   :  { %vm3789_vm0 = vcmp.lt.s32.totalorder %v6950_v0, 8 }
0x13e9   :  { %v3625_v61 = vpop.f32.mrf.mxu3 }
0x13ea   :  { %v3626_v14 = vadd.f32 %v4123_v54, %v3625_v61  ;;  %v4519_v28 = vpop.eup %4518 }
0x13ec   :  { %4520 = vtanh.f32 %v3626_v14 }
0x13f2   :  { %v4521_v17 = vpop.eup %4520 }
0x13f3   :  { %v3643_v59 = vpack.c.bf16 %v4521_v17, %v4519_v28 }
0x13f5   :  { %4090 = vmatmul.msk.bf16.gmra.mxu1 %vm43_vm1, %v3643_v59 }
0x13f9   :  { %v3628_v36 = vpop.f32.mrf.mxu3 }
0x13fa   :  { %v3629_v62 = vadd.f32 %v4123_v54, %v3628_v36 }
0x13fc   :  { %4522 = vtanh.f32 %v3629_v62 }
0x1401   :  { %v3630_v2 = vpop.f32.mrf.mxu3 }
0x1402   :  { %v3631_v31 = vadd.f32 %v4123_v54, %v3630_v2  ;;  %v4523_v49 = vpop.eup %4522 }
0x1404   :  { %4524 = vtanh.f32 %v3631_v31 }
0x140a   :  { %v4525_v12 = vpop.eup %4524 }
0x140b   :  { %v3644_v38 = vpack.c.bf16 %v4525_v12, %v4523_v49 }
0x140d   :  { %4091 = vmatmul.msk.bf16.gmra.mxu1 %vm43_vm1, %v3644_v38 }
0x1450   :  { %v3686_v4 = vpop.f32.mrf.mxu1 }
0x1451   :  { %v3687_v23 = vadd.f32 %v4124_v13, %v3686_v4 }
0x1453   :  { %4526 = vtanh.f32 %v3687_v23 }
0x1458   :  { %v3688_v20 = vpop.f32.mrf.mxu1 }
0x1459   :  { %v3689_v50 = vadd.f32 %v4124_v13, %v3688_v20  ;;  %v4527_v34 = vpop.eup %4526 }
0x145a   :  { %v3714_v56 = vadd.f32 %v4527_v34, %v4511_v52 }
0x145b   :  { %4528 = vtanh.f32 %v3689_v50 }
0x1461   :  { %v4529_v21 = vpop.eup %4528 }
0x1462   :  { %v3715_v55 = vadd.f32 %v4529_v21, %v4513_v48  ;;  %v3691_v27 = vpop.f32.mrf.mxu1  ;;  %v6946_v48 = vld [vmem:[%s7136_s10] ss:$0 sm:$0xff]  ;;  %s4565_s10 = smov 48  }
0x1463   :  { %v3692_v18 = vadd.f32 %v4124_v13, %v3691_v27 }
0x1464   :  { %v3722_v7 = vpack.c.bf16 %v3715_v55, %v3714_v56 }
0x1465   :  { %4530 = vtanh.f32 %v3692_v18 }
0x1466   :  { %4100 = vmatmul.msk.bf16.vlgmr.msra.gmra.mxu2 %vm43_vm1, %v3722_v7 }
0x146a   :  { %v3693_v25 = vpop.f32.mrf.mxu1 }
0x146b   :  { %v3694_v16 = vadd.f32 %v4124_v13, %v3693_v25  ;;  %v4531_v60 = vpop.eup %4530 }
0x146c   :  { %v3716_v35 = vadd.f32 %v4531_v60, %v4515_v8 }
0x146d   :  { %4532 = vtanh.f32 %v3694_v16 }
0x1472   :  { %v3696_v51 = vpop.f32.mrf.mxu1 }
0x1473   :  { %v4533_v41 = vpop.eup %4532  ;;  %v3697_v6 = vadd.f32 %v4124_v13, %v3696_v51 }
0x1474   :  { %v3717_v46 = vadd.f32 %v4533_v41, %v4517_v30 }
0x1475   :  { %4534 = vtanh.f32 %v3697_v6 }
0x1476   :  { %v3723_v29 = vpack.c.bf16 %v3717_v46, %v3716_v35 }
0x1478   :  { %4101 = vmatmul.msk.bf16.gmra.mxu2 %vm43_vm1, %v3723_v29 }
0x147a   :  { %v3698_v39 = vpop.f32.mrf.mxu1 }
0x147b   :  { %v3699_v44 = vadd.f32 %v4124_v13, %v3698_v39  ;;  %v4535_v42 = vpop.eup %4534 }
0x147c   :  { %v3718_v24 = vadd.f32 %v4535_v42, %v4519_v28 }
0x147d   :  { %4536 = vtanh.f32 %v3699_v44 }
0x1483   :  { %v4537_v19 = vpop.eup %4536 }
0x1484   :  { %v3719_v1 = vadd.f32 %v4537_v19, %v4521_v17 }
0x1486   :  { %v3724_v43 = vpack.c.bf16 %v3719_v1, %v3718_v24 }
0x1488   :  { %4102 = vmatmul.msk.bf16.gmra.mxu2 %vm43_vm1, %v3724_v43 }
0x148a   :  { %v3701_v26 = vpop.f32.mrf.mxu1 }
0x148b   :  { %v3702_v10 = vadd.f32 %v4124_v13, %v3701_v26 }
0x148d   :  { %4538 = vtanh.f32 %v3702_v10 }
0x1492   :  { %v3703_v22 = vpop.f32.mrf.mxu1 }
0x1493   :  { %v3704_v53 = vadd.f32 %v4124_v13, %v3703_v22  ;;  %v4539_v11 = vpop.eup %4538 }
0x1494   :  { %v3720_v40 = vadd.f32 %v4539_v11, %v4523_v49 }
0x1495   :  { %4540 = vtanh.f32 %v3704_v53 }
0x149b   :  { %v4541_v54 = vpop.eup %4540 }
0x149c   :  { %v3721_v58 = vadd.f32 %v4541_v54, %v4525_v12 }
0x149e   :  { %v3725_v15 = vpack.c.bf16 %v3721_v58, %v3720_v40 }
0x14a0   :  { %4103 = vmatmul.msk.bf16.gmra.mxu2 %vm43_vm1, %v3725_v15 }
0x14e9   :  { %v3767_v52 = vpop.f32.mrf.mxu2 }
0x14ea   :  { %v3768_v45 = vadd.f32 %v6946_v48, %v3767_v52 }
0x14ec   :  { %v3790_v9 = vmul.f32 0.5, %v3768_v45 }
0x14ee   :  { %v3798_v30 = vmul.f32 1.442695, %v3790_v9 }
0x14f1   :  { %v3769_v33 = vpop.f32.mrf.mxu2 }
0x14f2   :  { %v3770_v47 = vadd.f32 %v6946_v48, %v3769_v33 }
0x14f4   :  { %v3791_v37 = vmul.f32 0.5, %v3770_v47 }
0x14f6   :  { %v3800_v8 = vmul.f32 1.442695, %v3791_v37 }
0x14f8   :  { %4542 = vpow2.f32 %v3800_v8 }
0x14f9   :  { %4544 = vpow2.f32 %v3798_v30 }
0x14fb   :  { %v3772_v63 = vpop.f32.mrf.mxu2 }
0x14fc   :  { %v3773_v61 = vadd.f32 %v6946_v48, %v3772_v63 }
0x14fe   :  { %v3792_v14 = vmul.f32 0.5, %v3773_v61  ;;  %v4543_v28 = vpop.eup %4542 }
0x14ff   :  { %v6956_v17 = vsel %vm3789_vm0, %v3770_v47, %v4543_v28  ;;  %v4545_v36 = vpop.eup %4544 }
0x1500   :  { %v3802_v59 = vmul.f32 1.442695, %v3792_v14  ;;  %v3830_v62 = vrot.slane %v6956_v17, 7  ;;  %v6961_v31 = vsel %vm3789_vm0, %v3768_v45, %v4545_v36  ;;  %v3863_v26 = vrot.slane %v6956_v17, 1 }
0x1501   :  { %v3880_v10 = vrot.slane %v6956_v17, 2  ;;  %v3931_v53 = vrot.slane %v6956_v17, 5  ;;  %v3862_v11 = vrot.slane %v6961_v31, 2  ;;  %v3879_v54 = vrot.slane %v6961_v31, 3 }
0x1502   :  { %4546 = vpow2.f32 %v3802_v59  ;;  %v3831_v12 = vsel %vm593_vm9, %v3830_v62, %v6961_v31  ;;  %v3914_v40 = vrot.slane %v6956_v17, 4  ;;  %v3845_v15 = vrot.slane %v6961_v31, 1 }
0x1503   :  { %v3774_v2 = vpop.f32.mrf.mxu2  ;;  %v3896_v52 = vrot.slane %v6961_v31, 4  ;;  %v3913_v45 = vrot.slane %v6961_v31, 5  ;;  %v3930_v33 = vrot.slane %v6961_v31, 6  ;;  %v3881_v37 = vsel %vm593_vm9, %v3880_v10, %v3879_v54 }
0x1504   :  { %v3775_v49 = vadd.f32 %v6946_v48, %v3774_v2  ;;  %v3864_v8 = vsel %vm593_vm9, %v3863_v26, %v3862_v11  ;;  %v3846_v63 = vsel %vm593_vm9, %v6956_v17, %v3845_v15 }
0x1505   :  { %v3915_v59 = vsel %vm593_vm9, %v3914_v40, %v3913_v45 }
0x1506   :  { %v3793_v38 = vmul.f32 0.5, %v3775_v49 }
0x1508   :  { %v4547_v57 = vpop.eup %4546  ;;  %v3804_v3 = vmul.f32 1.442695, %v3793_v38 }
0x1509   :  { %v6968_v4 = vsel %vm3789_vm0, %v3773_v61, %v4547_v57  ;;  %v3932_v61 = vsel %vm593_vm9, %v3931_v53, %v3930_v33 }
0x150a   :  { %4548 = vpow2.f32 %v3804_v3  ;;  %v3832_v20 = vrot.slane %v6968_v4, 6  ;;  %v3882_v30 = vrot.slane %v6968_v4, 1  ;;  %v3865_v14 = vsel %vm596_vm10, %v6968_v4, %v3864_v8 }
0x150b   :  { %v3777_v13 = vpop.f32.mrf.mxu2  ;;  %v3847_v28 = vrot.slane %v6968_v4, 7  ;;  %v3933_v62 = vrot.slane %v6968_v4, 4  ;;  %v3916_v2 = vrot.slane %v6968_v4, 3 }
0x150c   :  { %v3778_v23 = vadd.f32 %v6946_v48, %v3777_v13  ;;  %v3833_v34 = vsel %vm596_vm10, %v3832_v20, %v3831_v12  ;;  %v3883_v13 = vsel %vm596_vm10, %v3882_v30, %v3881_v37 }
0x150d   :  { %v3917_v8 = vsel %vm596_vm10, %v3916_v2, %v3915_v59 }
0x150e   :  { %v3794_v50 = vmul.f32 0.5, %v3778_v23 }
0x1510   :  { %v4549_v21 = vpop.eup %4548  ;;  %v3806_v56 = vmul.f32 1.442695, %v3794_v50 }
0x1511   :  { %v6975_v55 = vsel %vm3789_vm0, %v3775_v49, %v4549_v21  ;;  %v3899_v49 = vrot.slane %v6968_v4, 2  ;;  %v3848_v21 = vsel %vm596_vm10, %v3847_v28, %v3846_v63 }
0x1512   :  { %4550 = vpow2.f32 %v3806_v56  ;;  %v3834_v18 = vrot.slane %v6975_v55, 5  ;;  %v3866_v36 = vrot.slane %v6975_v55, 7  ;;  %v3849_v57 = vrot.slane %v6975_v55, 6 }
0x1513   :  { %v3779_v27 = vpop.f32.mrf.mxu2  ;;  %v3901_v33 = vrot.slane %v6975_v55, 1 }
0x1514   :  { %v3780_v7 = vadd.f32 %v6946_v48, %v3779_v27  ;;  %v3835_v16 = vsel %vm599_vm11, %v3834_v18, %v3833_v34  ;;  %v3884_v34 = vsel %vm599_vm11, %v6975_v55, %v3883_v13  ;;  %v3867_v18 = vsel %vm599_vm11, %v3866_v36, %v3865_v14 }
0x1515   :  { %v3948_v13 = vrot.slane %v6956_v17, 6 }
0x1516   :  { %v3795_v25 = vmul.f32 0.5, %v3780_v7 }
0x1518   :  { %v4551_v60 = vpop.eup %4550  ;;  %v3808_v51 = vmul.f32 1.442695, %v3795_v25 }
0x1519   :  { %v6982_v41 = vsel %vm3789_vm0, %v3778_v23, %v4551_v60 }
0x151a   :  { %4552 = vpow2.f32 %v3808_v51  ;;  %v3836_v35 = vrot.slane %v6982_v41, 4  ;;  %v3885_v12 = vrot.slane %v6982_v41, 7  ;;  %v3868_v38 = vrot.slane %v6982_v41, 6 }
0x151b   :  { %v3851_v50 = vrot.slane %v6982_v41, 5  ;;  %v3937_v15 = vrot.slane %v6982_v41, 2  ;;  %v3920_v45 = vrot.slane %v6982_v41, 1 }
0x151c   :  { %v3837_v46 = vsel %vm602_vm12, %v3836_v35, %v3835_v16  ;;  %v3886_v51 = vsel %vm602_vm12, %v3885_v12, %v3884_v34  ;;  %v3869_v35 = vsel %vm602_vm12, %v3868_v38, %v3867_v18  ;;  %v3952_v18 = vrot.slane %v6975_v55, 4 }
0x1520   :  { %v4553_v29 = vpop.eup %4552 }
0x1521   :  { %v6988_v6 = vsel %vm3789_vm0, %v3780_v7, %v4553_v29  ;;  %v3935_v29 = vrot.slane %v6975_v55, 3 }
0x1522   :  { %v3838_v44 = vrot.slane %v6988_v6, 3  ;;  %v3887_v23 = vrot.slane %v6988_v6, 6  ;;  %v3870_v20 = vrot.slane %v6988_v6, 5  ;;  %v3853_v56 = vrot.slane %v6988_v6, 4 }
0x1523   :  { %v3782_v39 = vpop.f32.mrf.mxu2  ;;  %v3939_v37 = vrot.slane %v6988_v6, 1  ;;  %v3904_v36 = vrot.slane %v6988_v6, 7 }
0x1524   :  { %v3783_v42 = vadd.f32 %v6946_v48, %v3782_v39  ;;  %v3839_v19 = vsel %vm605_vm13, %v3838_v44, %v3837_v46  ;;  %v3850_v46 = vsel %vm599_vm11, %v3849_v57, %v3848_v21  ;;  %v3888_v44 = vsel %vm605_vm13, %v3887_v23, %v3886_v51 }
0x1526   :  { %v3796_v24 = vmul.f32 0.5, %v3783_v42 }
0x1528   :  { %v3810_v1 = vmul.f32 1.442695, %v3796_v24 }
0x152a   :  { %4554 = vpow2.f32 %v3810_v1 }
0x152b   :  { %v3784_v43 = vpop.f32.mrf.mxu2 }
0x152c   :  { %v3785_v22 = vadd.f32 %v6946_v48, %v3784_v43  ;;  %v3897_v48 = vrot.slane %v6956_v17, 3 }
0x152e   :  { %v3797_v58 = vmul.f32 0.5, %v3785_v22  ;;  %v3898_v30 = vsel %vm593_vm9, %v3897_v48, %v3896_v52 }
0x152f   :  { %v3900_v28 = vsel %vm596_vm10, %v3899_v49, %v3898_v30 }
0x1530   :  { %v4555_v47 = vpop.eup %4554  ;;  %v3812_v9 = vmul.f32 1.442695, %v3797_v58  ;;  %v3918_v58 = vrot.slane %v6975_v55, 2  ;;  %v3902_v48 = vsel %vm599_vm11, %v3901_v33, %v3900_v28 }
0x1531   :  { %v7009_v32 = vsel %vm3789_vm0, %v3783_v42, %v4555_v47  ;;  %v3871_v42 = vsel %vm605_vm13, %v3870_v20, %v3869_v35 }
0x1532   :  { %4556 = vpow2.f32 %v3812_v9  ;;  %v3840_v3 = vrot.slane %v7009_v32, 2  ;;  %v3889_v7 = vrot.slane %v7009_v32, 5  ;;  %v3872_v25 = vrot.slane %v7009_v32, 4 }
0x1533   :  { %v3855_v16 = vrot.slane %v7009_v32, 3  ;;  %v3934_v9 = vsel %vm596_vm10, %v3933_v62, %v3932_v61  ;;  %v3923_v14 = vrot.slane %v7009_v32, 7  ;;  %v3919_v62 = vsel %vm599_vm11, %v3918_v58, %v3917_v8 }
0x1534   :  { %v3841_v27 = vsel %vm608_vm14, %v3840_v3, %v3839_v19  ;;  %v3852_v19 = vsel %vm602_vm12, %v3851_v50, %v3850_v46  ;;  %v3890_v10 = vsel %vm608_vm14, %v3889_v7, %v3888_v44  ;;  %v3873_v0 = vsel %vm608_vm14, %v3872_v25, %v3871_v42 }
0x1535   :  { %v3854_v43 = vsel %vm605_vm13, %v3853_v56, %v3852_v19  ;;  %v3936_v63 = vsel %vm599_vm11, %v3935_v29, %v3934_v9  ;;  %v3906_v2 = vrot.slane %v7009_v32, 6  ;;  %v3921_v52 = vsel %vm602_vm12, %v3920_v45, %v3919_v62 }
0x1536   :  { %v3938_v12 = vsel %vm602_vm12, %v3937_v15, %v3936_v63  ;;  %v3922_v57 = vsel %vm605_vm13, %v6988_v6, %v3921_v52  ;;  %v3903_v3 = vsel %vm602_vm12, %v6982_v41, %v3902_v48  ;;  %v3947_v7 = vrot.slane %v6961_v31, 7 }
0x1537   :  { %v3940_v49 = vsel %vm605_vm13, %v3939_v37, %v3938_v12  ;;  %v3924_v20 = vsel %vm608_vm14, %v3923_v14, %v3922_v57  ;;  %v3905_v50 = vsel %vm605_vm13, %v3904_v36, %v3903_v3  ;;  %v3954_v25 = vrot.slane %v6982_v41, 3 }
0x1538   :  { %v4557_v60 = vpop.eup %4556  ;;  %v3941_v23 = vsel %vm608_vm14, %v7009_v32, %v3940_v49  ;;  %v3907_v56 = vsel %vm608_vm14, %v3906_v2, %v3905_v50  ;;  %v3958_v31 = vrot.slane %v7009_v32, 1 }
0x1539   :  { %v7046_v39 = vsel %vm3789_vm0, %v3785_v22, %v4557_v60  ;;  %v3856_v22 = vsel %vm608_vm14, %v3855_v16, %v3854_v43  ;;  %v3949_v16 = vsel %vm593_vm9, %v3948_v13, %v3947_v7  ;;  %v3956_v60 = vrot.slane %v6988_v6, 2 }
0x153a   :  { %v3891_v24 = vrot.slane %v7046_v39, 4  ;;  %v3874_v1 = vrot.slane %v7046_v39, 3  ;;  %v3857_v26 = vrot.slane %v7046_v39, 2  ;;  %v3842_v53 = vrot.slane %v7046_v39, 1 }
0x153b   :  { %v3942_v61 = vrot.slane %v7046_v39, 7  ;;  %v3925_v59 = vrot.slane %v7046_v39, 6  ;;  %v3908_v38 = vrot.slane %v7046_v39, 5  ;;  %vm7232_vm9 = vcmask 130048  }
0x153c   :  { %v3892_v11 = vsel %vm611_vm15, %v3891_v24, %v3890_v10  ;;  %v3875_v54 = vsel %vm611_vm15, %v3874_v1, %v3873_v0  ;;  %v3858_v40 = vsel %vm611_vm15, %v3857_v26, %v3856_v22  ;;  %v3843_v47 = vsel %vm611_vm15, %v3842_v53, %v3841_v27 }
0x153d   :  { %3893 = vrot.lane.b32.xlu0 %v3892_v11, %s4565_s10  ;;  %3876 = vrot.lane.b32.xlu2 %v3875_v54, %s4563_s21  ;;  %v3943_v34 = vsel %vm611_vm15, %v3942_v61, %v3941_v23  ;;  %v3926_v21 = vsel %vm611_vm15, %v3925_v59, %v3924_v20  ;;  %v3950_v27 = vrot.slane %v6968_v4, 5  ;;  %v3909_v17 = vsel %vm611_vm15, %v3908_v38, %v3907_v56 }
0x153e   :  { %3859 = vrot.lane.b32.xlu1 %v3858_v40, %s4566_s0 }
0x153f   :  { %v3951_v4 = vsel %vm596_vm10, %v3950_v27, %v3949_v16  ;;  %vm3966_vm10 = vcmask 392192  }
0x1540   :  { %v3953_v51 = vsel %vm599_vm11, %v3952_v18, %v3951_v4  ;;  %vm3968_vm11 = vcmask 523264  }
0x1541   :  { %v3955_v35 = vsel %vm602_vm12, %v3954_v25, %v3953_v51  ;;  %vm3970_vm12 = vcmask 654336  }
0x1542   :  { %v3957_v46 = vsel %vm605_vm13, %v3956_v60, %v3955_v35  ;;  %vm3973_vm13 = vcmask 916480  }
0x1543   :  { %v3959_v55 = vsel %vm608_vm14, %v3958_v31, %v3957_v46  ;;  %vm7233_vm14 = vcmask 785408  }
0x1544   :  { %v3960_v41 = vsel %vm611_vm15, %v7046_v39, %v3959_v55 }
0x1545   :  { %3944 = vrot.lane.b32.xlu0 %v3943_v34, %s4564_s22  ;;  %3927 = vrot.lane.b32.xlu2 %v3926_v21, %s4567_s6 }
0x1546   :  { %3910 = vrot.lane.b32.xlu1 %v3909_v17, %s4562_s20  ;;  %s4568_s20 = smov 112  }
0x154d   :  { %3556 = vrot.lane.b32.xlu2 %v6887_v5, %s4564_s22 }
0x154e   :  { %3961 = vrot.lane.b32.xlu1 %v3960_v41, %s4568_s20 }
0x1597   :  { %v3877_v6 = vpop.permute.xlu2 %3876 }
0x159f   :  { %v3928_v29 = vpop.permute.xlu2 %3927 }
0x15a7   :  { %v3557_v44 = vpop.permute.xlu2 %3556 }
0x15a8   :  { %3559 = vst.msk [vmem:[#allocation2] sm:$0xff] %vm43_vm1, %v3557_v44 }
0x15af   :  { %v3894_v19 = vpop.permute.xlu0 %3893 }
0x15b0   :  { %v3860_v32 = vpop.permute.xlu1 %3859 }
0x15b1   :  { %v3964_v42 = vsel %vm7232_vm9, %v3843_v47, %v3860_v32 }
0x15b2   :  { %v3965_v24 = vsel %vm43_vm1, %v3964_v42, %v3877_v6 }
0x15b3   :  { %v3967_v5 = vsel %vm3966_vm10, %v3965_v24, %v3894_v19 }
0x15b7   :  { %v3945_v26 = vpop.permute.xlu0 %3944 }
0x15b8   :  { %v3911_v1 = vpop.permute.xlu1 %3910 }
0x15b9   :  { %v3969_v43 = vsel %vm3968_vm11, %v3967_v5, %v3911_v1 }
0x15ba   :  { %v3971_v39 = vsel %vm3970_vm12, %v3969_v43, %v3928_v29 }
0x15bb   :  { %v3972_v0 = vsel %vm7233_vm14, %v3971_v39, %v3945_v26 }
0x15c0   :  { %v3962_v10 = vpop.permute.xlu1 %3961 }
0x15c1   :  { %v3974_v22 = vsel %vm3973_vm13, %v3972_v0, %v3962_v10 }
0x15c2   :  { %3975 = vst [vmem:[%s7138_s11] sm:$0xff] %v3974_v22 }

</bundles_post_ra>
